<compile_context>
chip_gen: v7x
topology: tpu7x:2x2x1
jax: 0.10.0
libtpu: 0.0.40
codegen_flags: <defaults>
</compile_context>

<pallas_src>
import jax
import jax.numpy as jnp
from jax import lax
from jax.experimental import pallas as pl
from jax.experimental.pallas import tpu as pltpu

# ----- small synthetic config (same structure as the PyTorch module, reduced sizes) -----
IDIM = 64
LMAX = 64
CONV_LAYERS = 3
CONV_CHANS = (32, 64, 128)      # last layer lane-dense (128)
K_SIZE = 3
STRIDE = 2
PAD = (K_SIZE - 1) // 2
GRU_UNITS = 128                 # gate slices are 128-lane aligned
BN_EPS = 1e-5
TAPS = K_SIZE * K_SIZE          # 9
TAPS_PAD = 16                   # layer-1 contraction padded to a sublane multiple

assert K_SIZE == 3 and STRIDE == 2 and PAD == 1
assert IDIM % (2 ** CONV_LAYERS) == 0 and LMAX % (2 ** CONV_LAYERS) == 0

_VMEM_16MB = pltpu.CompilerParams(vmem_limit_bytes=16 * 1024 * 1024)


# --------------------------- Pallas kernels ---------------------------

def _conv_bn_relu_cn_kernel(x_ref, w_ref, g_ref, b_ref, o_ref):
    """Channel-major conv layer: one MXU matmul + one-pass batch-stat BN + ReLU.

    x_ref: (Kc, N)  bf16   im2col patches, rows = (tap, ci), cols = (b, ho, wo)
    w_ref: (Co, Kc) bf16   reshaped conv weight
    g_ref/b_ref: (Co, 1) f32   BN gamma / beta
    o_ref: (Co, N)  bf16   normalized + ReLU'd activations (stays channel-major)
    """
    y = jnp.dot(w_ref[...], x_ref[...], preferred_element_type=jnp.float32)   # (Co, N) f32
    inv_n = 1.0 / float(y.shape[1])
    mean = jnp.sum(y, axis=1, keepdims=True) * inv_n
    var = jnp.sum(y * y, axis=1, keepdims=True) * inv_n - mean * mean         # biased var
    yn = (y - mean) * lax.rsqrt(var + BN_EPS) * g_ref[...] + b_ref[...]
    o_ref[...] = jnp.maximum(yn, 0.0).astype(o_ref.dtype)


def conv_bn_relu_cn(x, w, gamma, beta):
    co, n = w.shape[0], x.shape[1]
    return pl.pallas_call(
        _conv_bn_relu_cn_kernel,
        out_shape=jax.ShapeDtypeStruct((co, n), jnp.bfloat16),
        compiler_params=_VMEM_16MB,
    )(x, w, gamma, beta)


def _conv3_gru_kernel(x_ref, w_ref, g_ref, b_ref, wih_ref, bih_ref,
                      whh_ref, bhh_ref, o_ref):
    """Fused last conv layer + BN + ReLU + whole GRU (input proj + unrolled recurrence).

    x_ref:  (B*T*W, 9*Ci) bf16   im2col patches, rows ordered (t, b, w)
    w_ref:  (9*Ci, C)     bf16   conv weight, rows (tap, ci)
    g_ref/b_ref: (1, C)   f32    BN gamma / beta
    wih_ref: (W, C, 3H)   bf16   GRU input weights (feature order pre-permuted to (w, c))
    bih_ref: (1, 3H) f32 ; whh_ref: (H, 3H) bf16 ; bhh_ref: (1, 3H) f32
    o_ref:  (B, H) f32           final hidden state (== PyTorch h_n[-1])
    """
    # --- conv 3: single MXU matmul + one-pass batch-stat BN + ReLU (all in registers) ---
    y = jnp.dot(x_ref[...], w_ref[...], preferred_element_type=jnp.float32)   # (B*T*W, C)
    inv_n = 1.0 / float(y.shape[0])
    mean = jnp.sum(y, axis=0, keepdims=True) * inv_n
    var = jnp.sum(y * y, axis=0, keepdims=True) * inv_n - mean * mean
    hs = jnp.maximum((y - mean) * lax.rsqrt(var + BN_EPS) * g_ref[...] + b_ref[...], 0.0)

    n_rows, c_ch = hs.shape
    w_pos = wih_ref.shape[0]                 # F' = 8
    tb = n_rows // w_pos                     # T * B = 16
    hdim = whh_ref.shape[0]                  # 128
    bsz = o_ref.shape[0]
    t_steps = tb // bsz

    # --- hoisted GRU input projection: gi[(t,b), :] = sum_w hs[(t,b,w), :] @ Wih[w] + bih ---
    hs3 = hs.reshape(tb, w_pos, c_ch)        # layout-preserving: splits aligned 8-row groups
    gi = jnp.zeros((tb, 3 * hdim), jnp.float32)
    for w in range(w_pos):
        gi = gi + jnp.dot(hs3[:, w, :].astype(jnp.bfloat16), wih_ref[w],
                          preferred_element_type=jnp.float32)
    gi = gi + bih_ref[...]

    # --- GRU recurrence, fully unrolled (T = 8); hidden state carried as a value ---
    whh = whh_ref[...]
    bhh = bhh_ref[...]
    h = jnp.zeros((bsz, hdim), jnp.float32)  # PyTorch GRU default h0 = zeros
    for t in range(t_steps):
        gx = gi[t * bsz:(t + 1) * bsz, :]    # (B, 3H), rows are time-major so this is static
        gh = jnp.dot(h.astype(jnp.bfloat16), whh,
                     preferred_element_type=jnp.float32) + bhh
        r = jax.nn.sigmoid(gx[:, 0:hdim] + gh[:, 0:hdim])
        z = jax.nn.sigmoid(gx[:, hdim:2 * hdim] + gh[:, hdim:2 * hdim])
        ncand = jnp.tanh(gx[:, 2 * hdim:3 * hdim] + r * gh[:, 2 * hdim:3 * hdim])
        h = (1.0 - z) * ncand + z * h
    o_ref[...] = h


def conv3_gru(x3, w3, g3, b3, wih, bih, whh, bhh, batch):
    return pl.pallas_call(
        _conv3_gru_kernel,
        out_shape=jax.ShapeDtypeStruct((batch, GRU_UNITS), jnp.float32),
        compiler_params=_VMEM_16MB,
    )(x3, w3, g3, b3, wih, bih, whh, bhh)


# --------------------------- XLA glue (tiny im2col fusions) ---------------------------

def _tap_slices(x, ho, wo):
    """Zero-pad the last two (spatial) dims and return the 9 stride-2 tap slices."""
    xp = jnp.pad(x, [(0, 0)] * (x.ndim - 2) + [(PAD, PAD), (PAD, PAD)])
    return [xp[..., di:di + STRIDE * ho:STRIDE, dj:dj + STRIDE * wo:STRIDE]
            for di in range(K_SIZE) for dj in range(K_SIZE)]


def im2col_layer1(speech):
    """(B, L, F) f32 -> (16, B*Ho*Wo) bf16 tap-major patch matrix (7 zero taps of padding)."""
    b, l, f = speech.shape
    ho, wo = l // 2, f // 2
    taps = _tap_slices(speech.astype(jnp.bfloat16), ho, wo)          # 9 x (B, Ho, Wo)
    x = jnp.stack(taps, axis=0).reshape(TAPS, b * ho * wo)
    return jnp.pad(x, ((0, TAPS_PAD - TAPS), (0, 0)))


def im2col_cn(ycn, b, hin, win):
    """(Ci, B*Hin*Win) bf16 channel-major -> (9*Ci, B*Ho*Wo) bf16, rows (tap, ci)."""
    ci = ycn.shape[0]
    ho, wo = hin // 2, win // 2
    taps = _tap_slices(ycn.reshape(ci, b, hin, win), ho, wo)          # 9 x (Ci, B, Ho, Wo)
    return jnp.stack(taps, axis=0).reshape(TAPS * ci, b * ho * wo)


def im2col_last_nc(ycn, b, hin, win):
    """(Ci, B*Hin*Win) bf16 -> (B*T*W, 9*Ci) bf16 with rows ordered (t, b, w) (time-major)."""
    ci = ycn.shape[0]
    ho, wo = hin // 2, win // 2
    taps = _tap_slices(ycn.reshape(ci, b, hin, win), ho, wo)          # 9 x (Ci, B, T, W)
    t = jnp.stack(taps, axis=0)                                       # (tap, ci, b, t, w)
    t = jnp.transpose(t, (3, 2, 4, 0, 1))                             # (t, b, w, tap, ci)
    return t.reshape(b * ho * wo, TAPS * ci)


# --------------------------- params / forward ---------------------------

def init_params(key):
    ks = jax.random.split(key, 12)
    p = {}
    # conv1: PyTorch Conv2d weight (Co, 1, 3, 3) -> (Co, 16) tap-major, zero-padded taps.
    w1 = 0.1 * jax.random.normal(ks[0], (CONV_CHANS[0], 1, K_SIZE, K_SIZE), jnp.float32)
    p["w1"] = jnp.pad(w1.reshape(CONV_CHANS[0], TAPS),
                      ((0, 0), (0, TAPS_PAD - TAPS))).astype(jnp.bfloat16)
    p["g1"] = 1.0 + 0.05 * jax.random.normal(ks[1], (CONV_CHANS[0], 1), jnp.float32)
    p["b1"] = 0.05 * jax.random.normal(ks[2], (CONV_CHANS[0], 1), jnp.float32)
    # conv2: (Co, Ci, 3, 3) -> (Co, (tap, ci)).
    w2 = 0.1 * jax.random.normal(ks[3], (CONV_CHANS[1], CONV_CHANS[0], K_SIZE, K_SIZE),
                                 jnp.float32)
    p["w2"] = jnp.transpose(w2, (0, 2, 3, 1)).reshape(
        CONV_CHANS[1], TAPS * CONV_CHANS[0]).astype(jnp.bfloat16)
    p["g2"] = 1.0 + 0.05 * jax.random.normal(ks[4], (CONV_CHANS[1], 1), jnp.float32)
    p["b2"] = 0.05 * jax.random.normal(ks[5], (CONV_CHANS[1], 1), jnp.float32)
    # conv3: (Co, Ci, 3, 3) -> ((tap, ci), Co).
    w3 = 0.1 * jax.random.normal(ks[6], (CONV_CHANS[2], CONV_CHANS[1], K_SIZE, K_SIZE),
                                 jnp.float32)
    p["w3"] = jnp.transpose(w3, (2, 3, 1, 0)).reshape(
        TAPS * CONV_CHANS[1], CONV_CHANS[2]).astype(jnp.bfloat16)
    p["g3"] = 1.0 + 0.05 * jax.random.normal(ks[7], (1, CONV_CHANS[2]), jnp.float32)
    p["b3"] = 0.05 * jax.random.normal(ks[8], (1, CONV_CHANS[2]), jnp.float32)

    # GRU (PyTorch layouts, gate order [r; z; n]).  PyTorch hs features are ordered
    # c*F' + w; permute W_ih's input axis at init to the kernel's (w, c) order -> no
    # runtime transposes before the GRU.
    fp = IDIM // (2 ** CONV_LAYERS)                 # F' = 8
    c = CONV_CHANS[-1]                              # 128
    hdim = GRU_UNITS
    s = float(hdim) ** -0.5
    wih = jax.random.uniform(ks[9], (3 * hdim, fp * c), jnp.float32, -s, s)
    p["wih"] = jnp.transpose(wih.reshape(3 * hdim, c, fp), (2, 1, 0)).astype(jnp.bfloat16)
    whh = jax.random.uniform(ks[10], (3 * hdim, hdim), jnp.float32, -s, s)
    p["whh"] = jnp.transpose(whh).astype(jnp.bfloat16)
    biases = jax.random.uniform(ks[11], (2, 3 * hdim), jnp.float32, -s, s)
    p["bih"] = biases[0:1, :]
    p["bhh"] = biases[1:2, :]
    return p


def reference_encoder_forward(params, speech):
    """speech: (B, Lmax, idim) f32 -> ref_embs: (B, gru_units) f32."""
    b, l, f = speech.shape

    # layer 1 (Ci = 1): dense tap-major im2col, one MXU matmul + BN + ReLU.
    x1 = im2col_layer1(speech)                                            # (16, B*32*32)
    y1 = conv_bn_relu_cn(x1, params["w1"], params["g1"], params["b1"])    # (32, B*32*32) bf16
    h1, w1 = l // 2, f // 2

    # layer 2: channel-major im2col -> one matmul + BN + ReLU (lane-dense output).
    x2 = im2col_cn(y1, b, h1, w1)                                         # (288, B*16*16)
    y2 = conv_bn_relu_cn(x2, params["w2"], params["g2"], params["b2"])    # (64, B*16*16) bf16
    h2, w2 = h1 // 2, w1 // 2

    # layer 3 + BN + ReLU + GRU input projection + unrolled recurrence, fused in one kernel.
    x3 = im2col_last_nc(y2, b, h2, w2)                                    # (B*8*8, 576) bf16
    # TODO(synk): gru.flatten_parameters() is a cuDNN memory-layout hint with no TPU equivalent.
    return conv3_gru(x3, params["w3"], params["g3"], params["b3"],
                     params["wih"], params["bih"], params["whh"], params["bhh"], b)


if __name__ == "__main__":
    key = jax.random.PRNGKey(0)
    pkey, dkey = jax.random.split(key)
    params = init_params(pkey)
    B = 2
    speech = jax.random.normal(dkey, (B, LMAX, IDIM), jnp.float32)
    fwd = jax.jit(reference_encoder_forward)
    ref_embs = jax.block_until_ready(fwd(params, speech))
    assert ref_embs.shape == (B, GRU_UNITS)
    assert bool(jnp.all(jnp.isfinite(ref_embs)))
    print("KERNEL_OK")
</pallas_src>

<mosaic_0001>
module attributes {stable_mosaic.version = 11 : i64} {
  func.func @_conv_bn_relu_cn_kernel(%arg0: memref<16x2048xbf16, #tpu.memory_space<vmem>>, %arg1: memref<32x16xbf16, #tpu.memory_space<vmem>>, %arg2: memref<32x1xf32, #tpu.memory_space<vmem>>, %arg3: memref<32x1xf32, #tpu.memory_space<vmem>>, %arg4: memref<32x2048xbf16, #tpu.memory_space<vmem>>) attributes {dimension_semantics = [], scalar_prefetch = 0 : i64, scratch_operands = 0 : i64, tpu.core_type = #tpu.core_type<tc>} {
    %c0 = arith.constant 0 : index
    %c0_0 = arith.constant 0 : index
    %0 = vector.load %arg1[%c0, %c0_0] : memref<32x16xbf16, #tpu.memory_space<vmem>>, vector<32x16xbf16>
    %c0_1 = arith.constant 0 : index
    %c0_2 = arith.constant 0 : index
    %1 = vector.load %arg0[%c0_1, %c0_2] : memref<16x2048xbf16, #tpu.memory_space<vmem>>, vector<16x2048xbf16>
    %cst = arith.constant dense<0.000000e+00> : vector<32x2048xf32>
    %2 = tpu.matmul %0, %1, %cst {dimension_numbers = #tpu.dot_dimension_numbers<[1], [0], [0], [1], [0, 0, 1, 1], [], []>} : vector<32x16xbf16>, vector<16x2048xbf16>, vector<32x2048xf32> -> vector<32x2048xf32>
    %cst_3 = arith.constant dense<0.000000e+00> : vector<32xf32>
    %3 = vector.multi_reduction <add>, %2, %cst_3 [1] : vector<32x2048xf32> to vector<32xf32>
    %4 = vector.shape_cast %3 : vector<32xf32> to vector<32x1xf32>
    %cst_4 = arith.constant 4.8828125E-4 : f32
    %5 = vector.broadcast %cst_4 : f32 to vector<32x1xf32>
    %6 = arith.mulf %4, %5 : vector<32x1xf32>
    %7 = arith.mulf %2, %2 : vector<32x2048xf32>
    %cst_5 = arith.constant dense<0.000000e+00> : vector<32xf32>
    %8 = vector.multi_reduction <add>, %7, %cst_5 [1] : vector<32x2048xf32> to vector<32xf32>
    %9 = vector.shape_cast %8 : vector<32xf32> to vector<32x1xf32>
    %cst_6 = arith.constant 4.8828125E-4 : f32
    %10 = vector.broadcast %cst_6 : f32 to vector<32x1xf32>
    %11 = arith.mulf %9, %10 : vector<32x1xf32>
    %12 = arith.mulf %6, %6 : vector<32x1xf32>
    %13 = arith.subf %11, %12 : vector<32x1xf32>
    %14 = vector.broadcast %6 : vector<32x1xf32> to vector<32x2048xf32>
    %15 = arith.subf %2, %14 : vector<32x2048xf32>
    %cst_7 = arith.constant 9.99999974E-6 : f32
    %16 = vector.broadcast %cst_7 : f32 to vector<32x1xf32>
    %17 = arith.addf %13, %16 : vector<32x1xf32>
    %18 = math.rsqrt %17 : vector<32x1xf32>
    %19 = vector.broadcast %18 : vector<32x1xf32> to vector<32x2048xf32>
    %20 = arith.mulf %15, %19 : vector<32x2048xf32>
    %c0_8 = arith.constant 0 : index
    %c0_9 = arith.constant 0 : index
    %21 = vector.load %arg2[%c0_8, %c0_9] : memref<32x1xf32, #tpu.memory_space<vmem>>, vector<32x1xf32>
    %22 = vector.broadcast %21 : vector<32x1xf32> to vector<32x2048xf32>
    %23 = arith.mulf %20, %22 : vector<32x2048xf32>
    %c0_10 = arith.constant 0 : index
    %c0_11 = arith.constant 0 : index
    %24 = vector.load %arg3[%c0_10, %c0_11] : memref<32x1xf32, #tpu.memory_space<vmem>>, vector<32x1xf32>
    %25 = vector.broadcast %24 : vector<32x1xf32> to vector<32x2048xf32>
    %26 = arith.addf %23, %25 : vector<32x2048xf32>
    %cst_12 = arith.constant 0.000000e+00 : f32
    %27 = vector.broadcast %cst_12 : f32 to vector<32x2048xf32>
    %28 = arith.maximumf %26, %27 : vector<32x2048xf32>
    %29 = arith.truncf %28 : vector<32x2048xf32> to vector<32x2048xbf16>
    %c0_13 = arith.constant 0 : index
    %c0_14 = arith.constant 0 : index
    %30 = vector.load %arg4[%c0_13, %c0_14] : memref<32x2048xbf16, #tpu.memory_space<vmem>>, vector<32x2048xbf16>
    tpu.vector_store %arg4[%c0_13, %c0_14], %29 {strides = array<i32>} : memref<32x2048xbf16, #tpu.memory_space<vmem>>, vector<32x2048xbf16>,
    return
  }
}

module attributes {stable_mosaic.version = 11 : i64} {
  func.func @_conv_bn_relu_cn_kernel(%arg0: memref<288x512xbf16, #tpu.memory_space<vmem>>, %arg1: memref<64x288xbf16, #tpu.memory_space<vmem>>, %arg2: memref<64x1xf32, #tpu.memory_space<vmem>>, %arg3: memref<64x1xf32, #tpu.memory_space<vmem>>, %arg4: memref<64x512xbf16, #tpu.memory_space<vmem>>) attributes {dimension_semantics = [], scalar_prefetch = 0 : i64, scratch_operands = 0 : i64, tpu.core_type = #tpu.core_type<tc>} {
    %c0 = arith.constant 0 : index
    %c0_0 = arith.constant 0 : index
    %0 = vector.load %arg1[%c0, %c0_0] : memref<64x288xbf16, #tpu.memory_space<vmem>>, vector<64x288xbf16>
    %c0_1 = arith.constant 0 : index
    %c0_2 = arith.constant 0 : index
    %1 = vector.load %arg0[%c0_1, %c0_2] : memref<288x512xbf16, #tpu.memory_space<vmem>>, vector<288x512xbf16>
    %cst = arith.constant dense<0.000000e+00> : vector<64x512xf32>
    %2 = tpu.matmul %0, %1, %cst {dimension_numbers = #tpu.dot_dimension_numbers<[1], [0], [0], [1], [0, 0, 1, 1], [], []>} : vector<64x288xbf16>, vector<288x512xbf16>, vector<64x512xf32> -> vector<64x512xf32>
    %cst_3 = arith.constant dense<0.000000e+00> : vector<64xf32>
    %3 = vector.multi_reduction <add>, %2, %cst_3 [1] : vector<64x512xf32> to vector<64xf32>
    %4 = vector.shape_cast %3 : vector<64xf32> to vector<64x1xf32>
    %cst_4 = arith.constant 0.001953125 : f32
    %5 = vector.broadcast %cst_4 : f32 to vector<64x1xf32>
    %6 = arith.mulf %4, %5 : vector<64x1xf32>
    %7 = arith.mulf %2, %2 : vector<64x512xf32>
    %cst_5 = arith.constant dense<0.000000e+00> : vector<64xf32>
    %8 = vector.multi_reduction <add>, %7, %cst_5 [1] : vector<64x512xf32> to vector<64xf32>
    %9 = vector.shape_cast %8 : vector<64xf32> to vector<64x1xf32>
    %cst_6 = arith.constant 0.001953125 : f32
    %10 = vector.broadcast %cst_6 : f32 to vector<64x1xf32>
    %11 = arith.mulf %9, %10 : vector<64x1xf32>
    %12 = arith.mulf %6, %6 : vector<64x1xf32>
    %13 = arith.subf %11, %12 : vector<64x1xf32>
    %14 = vector.broadcast %6 : vector<64x1xf32> to vector<64x512xf32>
    %15 = arith.subf %2, %14 : vector<64x512xf32>
    %cst_7 = arith.constant 9.99999974E-6 : f32
    %16 = vector.broadcast %cst_7 : f32 to vector<64x1xf32>
    %17 = arith.addf %13, %16 : vector<64x1xf32>
    %18 = math.rsqrt %17 : vector<64x1xf32>
    %19 = vector.broadcast %18 : vector<64x1xf32> to vector<64x512xf32>
    %20 = arith.mulf %15, %19 : vector<64x512xf32>
    %c0_8 = arith.constant 0 : index
    %c0_9 = arith.constant 0 : index
    %21 = vector.load %arg2[%c0_8, %c0_9] : memref<64x1xf32, #tpu.memory_space<vmem>>, vector<64x1xf32>
    %22 = vector.broadcast %21 : vector<64x1xf32> to vector<64x512xf32>
    %23 = arith.mulf %20, %22 : vector<64x512xf32>
    %c0_10 = arith.constant 0 : index
    %c0_11 = arith.constant 0 : index
    %24 = vector.load %arg3[%c0_10, %c0_11] : memref<64x1xf32, #tpu.memory_space<vmem>>, vector<64x1xf32>
    %25 = vector.broadcast %24 : vector<64x1xf32> to vector<64x512xf32>
    %26 = arith.addf %23, %25 : vector<64x512xf32>
    %cst_12 = arith.constant 0.000000e+00 : f32
    %27 = vector.broadcast %cst_12 : f32 to vector<64x512xf32>
    %28 = arith.maximumf %26, %27 : vector<64x512xf32>
    %29 = arith.truncf %28 : vector<64x512xf32> to vector<64x512xbf16>
    %c0_13 = arith.constant 0 : index
    %c0_14 = arith.constant 0 : index
    %30 = vector.load %arg4[%c0_13, %c0_14] : memref<64x512xbf16, #tpu.memory_space<vmem>>, vector<64x512xbf16>
    tpu.vector_store %arg4[%c0_13, %c0_14], %29 {strides = array<i32>} : memref<64x512xbf16, #tpu.memory_space<vmem>>, vector<64x512xbf16>,
    return
  }
}

module attributes {stable_mosaic.version = 11 : i64} {
  func.func @_conv3_gru_kernel(%arg0: memref<128x576xbf16, #tpu.memory_space<vmem>>, %arg1: memref<576x128xbf16, #tpu.memory_space<vmem>>, %arg2: memref<1x128xf32, #tpu.memory_space<vmem>>, %arg3: memref<1x128xf32, #tpu.memory_space<vmem>>, %arg4: memref<8x128x384xbf16, #tpu.memory_space<vmem>>, %arg5: memref<1x384xf32, #tpu.memory_space<vmem>>, %arg6: memref<128x384xbf16, #tpu.memory_space<vmem>>, %arg7: memref<1x384xf32, #tpu.memory_space<vmem>>, %arg8: memref<2x128xf32, #tpu.memory_space<vmem>>) attributes {dimension_semantics = [], scalar_prefetch = 0 : i64, scratch_operands = 0 : i64, tpu.core_type = #tpu.core_type<tc>} {
    %c0 = arith.constant 0 : index
    %c0_0 = arith.constant 0 : index
    %0 = vector.load %arg0[%c0, %c0_0] : memref<128x576xbf16, #tpu.memory_space<vmem>>, vector<128x576xbf16>
    %c0_1 = arith.constant 0 : index
    %c0_2 = arith.constant 0 : index
    %1 = vector.load %arg1[%c0_1, %c0_2] : memref<576x128xbf16, #tpu.memory_space<vmem>>, vector<576x128xbf16>
    %cst = arith.constant dense<0.000000e+00> : vector<128x128xf32>
    %2 = tpu.matmul %0, %1, %cst {dimension_numbers = #tpu.dot_dimension_numbers<[1], [0], [0], [1], [0, 0, 1, 1], [], []>} : vector<128x576xbf16>, vector<576x128xbf16>, vector<128x128xf32> -> vector<128x128xf32>
    %cst_3 = arith.constant dense<0.000000e+00> : vector<128xf32>
    %3 = vector.multi_reduction <add>, %2, %cst_3 [0] : vector<128x128xf32> to vector<128xf32>
    %4 = vector.shape_cast %3 : vector<128xf32> to vector<1x128xf32>
    %cst_4 = arith.constant 7.812500e-03 : f32
    %5 = vector.broadcast %cst_4 : f32 to vector<1x128xf32>
    %6 = arith.mulf %4, %5 : vector<1x128xf32>
    %7 = arith.mulf %2, %2 : vector<128x128xf32>
    %cst_5 = arith.constant dense<0.000000e+00> : vector<128xf32>
    %8 = vector.multi_reduction <add>, %7, %cst_5 [0] : vector<128x128xf32> to vector<128xf32>
    %9 = vector.shape_cast %8 : vector<128xf32> to vector<1x128xf32>
    %cst_6 = arith.constant 7.812500e-03 : f32
    %10 = vector.broadcast %cst_6 : f32 to vector<1x128xf32>
    %11 = arith.mulf %9, %10 : vector<1x128xf32>
    %12 = arith.mulf %6, %6 : vector<1x128xf32>
    %13 = arith.subf %11, %12 : vector<1x128xf32>
    %14 = vector.broadcast %6 : vector<1x128xf32> to vector<128x128xf32>
    %15 = arith.subf %2, %14 : vector<128x128xf32>
    %cst_7 = arith.constant 9.99999974E-6 : f32
    %16 = vector.broadcast %cst_7 : f32 to vector<1x128xf32>
    %17 = arith.addf %13, %16 : vector<1x128xf32>
    %18 = math.rsqrt %17 : vector<1x128xf32>
    %19 = vector.broadcast %18 : vector<1x128xf32> to vector<128x128xf32>
    %20 = arith.mulf %15, %19 : vector<128x128xf32>
    %c0_8 = arith.constant 0 : index
    %c0_9 = arith.constant 0 : index
    %21 = vector.load %arg2[%c0_8, %c0_9] : memref<1x128xf32, #tpu.memory_space<vmem>>, vector<1x128xf32>
    %22 = vector.broadcast %21 : vector<1x128xf32> to vector<128x128xf32>
    %23 = arith.mulf %20, %22 : vector<128x128xf32>
    %c0_10 = arith.constant 0 : index
    %c0_11 = arith.constant 0 : index
    %24 = vector.load %arg3[%c0_10, %c0_11] : memref<1x128xf32, #tpu.memory_space<vmem>>, vector<1x128xf32>
    %25 = vector.broadcast %24 : vector<1x128xf32> to vector<128x128xf32>
    %26 = arith.addf %23, %25 : vector<128x128xf32>
    %cst_12 = arith.constant 0.000000e+00 : f32
    %27 = vector.broadcast %cst_12 : f32 to vector<128x128xf32>
    %28 = arith.maximumf %26, %27 : vector<128x128xf32>
    %29 = vector.shape_cast %28 : vector<128x128xf32> to vector<16x8x128xf32>
    %cst_13 = arith.constant 0.000000e+00 : f32
    %30 = vector.broadcast %cst_13 : f32 to vector<16x384xf32>
    %31 = vector.extract_strided_slice %29 {offsets = [0, 0, 0], sizes = [16, 1, 128], strides = [1, 1, 1]} : vector<16x8x128xf32> to vector<16x1x128xf32>
    %32 = vector.shape_cast %31 : vector<16x1x128xf32> to vector<16x128xf32>
    %33 = arith.truncf %32 : vector<16x128xf32> to vector<16x128xbf16>
    %c0_14 = arith.constant 0 : index
    %c0_15 = arith.constant 0 : index
    %c0_16 = arith.constant 0 : index
    %34 = vector.load %arg4[%c0_14, %c0_15, %c0_16] : memref<8x128x384xbf16, #tpu.memory_space<vmem>>, vector<1x128x384xbf16>
    %35 = vector.shape_cast %34 : vector<1x128x384xbf16> to vector<128x384xbf16>
    %cst_17 = arith.constant dense<0.000000e+00> : vector<16x384xf32>
    %36 = tpu.matmul %33, %35, %cst_17 {dimension_numbers = #tpu.dot_dimension_numbers<[1], [0], [0], [1], [0, 0, 1, 1], [], []>} : vector<16x128xbf16>, vector<128x384xbf16>, vector<16x384xf32> -> vector<16x384xf32>
    %37 = arith.addf %30, %36 : vector<16x384xf32>
    %38 = vector.extract_strided_slice %29 {offsets = [0, 1, 0], sizes = [16, 1, 128], strides = [1, 1, 1]} : vector<16x8x128xf32> to vector<16x1x128xf32>
    %39 = vector.shape_cast %38 : vector<16x1x128xf32> to vector<16x128xf32>
    %40 = arith.truncf %39 : vector<16x128xf32> to vector<16x128xbf16>
    %c1 = arith.constant 1 : index
    %c0_18 = arith.constant 0 : index
    %c0_19 = arith.constant 0 : index
    %41 = vector.load %arg4[%c1, %c0_18, %c0_19] : memref<8x128x384xbf16, #tpu.memory_space<vmem>>, vector<1x128x384xbf16>
    %42 = vector.shape_cast %41 : vector<1x128x384xbf16> to vector<128x384xbf16>
    %cst_20 = arith.constant dense<0.000000e+00> : vector<16x384xf32>
    %43 = tpu.matmul %40, %42, %cst_20 {dimension_numbers = #tpu.dot_dimension_numbers<[1], [0], [0], [1], [0, 0, 1, 1], [], []>} : vector<16x128xbf16>, vector<128x384xbf16>, vector<16x384xf32> -> vector<16x384xf32>
    %44 = arith.addf %37, %43 : vector<16x384xf32>
    %45 = vector.extract_strided_slice %29 {offsets = [0, 2, 0], sizes = [16, 1, 128], strides = [1, 1, 1]} : vector<16x8x128xf32> to vector<16x1x128xf32>
    %46 = vector.shape_cast %45 : vector<16x1x128xf32> to vector<16x128xf32>
    %47 = arith.truncf %46 : vector<16x128xf32> to vector<16x128xbf16>
    %c2 = arith.constant 2 : index
    %c0_21 = arith.constant 0 : index
    %c0_22 = arith.constant 0 : index
    %48 = vector.load %arg4[%c2, %c0_21, %c0_22] : memref<8x128x384xbf16, #tpu.memory_space<vmem>>, vector<1x128x384xbf16>
    %49 = vector.shape_cast %48 : vector<1x128x384xbf16> to vector<128x384xbf16>
    %cst_23 = arith.constant dense<0.000000e+00> : vector<16x384xf32>
    %50 = tpu.matmul %47, %49, %cst_23 {dimension_numbers = #tpu.dot_dimension_numbers<[1], [0], [0], [1], [0, 0, 1, 1], [], []>} : vector<16x128xbf16>, vector<128x384xbf16>, vector<16x384xf32> -> vector<16x384xf32>
    %51 = arith.addf %44, %50 : vector<16x384xf32>
    %52 = vector.extract_strided_slice %29 {offsets = [0, 3, 0], sizes = [16, 1, 128], strides = [1, 1, 1]} : vector<16x8x128xf32> to vector<16x1x128xf32>
    %53 = vector.shape_cast %52 : vector<16x1x128xf32> to vector<16x128xf32>
    %54 = arith.truncf %53 : vector<16x128xf32> to vector<16x128xbf16>
    %c3 = arith.constant 3 : index
    %c0_24 = arith.constant 0 : index
    %c0_25 = arith.constant 0 : index
    %55 = vector.load %arg4[%c3, %c0_24, %c0_25] : memref<8x128x384xbf16, #tpu.memory_space<vmem>>, vector<1x128x384xbf16>
    %56 = vector.shape_cast %55 : vector<1x128x384xbf16> to vector<128x384xbf16>
    %cst_26 = arith.constant dense<0.000000e+00> : vector<16x384xf32>
    %57 = tpu.matmul %54, %56, %cst_26 {dimension_numbers = #tpu.dot_dimension_numbers<[1], [0], [0], [1], [0, 0, 1, 1], [], []>} : vector<16x128xbf16>, vector<128x384xbf16>, vector<16x384xf32> -> vector<16x384xf32>
    %58 = arith.addf %51, %57 : vector<16x384xf32>
    %59 = vector.extract_strided_slice %29 {offsets = [0, 4, 0], sizes = [16, 1, 128], strides = [1, 1, 1]} : vector<16x8x128xf32> to vector<16x1x128xf32>
    %60 = vector.shape_cast %59 : vector<16x1x128xf32> to vector<16x128xf32>
    %61 = arith.truncf %60 : vector<16x128xf32> to vector<16x128xbf16>
    %c4 = arith.constant 4 : index
    %c0_27 = arith.constant 0 : index
    %c0_28 = arith.constant 0 : index
    %62 = vector.load %arg4[%c4, %c0_27, %c0_28] : memref<8x128x384xbf16, #tpu.memory_space<vmem>>, vector<1x128x384xbf16>
    %63 = vector.shape_cast %62 : vector<1x128x384xbf16> to vector<128x384xbf16>
    %cst_29 = arith.constant dense<0.000000e+00> : vector<16x384xf32>
    %64 = tpu.matmul %61, %63, %cst_29 {dimension_numbers = #tpu.dot_dimension_numbers<[1], [0], [0], [1], [0, 0, 1, 1], [], []>} : vector<16x128xbf16>, vector<128x384xbf16>, vector<16x384xf32> -> vector<16x384xf32>
    %65 = arith.addf %58, %64 : vector<16x384xf32>
    %66 = vector.extract_strided_slice %29 {offsets = [0, 5, 0], sizes = [16, 1, 128], strides = [1, 1, 1]} : vector<16x8x128xf32> to vector<16x1x128xf32>
    %67 = vector.shape_cast %66 : vector<16x1x128xf32> to vector<16x128xf32>
    %68 = arith.truncf %67 : vector<16x128xf32> to vector<16x128xbf16>
    %c5 = arith.constant 5 : index
    %c0_30 = arith.constant 0 : index
    %c0_31 = arith.constant 0 : index
    %69 = vector.load %arg4[%c5, %c0_30, %c0_31] : memref<8x128x384xbf16, #tpu.memory_space<vmem>>, vector<1x128x384xbf16>
    %70 = vector.shape_cast %69 : vector<1x128x384xbf16> to vector<128x384xbf16>
    %cst_32 = arith.constant dense<0.000000e+00> : vector<16x384xf32>
    %71 = tpu.matmul %68, %70, %cst_32 {dimension_numbers = #tpu.dot_dimension_numbers<[1], [0], [0], [1], [0, 0, 1, 1], [], []>} : vector<16x128xbf16>, vector<128x384xbf16>, vector<16x384xf32> -> vector<16x384xf32>
    %72 = arith.addf %65, %71 : vector<16x384xf32>
    %73 = vector.extract_strided_slice %29 {offsets = [0, 6, 0], sizes = [16, 1, 128], strides = [1, 1, 1]} : vector<16x8x128xf32> to vector<16x1x128xf32>
    %74 = vector.shape_cast %73 : vector<16x1x128xf32> to vector<16x128xf32>
    %75 = arith.truncf %74 : vector<16x128xf32> to vector<16x128xbf16>
    %c6 = arith.constant 6 : index
    %c0_33 = arith.constant 0 : index
    %c0_34 = arith.constant 0 : index
    %76 = vector.load %arg4[%c6, %c0_33, %c0_34] : memref<8x128x384xbf16, #tpu.memory_space<vmem>>, vector<1x128x384xbf16>
    %77 = vector.shape_cast %76 : vector<1x128x384xbf16> to vector<128x384xbf16>
    %cst_35 = arith.constant dense<0.000000e+00> : vector<16x384xf32>
    %78 = tpu.matmul %75, %77, %cst_35 {dimension_numbers = #tpu.dot_dimension_numbers<[1], [0], [0], [1], [0, 0, 1, 1], [], []>} : vector<16x128xbf16>, vector<128x384xbf16>, vector<16x384xf32> -> vector<16x384xf32>
    %79 = arith.addf %72, %78 : vector<16x384xf32>
    %80 = vector.extract_strided_slice %29 {offsets = [0, 7, 0], sizes = [16, 1, 128], strides = [1, 1, 1]} : vector<16x8x128xf32> to vector<16x1x128xf32>
    %81 = vector.shape_cast %80 : vector<16x1x128xf32> to vector<16x128xf32>
    %82 = arith.truncf %81 : vector<16x128xf32> to vector<16x128xbf16>
    %c7 = arith.constant 7 : index
    %c0_36 = arith.constant 0 : index
    %c0_37 = arith.constant 0 : index
    %83 = vector.load %arg4[%c7, %c0_36, %c0_37] : memref<8x128x384xbf16, #tpu.memory_space<vmem>>, vector<1x128x384xbf16>
    %84 = vector.shape_cast %83 : vector<1x128x384xbf16> to vector<128x384xbf16>
    %cst_38 = arith.constant dense<0.000000e+00> : vector<16x384xf32>
    %85 = tpu.matmul %82, %84, %cst_38 {dimension_numbers = #tpu.dot_dimension_numbers<[1], [0], [0], [1], [0, 0, 1, 1], [], []>} : vector<16x128xbf16>, vector<128x384xbf16>, vector<16x384xf32> -> vector<16x384xf32>
    %86 = arith.addf %79, %85 : vector<16x384xf32>
    %c0_39 = arith.constant 0 : index
    %c0_40 = arith.constant 0 : index
    %87 = vector.load %arg5[%c0_39, %c0_40] : memref<1x384xf32, #tpu.memory_space<vmem>>, vector<1x384xf32>
    %88 = vector.broadcast %87 : vector<1x384xf32> to vector<16x384xf32>
    %89 = arith.addf %86, %88 : vector<16x384xf32>
    %c0_41 = arith.constant 0 : index
    %c0_42 = arith.constant 0 : index
    %90 = vector.load %arg6[%c0_41, %c0_42] : memref<128x384xbf16, #tpu.memory_space<vmem>>, vector<128x384xbf16>
    %c0_43 = arith.constant 0 : index
    %c0_44 = arith.constant 0 : index
    %91 = vector.load %arg7[%c0_43, %c0_44] : memref<1x384xf32, #tpu.memory_space<vmem>>, vector<1x384xf32>
    %cst_45 = arith.constant 0.000000e+00 : f32
    %92 = vector.broadcast %cst_45 : f32 to vector<2x128xf32>
    %93 = vector.extract_strided_slice %89 {offsets = [0, 0], sizes = [2, 384], strides = [1, 1]} : vector<16x384xf32> to vector<2x384xf32>
    %94 = arith.truncf %92 : vector<2x128xf32> to vector<2x128xbf16>
    %cst_46 = arith.constant dense<0.000000e+00> : vector<2x384xf32>
    %95 = tpu.matmul %94, %90, %cst_46 {dimension_numbers = #tpu.dot_dimension_numbers<[1], [0], [0], [1], [0, 0, 1, 1], [], []>} : vector<2x128xbf16>, vector<128x384xbf16>, vector<2x384xf32> -> vector<2x384xf32>
    %96 = vector.broadcast %91 : vector<1x384xf32> to vector<2x384xf32>
    %97 = arith.addf %95, %96 : vector<2x384xf32>
    %98 = vector.extract_strided_slice %93 {offsets = [0, 0], sizes = [2, 128], strides = [1, 1]} : vector<2x384xf32> to vector<2x128xf32>
    %99 = vector.extract_strided_slice %97 {offsets = [0, 0], sizes = [2, 128], strides = [1, 1]} : vector<2x384xf32> to vector<2x128xf32>
    %100 = arith.addf %98, %99 : vector<2x128xf32>
    %101 = arith.negf %100 : vector<2x128xf32>
    %102 = math.exp %101 : vector<2x128xf32>
    %cst_47 = arith.constant 1.000000e+00 : f32
    %103 = vector.broadcast %cst_47 : f32 to vector<2x128xf32>
    %104 = arith.addf %103, %102 : vector<2x128xf32>
    %105 = arith.divf %103, %104 : vector<2x128xf32>
    %106 = vector.extract_strided_slice %93 {offsets = [0, 128], sizes = [2, 128], strides = [1, 1]} : vector<2x384xf32> to vector<2x128xf32>
    %107 = vector.extract_strided_slice %97 {offsets = [0, 128], sizes = [2, 128], strides = [1, 1]} : vector<2x384xf32> to vector<2x128xf32>
    %108 = arith.addf %106, %107 : vector<2x128xf32>
    %109 = arith.negf %108 : vector<2x128xf32>
    %110 = math.exp %109 : vector<2x128xf32>
    %cst_48 = arith.constant 1.000000e+00 : f32
    %111 = vector.broadcast %cst_48 : f32 to vector<2x128xf32>
    %112 = arith.addf %111, %110 : vector<2x128xf32>
    %113 = arith.divf %111, %112 : vector<2x128xf32>
    %114 = vector.extract_strided_slice %93 {offsets = [0, 256], sizes = [2, 128], strides = [1, 1]} : vector<2x384xf32> to vector<2x128xf32>
    %115 = vector.extract_strided_slice %97 {offsets = [0, 256], sizes = [2, 128], strides = [1, 1]} : vector<2x384xf32> to vector<2x128xf32>
    %116 = arith.mulf %105, %115 : vector<2x128xf32>
    %117 = arith.addf %114, %116 : vector<2x128xf32>
    %118 = math.tanh %117 : vector<2x128xf32>
    %cst_49 = arith.constant 1.000000e+00 : f32
    %119 = vector.broadcast %cst_49 : f32 to vector<2x128xf32>
    %120 = arith.subf %119, %113 : vector<2x128xf32>
    %121 = arith.mulf %120, %118 : vector<2x128xf32>
    %122 = arith.mulf %113, %92 : vector<2x128xf32>
    %123 = arith.addf %121, %122 : vector<2x128xf32>
    %124 = vector.extract_strided_slice %89 {offsets = [2, 0], sizes = [2, 384], strides = [1, 1]} : vector<16x384xf32> to vector<2x384xf32>
    %125 = arith.truncf %123 : vector<2x128xf32> to vector<2x128xbf16>
    %cst_50 = arith.constant dense<0.000000e+00> : vector<2x384xf32>
    %126 = tpu.matmul %125, %90, %cst_50 {dimension_numbers = #tpu.dot_dimension_numbers<[1], [0], [0], [1], [0, 0, 1, 1], [], []>} : vector<2x128xbf16>, vector<128x384xbf16>, vector<2x384xf32> -> vector<2x384xf32>
    %127 = vector.broadcast %91 : vector<1x384xf32> to vector<2x384xf32>
    %128 = arith.addf %126, %127 : vector<2x384xf32>
    %129 = vector.extract_strided_slice %124 {offsets = [0, 0], sizes = [2, 128], strides = [1, 1]} : vector<2x384xf32> to vector<2x128xf32>
    %130 = vector.extract_strided_slice %128 {offsets = [0, 0], sizes = [2, 128], strides = [1, 1]} : vector<2x384xf32> to vector<2x128xf32>
    %131 = arith.addf %129, %130 : vector<2x128xf32>
    %132 = arith.negf %131 : vector<2x128xf32>
    %133 = math.exp %132 : vector<2x128xf32>
    %cst_51 = arith.constant 1.000000e+00 : f32
    %134 = vector.broadcast %cst_51 : f32 to vector<2x128xf32>
    %135 = arith.addf %134, %133 : vector<2x128xf32>
    %136 = arith.divf %134, %135 : vector<2x128xf32>
    %137 = vector.extract_strided_slice %124 {offsets = [0, 128], sizes = [2, 128], strides = [1, 1]} : vector<2x384xf32> to vector<2x128xf32>
    %138 = vector.extract_strided_slice %128 {offsets = [0, 128], sizes = [2, 128], strides = [1, 1]} : vector<2x384xf32> to vector<2x128xf32>
    %139 = arith.addf %137, %138 : vector<2x128xf32>
    %140 = arith.negf %139 : vector<2x128xf32>
    %141 = math.exp %140 : vector<2x128xf32>
    %cst_52 = arith.constant 1.000000e+00 : f32
    %142 = vector.broadcast %cst_52 : f32 to vector<2x128xf32>
    %143 = arith.addf %142, %141 : vector<2x128xf32>
    %144 = arith.divf %142, %143 : vector<2x128xf32>
    %145 = vector.extract_strided_slice %124 {offsets = [0, 256], sizes = [2, 128], strides = [1, 1]} : vector<2x384xf32> to vector<2x128xf32>
    %146 = vector.extract_strided_slice %128 {offsets = [0, 256], sizes = [2, 128], strides = [1, 1]} : vector<2x384xf32> to vector<2x128xf32>
    %147 = arith.mulf %136, %146 : vector<2x128xf32>
    %148 = arith.addf %145, %147 : vector<2x128xf32>
    %149 = math.tanh %148 : vector<2x128xf32>
    %cst_53 = arith.constant 1.000000e+00 : f32
    %150 = vector.broadcast %cst_53 : f32 to vector<2x128xf32>
    %151 = arith.subf %150, %144 : vector<2x128xf32>
    %152 = arith.mulf %151, %149 : vector<2x128xf32>
    %153 = arith.mulf %144, %123 : vector<2x128xf32>
    %154 = arith.addf %152, %153 : vector<2x128xf32>
    %155 = vector.extract_strided_slice %89 {offsets = [4, 0], sizes = [2, 384], strides = [1, 1]} : vector<16x384xf32> to vector<2x384xf32>
    %156 = arith.truncf %154 : vector<2x128xf32> to vector<2x128xbf16>
    %cst_54 = arith.constant dense<0.000000e+00> : vector<2x384xf32>
    %157 = tpu.matmul %156, %90, %cst_54 {dimension_numbers = #tpu.dot_dimension_numbers<[1], [0], [0], [1], [0, 0, 1, 1], [], []>} : vector<2x128xbf16>, vector<128x384xbf16>, vector<2x384xf32> -> vector<2x384xf32>
    %158 = vector.broadcast %91 : vector<1x384xf32> to vector<2x384xf32>
    %159 = arith.addf %157, %158 : vector<2x384xf32>
    %160 = vector.extract_strided_slice %155 {offsets = [0, 0], sizes = [2, 128], strides = [1, 1]} : vector<2x384xf32> to vector<2x128xf32>
    %161 = vector.extract_strided_slice %159 {offsets = [0, 0], sizes = [2, 128], strides = [1, 1]} : vector<2x384xf32> to vector<2x128xf32>
    %162 = arith.addf %160, %161 : vector<2x128xf32>
    %163 = arith.negf %162 : vector<2x128xf32>
    %164 = math.exp %163 : vector<2x128xf32>
    %cst_55 = arith.constant 1.000000e+00 : f32
    %165 = vector.broadcast %cst_55 : f32 to vector<2x128xf32>
    %166 = arith.addf %165, %164 : vector<2x128xf32>
    %167 = arith.divf %165, %166 : vector<2x128xf32>
    %168 = vector.extract_strided_slice %155 {offsets = [0, 128], sizes = [2, 128], strides = [1, 1]} : vector<2x384xf32> to vector<2x128xf32>
    %169 = vector.extract_strided_slice %159 {offsets = [0, 128], sizes = [2, 128], strides = [1, 1]} : vector<2x384xf32> to vector<2x128xf32>
    %170 = arith.addf %168, %169 : vector<2x128xf32>
    %171 = arith.negf %170 : vector<2x128xf32>
    %172 = math.exp %171 : vector<2x128xf32>
    %cst_56 = arith.constant 1.000000e+00 : f32
    %173 = vector.broadcast %cst_56 : f32 to vector<2x128xf32>
    %174 = arith.addf %173, %172 : vector<2x128xf32>
    %175 = arith.divf %173, %174 : vector<2x128xf32>
    %176 = vector.extract_strided_slice %155 {offsets = [0, 256], sizes = [2, 128], strides = [1, 1]} : vector<2x384xf32> to vector<2x128xf32>
    %177 = vector.extract_strided_slice %159 {offsets = [0, 256], sizes = [2, 128], strides = [1, 1]} : vector<2x384xf32> to vector<2x128xf32>
    %178 = arith.mulf %167, %177 : vector<2x128xf32>
    %179 = arith.addf %176, %178 : vector<2x128xf32>
    %180 = math.tanh %179 : vector<2x128xf32>
    %cst_57 = arith.constant 1.000000e+00 : f32
    %181 = vector.broadcast %cst_57 : f32 to vector<2x128xf32>
    %182 = arith.subf %181, %175 : vector<2x128xf32>
    %183 = arith.mulf %182, %180 : vector<2x128xf32>
    %184 = arith.mulf %175, %154 : vector<2x128xf32>
    %185 = arith.addf %183, %184 : vector<2x128xf32>
    %186 = vector.extract_strided_slice %89 {offsets = [6, 0], sizes = [2, 384], strides = [1, 1]} : vector<16x384xf32> to vector<2x384xf32>
    %187 = arith.truncf %185 : vector<2x128xf32> to vector<2x128xbf16>
    %cst_58 = arith.constant dense<0.000000e+00> : vector<2x384xf32>
    %188 = tpu.matmul %187, %90, %cst_58 {dimension_numbers = #tpu.dot_dimension_numbers<[1], [0], [0], [1], [0, 0, 1, 1], [], []>} : vector<2x128xbf16>, vector<128x384xbf16>, vector<2x384xf32> -> vector<2x384xf32>
    %189 = vector.broadcast %91 : vector<1x384xf32> to vector<2x384xf32>
    %190 = arith.addf %188, %189 : vector<2x384xf32>
    %191 = vector.extract_strided_slice %186 {offsets = [0, 0], sizes = [2, 128], strides = [1, 1]} : vector<2x384xf32> to vector<2x128xf32>
    %192 = vector.extract_strided_slice %190 {offsets = [0, 0], sizes = [2, 128], strides = [1, 1]} : vector<2x384xf32> to vector<2x128xf32>
    %193 = arith.addf %191, %192 : vector<2x128xf32>
    %194 = arith.negf %193 : vector<2x128xf32>
    %195 = math.exp %194 : vector<2x128xf32>
    %cst_59 = arith.constant 1.000000e+00 : f32
    %196 = vector.broadcast %cst_59 : f32 to vector<2x128xf32>
    %197 = arith.addf %196, %195 : vector<2x128xf32>
    %198 = arith.divf %196, %197 : vector<2x128xf32>
    %199 = vector.extract_strided_slice %186 {offsets = [0, 128], sizes = [2, 128], strides = [1, 1]} : vector<2x384xf32> to vector<2x128xf32>
    %200 = vector.extract_strided_slice %190 {offsets = [0, 128], sizes = [2, 128], strides = [1, 1]} : vector<2x384xf32> to vector<2x128xf32>
    %201 = arith.addf %199, %200 : vector<2x128xf32>
    %202 = arith.negf %201 : vector<2x128xf32>
    %203 = math.exp %202 : vector<2x128xf32>
    %cst_60 = arith.constant 1.000000e+00 : f32
    %204 = vector.broadcast %cst_60 : f32 to vector<2x128xf32>
    %205 = arith.addf %204, %203 : vector<2x128xf32>
    %206 = arith.divf %204, %205 : vector<2x128xf32>
    %207 = vector.extract_strided_slice %186 {offsets = [0, 256], sizes = [2, 128], strides = [1, 1]} : vector<2x384xf32> to vector<2x128xf32>
    %208 = vector.extract_strided_slice %190 {offsets = [0, 256], sizes = [2, 128], strides = [1, 1]} : vector<2x384xf32> to vector<2x128xf32>
    %209 = arith.mulf %198, %208 : vector<2x128xf32>
    %210 = arith.addf %207, %209 : vector<2x128xf32>
    %211 = math.tanh %210 : vector<2x128xf32>
    %cst_61 = arith.constant 1.000000e+00 : f32
    %212 = vector.broadcast %cst_61 : f32 to vector<2x128xf32>
    %213 = arith.subf %212, %206 : vector<2x128xf32>
    %214 = arith.mulf %213, %211 : vector<2x128xf32>
    %215 = arith.mulf %206, %185 : vector<2x128xf32>
    %216 = arith.addf %214, %215 : vector<2x128xf32>
    %217 = vector.extract_strided_slice %89 {offsets = [8, 0], sizes = [2, 384], strides = [1, 1]} : vector<16x384xf32> to vector<2x384xf32>
    %218 = arith.truncf %216 : vector<2x128xf32> to vector<2x128xbf16>
    %cst_62 = arith.constant dense<0.000000e+00> : vector<2x384xf32>
    %219 = tpu.matmul %218, %90, %cst_62 {dimension_numbers = #tpu.dot_dimension_numbers<[1], [0], [0], [1], [0, 0, 1, 1], [], []>} : vector<2x128xbf16>, vector<128x384xbf16>, vector<2x384xf32> -> vector<2x384xf32>
    %220 = vector.broadcast %91 : vector<1x384xf32> to vector<2x384xf32>
    %221 = arith.addf %219, %220 : vector<2x384xf32>
    %222 = vector.extract_strided_slice %217 {offsets = [0, 0], sizes = [2, 128], strides = [1, 1]} : vector<2x384xf32> to vector<2x128xf32>
    %223 = vector.extract_strided_slice %221 {offsets = [0, 0], sizes = [2, 128], strides = [1, 1]} : vector<2x384xf32> to vector<2x128xf32>
    %224 = arith.addf %222, %223 : vector<2x128xf32>
    %225 = arith.negf %224 : vector<2x128xf32>
    %226 = math.exp %225 : vector<2x128xf32>
    %cst_63 = arith.constant 1.000000e+00 : f32
    %227 = vector.broadcast %cst_63 : f32 to vector<2x128xf32>
    %228 = arith.addf %227, %226 : vector<2x128xf32>
    %229 = arith.divf %227, %228 : vector<2x128xf32>
    %230 = vector.extract_strided_slice %217 {offsets = [0, 128], sizes = [2, 128], strides = [1, 1]} : vector<2x384xf32> to vector<2x128xf32>
    %231 = vector.extract_strided_slice %221 {offsets = [0, 128], sizes = [2, 128], strides = [1, 1]} : vector<2x384xf32> to vector<2x128xf32>
    %232 = arith.addf %230, %231 : vector<2x128xf32>
    %233 = arith.negf %232 : vector<2x128xf32>
    %234 = math.exp %233 : vector<2x128xf32>
    %cst_64 = arith.constant 1.000000e+00 : f32
    %235 = vector.broadcast %cst_64 : f32 to vector<2x128xf32>
    %236 = arith.addf %235, %234 : vector<2x128xf32>
    %237 = arith.divf %235, %236 : vector<2x128xf32>
    %238 = vector.extract_strided_slice %217 {offsets = [0, 256], sizes = [2, 128], strides = [1, 1]} : vector<2x384xf32> to vector<2x128xf32>
    %239 = vector.extract_strided_slice %221 {offsets = [0, 256], sizes = [2, 128], strides = [1, 1]} : vector<2x384xf32> to vector<2x128xf32>
    %240 = arith.mulf %229, %239 : vector<2x128xf32>
    %241 = arith.addf %238, %240 : vector<2x128xf32>
    %242 = math.tanh %241 : vector<2x128xf32>
    %cst_65 = arith.constant 1.000000e+00 : f32
    %243 = vector.broadcast %cst_65 : f32 to vector<2x128xf32>
    %244 = arith.subf %243, %237 : vector<2x128xf32>
    %245 = arith.mulf %244, %242 : vector<2x128xf32>
    %246 = arith.mulf %237, %216 : vector<2x128xf32>
    %247 = arith.addf %245, %246 : vector<2x128xf32>
    %248 = vector.extract_strided_slice %89 {offsets = [10, 0], sizes = [2, 384], strides = [1, 1]} : vector<16x384xf32> to vector<2x384xf32>
    %249 = arith.truncf %247 : vector<2x128xf32> to vector<2x128xbf16>
    %cst_66 = arith.constant dense<0.000000e+00> : vector<2x384xf32>
    %250 = tpu.matmul %249, %90, %cst_66 {dimension_numbers = #tpu.dot_dimension_numbers<[1], [0], [0], [1], [0, 0, 1, 1], [], []>} : vector<2x128xbf16>, vector<128x384xbf16>, vector<2x384xf32> -> vector<2x384xf32>
    %251 = vector.broadcast %91 : vector<1x384xf32> to vector<2x384xf32>
    %252 = arith.addf %250, %251 : vector<2x384xf32>
    %253 = vector.extract_strided_slice %248 {offsets = [0, 0], sizes = [2, 128], strides = [1, 1]} : vector<2x384xf32> to vector<2x128xf32>
    %254 = vector.extract_strided_slice %252 {offsets = [0, 0], sizes = [2, 128], strides = [1, 1]} : vector<2x384xf32> to vector<2x128xf32>
    %255 = arith.addf %253, %254 : vector<2x128xf32>
    %256 = arith.negf %255 : vector<2x128xf32>
    %257 = math.exp %256 : vector<2x128xf32>
    %cst_67 = arith.constant 1.000000e+00 : f32
    %258 = vector.broadcast %cst_67 : f32 to vector<2x128xf32>
    %259 = arith.addf %258, %257 : vector<2x128xf32>
    %260 = arith.divf %258, %259 : vector<2x128xf32>
    %261 = vector.extract_strided_slice %248 {offsets = [0, 128], sizes = [2, 128], strides = [1, 1]} : vector<2x384xf32> to vector<2x128xf32>
    %262 = vector.extract_strided_slice %252 {offsets = [0, 128], sizes = [2, 128], strides = [1, 1]} : vector<2x384xf32> to vector<2x128xf32>
    %263 = arith.addf %261, %262 : vector<2x128xf32>
    %264 = arith.negf %263 : vector<2x128xf32>
    %265 = math.exp %264 : vector<2x128xf32>
    %cst_68 = arith.constant 1.000000e+00 : f32
    %266 = vector.broadcast %cst_68 : f32 to vector<2x128xf32>
    %267 = arith.addf %266, %265 : vector<2x128xf32>
    %268 = arith.divf %266, %267 : vector<2x128xf32>
    %269 = vector.extract_strided_slice %248 {offsets = [0, 256], sizes = [2, 128], strides = [1, 1]} : vector<2x384xf32> to vector<2x128xf32>
    %270 = vector.extract_strided_slice %252 {offsets = [0, 256], sizes = [2, 128], strides = [1, 1]} : vector<2x384xf32> to vector<2x128xf32>
    %271 = arith.mulf %260, %270 : vector<2x128xf32>
    %272 = arith.addf %269, %271 : vector<2x128xf32>
    %273 = math.tanh %272 : vector<2x128xf32>
    %cst_69 = arith.constant 1.000000e+00 : f32
    %274 = vector.broadcast %cst_69 : f32 to vector<2x128xf32>
    %275 = arith.subf %274, %268 : vector<2x128xf32>
    %276 = arith.mulf %275, %273 : vector<2x128xf32>
    %277 = arith.mulf %268, %247 : vector<2x128xf32>
    %278 = arith.addf %276, %277 : vector<2x128xf32>
    %279 = vector.extract_strided_slice %89 {offsets = [12, 0], sizes = [2, 384], strides = [1, 1]} : vector<16x384xf32> to vector<2x384xf32>
    %280 = arith.truncf %278 : vector<2x128xf32> to vector<2x128xbf16>
    %cst_70 = arith.constant dense<0.000000e+00> : vector<2x384xf32>
    %281 = tpu.matmul %280, %90, %cst_70 {dimension_numbers = #tpu.dot_dimension_numbers<[1], [0], [0], [1], [0, 0, 1, 1], [], []>} : vector<2x128xbf16>, vector<128x384xbf16>, vector<2x384xf32> -> vector<2x384xf32>
    %282 = vector.broadcast %91 : vector<1x384xf32> to vector<2x384xf32>
    %283 = arith.addf %281, %282 : vector<2x384xf32>
    %284 = vector.extract_strided_slice %279 {offsets = [0, 0], sizes = [2, 128], strides = [1, 1]} : vector<2x384xf32> to vector<2x128xf32>
    %285 = vector.extract_strided_slice %283 {offsets = [0, 0], sizes = [2, 128], strides = [1, 1]} : vector<2x384xf32> to vector<2x128xf32>
    %286 = arith.addf %284, %285 : vector<2x128xf32>
    %287 = arith.negf %286 : vector<2x128xf32>
    %288 = math.exp %287 : vector<2x128xf32>
    %cst_71 = arith.constant 1.000000e+00 : f32
    %289 = vector.broadcast %cst_71 : f32 to vector<2x128xf32>
    %290 = arith.addf %289, %288 : vector<2x128xf32>
    %291 = arith.divf %289, %290 : vector<2x128xf32>
    %292 = vector.extract_strided_slice %279 {offsets = [0, 128], sizes = [2, 128], strides = [1, 1]} : vector<2x384xf32> to vector<2x128xf32>
    %293 = vector.extract_strided_slice %283 {offsets = [0, 128], sizes = [2, 128], strides = [1, 1]} : vector<2x384xf32> to vector<2x128xf32>
    %294 = arith.addf %292, %293 : vector<2x128xf32>
    %295 = arith.negf %294 : vector<2x128xf32>
    %296 = math.exp %295 : vector<2x128xf32>
    %cst_72 = arith.constant 1.000000e+00 : f32
    %297 = vector.broadcast %cst_72 : f32 to vector<2x128xf32>
    %298 = arith.addf %297, %296 : vector<2x128xf32>
    %299 = arith.divf %297, %298 : vector<2x128xf32>
    %300 = vector.extract_strided_slice %279 {offsets = [0, 256], sizes = [2, 128], strides = [1, 1]} : vector<2x384xf32> to vector<2x128xf32>
    %301 = vector.extract_strided_slice %283 {offsets = [0, 256], sizes = [2, 128], strides = [1, 1]} : vector<2x384xf32> to vector<2x128xf32>
    %302 = arith.mulf %291, %301 : vector<2x128xf32>
    %303 = arith.addf %300, %302 : vector<2x128xf32>
    %304 = math.tanh %303 : vector<2x128xf32>
    %cst_73 = arith.constant 1.000000e+00 : f32
    %305 = vector.broadcast %cst_73 : f32 to vector<2x128xf32>
    %306 = arith.subf %305, %299 : vector<2x128xf32>
    %307 = arith.mulf %306, %304 : vector<2x128xf32>
    %308 = arith.mulf %299, %278 : vector<2x128xf32>
    %309 = arith.addf %307, %308 : vector<2x128xf32>
    %310 = vector.extract_strided_slice %89 {offsets = [14, 0], sizes = [2, 384], strides = [1, 1]} : vector<16x384xf32> to vector<2x384xf32>
    %311 = arith.truncf %309 : vector<2x128xf32> to vector<2x128xbf16>
    %cst_74 = arith.constant dense<0.000000e+00> : vector<2x384xf32>
    %312 = tpu.matmul %311, %90, %cst_74 {dimension_numbers = #tpu.dot_dimension_numbers<[1], [0], [0], [1], [0, 0, 1, 1], [], []>} : vector<2x128xbf16>, vector<128x384xbf16>, vector<2x384xf32> -> vector<2x384xf32>
    %313 = vector.broadcast %91 : vector<1x384xf32> to vector<2x384xf32>
    %314 = arith.addf %312, %313 : vector<2x384xf32>
    %315 = vector.extract_strided_slice %310 {offsets = [0, 0], sizes = [2, 128], strides = [1, 1]} : vector<2x384xf32> to vector<2x128xf32>
    %316 = vector.extract_strided_slice %314 {offsets = [0, 0], sizes = [2, 128], strides = [1, 1]} : vector<2x384xf32> to vector<2x128xf32>
    %317 = arith.addf %315, %316 : vector<2x128xf32>
    %318 = arith.negf %317 : vector<2x128xf32>
    %319 = math.exp %318 : vector<2x128xf32>
    %cst_75 = arith.constant 1.000000e+00 : f32
    %320 = vector.broadcast %cst_75 : f32 to vector<2x128xf32>
    %321 = arith.addf %320, %319 : vector<2x128xf32>
    %322 = arith.divf %320, %321 : vector<2x128xf32>
    %323 = vector.extract_strided_slice %310 {offsets = [0, 128], sizes = [2, 128], strides = [1, 1]} : vector<2x384xf32> to vector<2x128xf32>
    %324 = vector.extract_strided_slice %314 {offsets = [0, 128], sizes = [2, 128], strides = [1, 1]} : vector<2x384xf32> to vector<2x128xf32>
    %325 = arith.addf %323, %324 : vector<2x128xf32>
    %326 = arith.negf %325 : vector<2x128xf32>
    %327 = math.exp %326 : vector<2x128xf32>
    %cst_76 = arith.constant 1.000000e+00 : f32
    %328 = vector.broadcast %cst_76 : f32 to vector<2x128xf32>
    %329 = arith.addf %328, %327 : vector<2x128xf32>
    %330 = arith.divf %328, %329 : vector<2x128xf32>
    %331 = vector.extract_strided_slice %310 {offsets = [0, 256], sizes = [2, 128], strides = [1, 1]} : vector<2x384xf32> to vector<2x128xf32>
    %332 = vector.extract_strided_slice %314 {offsets = [0, 256], sizes = [2, 128], strides = [1, 1]} : vector<2x384xf32> to vector<2x128xf32>
    %333 = arith.mulf %322, %332 : vector<2x128xf32>
    %334 = arith.addf %331, %333 : vector<2x128xf32>
    %335 = math.tanh %334 : vector<2x128xf32>
    %cst_77 = arith.constant 1.000000e+00 : f32
    %336 = vector.broadcast %cst_77 : f32 to vector<2x128xf32>
    %337 = arith.subf %336, %330 : vector<2x128xf32>
    %338 = arith.mulf %337, %335 : vector<2x128xf32>
    %339 = arith.mulf %330, %309 : vector<2x128xf32>
    %340 = arith.addf %338, %339 : vector<2x128xf32>
    %c0_78 = arith.constant 0 : index
    %c0_79 = arith.constant 0 : index
    %341 = vector.load %arg8[%c0_78, %c0_79] : memref<2x128xf32, #tpu.memory_space<vmem>>, vector<2x128xf32>
    tpu.vector_store %arg8[%c0_78, %c0_79], %340 {strides = array<i32>} : memref<2x128xf32, #tpu.memory_space<vmem>>, vector<2x128xf32>,
    return
  }
}

</mosaic_0001>

<bundles_post_ra>
// kernel: reference_encoder_forward.3
= control target key start
LH: loop header
LB: loop body
LE: loop exit
PB: predicated region body
PF: predicated region fallthrough
CT: control target
= control target key end

     0   :  { %v1490_v3 = vmov 0   ;;  %vm128_vm0 = vcmask 130048   ;;  %s2343_s0 = inlined_call_operand.vmem [shape: bf16[16,2048], index: 0, kind: input, shape index: {}]   ;;  %s2344_s1 = inlined_call_operand.vmem [shape: bf16[32,16], index: 1, kind: input, shape index: {}]   ;;  %s2345_s2 = inlined_call_operand.vmem [shape: f32[32,1], index: 2, kind: input, shape index: {}]   ;;  %s2346_s3 = inlined_call_operand.vmem [shape: f32[32,1], index: 3, kind: input, shape index: {}]   ;;  %s2347_s4 = inlined_call_operand.vmem [shape: bf16[32,2048], index: 4, kind: output, shape index: {}]  }
   0x1   :  { %v22_v0 = vld [vmem:[%s2343_s0] sm:$0xff]  ;;  %v23_v2 = vld [vmem:[%s2343_s0 + $0x8] sm:$0xff]  ;;  %167 = vmatprep.mubr.bf16.mxu0 %v1490_v3  ;;  %220 = vmatprep.mubr.bf16.mxu1 %v1490_v3  ;;  %v24_v10 = vld [vmem:[%s2343_s0 + $0x10] sm:$0xff] }
   0x2   :  { %v30_v1 = vld [vmem:[%s2343_s0 + $0x40] sm:$0xff]  ;;  %v31_v6 = vld [vmem:[%s2343_s0 + $0x48] sm:$0xff]  ;;  %1479 = vset.pattern.permute.xlu1 %v1490_v3  ;;  %1478 = vset.pattern.permute.xlu0 %v1490_v3  ;;  %v32_v11 = vld [vmem:[%s2343_s0 + $0x50] sm:$0xff] }
   0x3   :  { %v1382_v4 = vcombine.high %v22_v0, %v30_v1  ;;  %v1381_v5 = vcombine.low %v22_v0, %v30_v1  ;;  %v1384_v7 = vcombine.high %v23_v2, %v31_v6  ;;  %v1383_v8 = vcombine.low %v23_v2, %v31_v6  ;;  %v1535_v9 = vld [vmem:[%s2344_s1] sm:$0xff]   ;;  %v25_v13 = vld [vmem:[%s2343_s0 + $0x18] sm:$0xff]  ;;  %v27_v20 = vld [vmem:[%s2343_s0 + $0x28] sm:$0xff] }
   0x4   :  { %v1386_v12 = vcombine.high %v24_v10, %v32_v11  ;;  %v33_v14 = vld [vmem:[%s2343_s0 + $0x58] sm:$0xff]  ;;  %v1385_v15 = vcombine.low %v24_v10, %v32_v11  ;;  %v26_v17 = vld [vmem:[%s2343_s0 + $0x20] sm:$0xff]  ;;  %v35_v21 = vld [vmem:[%s2343_s0 + $0x68] sm:$0xff] }
   0x5   :  { %135 = vmatprep.subr.bf16.mxu0 %v1382_v4  ;;  %188 = vmatprep.subr.bf16.mxu1 %v1384_v7  ;;  %v1388_v16 = vcombine.high %v25_v13, %v33_v14  ;;  %v1387_v18 = vcombine.low %v25_v13, %v33_v14  ;;  %v34_v19 = vld [vmem:[%s2343_s0 + $0x60] sm:$0xff]  ;;  %v1392_v23 = vcombine.high %v27_v20, %v35_v21  ;;  %v1481_v24 = vld [vmem:[%s2344_s1 + $0x8] sm:$0xff]   ;;  %v28_v25 = vld [vmem:[%s2343_s0 + $0x30] sm:$0xff] }
   0x6   :  { %136 = vmatpush1.bf16.msra.mxu0 %v1381_v5  ;;  %189 = vmatpush1.bf16.msra.mxu1 %v1383_v8  ;;  %v1390_v22 = vcombine.high %v26_v17, %v34_v19  ;;  %v36_v26 = vld [vmem:[%s2343_s0 + $0x70] sm:$0xff]  ;;  %v1389_v27 = vcombine.low %v26_v17, %v34_v19  ;;  %v29_v28 = vld [vmem:[%s2343_s0 + $0x38] sm:$0xff]  ;;  %v1391_v30 = vcombine.low %v27_v20, %v35_v21 }
   0x7   :  { %241 = vmatprep.subr.bf16.mxu0 %v1386_v12  ;;  %294 = vmatprep.subr.bf16.mxu1 %v1388_v16  ;;  %v37_v29 = vld [vmem:[%s2343_s0 + $0x78] sm:$0xff]  ;;  %v1394_v31 = vcombine.high %v28_v25, %v36_v26  ;;  %v1393_v33 = vcombine.low %v28_v25, %v36_v26 }
   0x8   :  { %v1396_v32 = vcombine.high %v29_v28, %v37_v29  ;;  %v1395_v34 = vcombine.low %v29_v28, %v37_v29 }
   0x9   :  { %1397 = vmatmul.mubr.msk.bf16.vlgmr.msra.gmra.mrb[0].mxu0 %vm128_vm0, %v1535_v9  ;;  %1399 = vmatmul.mubr.msk.bf16.vlgmr.msra.gmra.mrb[0].mxu1 %vm128_vm0, %v1535_v9 }
   0xa   :  { %242 = vmatpush1.bf16.msra.mxu0 %v1385_v15  ;;  %295 = vmatpush1.bf16.msra.mxu1 %v1387_v18 }
   0xb   :  { %177 = vmatprep.mubr.bf16.mxu0 %v1490_v3  ;;  %230 = vmatprep.mubr.bf16.mxu1 %v1490_v3 }
   0xc   :  { %347 = vmatprep.subr.bf16.mxu0 %v1390_v22  ;;  %400 = vmatprep.subr.bf16.mxu1 %v1392_v23 }
  0x11   :  { %1398 = vmatmul.mubr.msk.bf16.gmra.mrb[4].mxu0 %vm128_vm0, %v1481_v24  ;;  %1400 = vmatmul.mubr.msk.bf16.gmra.mrb[4].mxu1 %vm128_vm0, %v1481_v24 }
  0x12   :  { %273 = vmatprep.mubr.bf16.mxu0 %v1490_v3  ;;  %326 = vmatprep.mubr.bf16.mxu1 %v1490_v3 }
  0x19   :  { %1401 = vmatmul.mubr.msk.bf16.vlgmr.msra.gmra.mrb[8].mxu0 %vm128_vm0, %v1535_v9  ;;  %1403 = vmatmul.mubr.msk.bf16.vlgmr.msra.gmra.mrb[8].mxu1 %vm128_vm0, %v1535_v9 }
  0x1a   :  { %348 = vmatpush1.bf16.msra.mxu0 %v1389_v27  ;;  %401 = vmatpush1.bf16.msra.mxu1 %v1391_v30 }
  0x1b   :  { %283 = vmatprep.mubr.bf16.mxu0 %v1490_v3  ;;  %336 = vmatprep.mubr.bf16.mxu1 %v1490_v3 }
  0x1c   :  { %453 = vmatprep.subr.bf16.mxu0 %v1394_v31  ;;  %506 = vmatprep.subr.bf16.mxu1 %v1396_v32 }
  0x21   :  { %1402 = vmatmul.mubr.msk.bf16.gmra.mrb[12].mxu0 %vm128_vm0, %v1481_v24  ;;  %1404 = vmatmul.mubr.msk.bf16.gmra.mrb[12].mxu1 %vm128_vm0, %v1481_v24 }
  0x22   :  { %379 = vmatprep.mubr.bf16.mxu0 %v1490_v3  ;;  %432 = vmatprep.mubr.bf16.mxu1 %v1490_v3 }
  0x29   :  { %1405 = vmatmul.mubr.msk.bf16.vlgmr.msra.gmra.mrb[16].mxu0 %vm128_vm0, %v1535_v9  ;;  %1407 = vmatmul.mubr.msk.bf16.vlgmr.msra.gmra.mrb[16].mxu1 %vm128_vm0, %v1535_v9 }
  0x2a   :  { %454 = vmatpush1.bf16.msra.mxu0 %v1393_v33  ;;  %507 = vmatpush1.bf16.msra.mxu1 %v1395_v34 }
  0x2b   :  { %389 = vmatprep.mubr.bf16.mxu0 %v1490_v3  ;;  %442 = vmatprep.mubr.bf16.mxu1 %v1490_v3 }
  0x31   :  { %1406 = vmatmul.mubr.msk.bf16.gmra.mrb[20].mxu0 %vm128_vm0, %v1481_v24  ;;  %1408 = vmatmul.mubr.msk.bf16.gmra.mrb[20].mxu1 %vm128_vm0, %v1481_v24 }
  0x32   :  { %485 = vmatprep.mubr.bf16.mxu0 %v1490_v3  ;;  %538 = vmatprep.mubr.bf16.mxu1 %v1490_v3 }
  0x39   :  { %1409 = vmatmul.mubr.msk.bf16.vlgmr.msra.gmra.mrb[24].mxu0 %vm128_vm0, %v1535_v9  ;;  %1411 = vmatmul.mubr.msk.bf16.vlgmr.msra.gmra.mrb[24].mxu1 %vm128_vm0, %v1535_v9 }
  0x3a   :  { %495 = vmatprep.mubr.bf16.mxu0 %v1490_v3  ;;  %548 = vmatprep.mubr.bf16.mxu1 %v1490_v3 }
  0x41   :  { %1410 = vmatmul.mubr.msk.bf16.gmra.mrb[28].mxu0 %vm128_vm0, %v1481_v24  ;;  %1412 = vmatmul.mubr.msk.bf16.gmra.mrb[28].mxu1 %vm128_vm0, %v1481_v24 }
  0xdc   :  { %v1614_v35 = vpop.f32.mrb[0].mxu0  ;;  %v1620_v38 = vpop.f32.mrb[0].mxu1 }
  0xdd   :  { %v631_v36 = vmul.f32 %v1614_v35, %v1614_v35  ;;  %v1618_v37 = vpop.f32.mrb[1].mxu0  ;;  %v633_v42 = vmul.f32 %v1620_v38, %v1620_v38  ;;  %v1630_v43 = vpop.f32.mrb[1].mxu1 }
  0xde   :  { %v559_v39 = vadd.f32 %v1618_v37, %v1614_v35  ;;  %v632_v40 = vmul.f32 %v1618_v37, %v1618_v37  ;;  %v1626_v41 = vpop.f32.mrb[2].mxu0  ;;  %v634_v46 = vmul.f32 %v1630_v43, %v1630_v43  ;;  %v1638_v47 = vpop.f32.mrb[2].mxu1 }
  0xdf   :  { %v647_v44 = vmul.f32 %v1626_v41, %v1626_v41  ;;  %v1634_v45 = vpop.f32.mrb[3].mxu0  ;;  %v1645_v52 = vpop.f32.mrb[3].mxu1  ;;  %v649_v53 = vmul.f32 %v1638_v47, %v1638_v47 }
  0xe0   :  { %v695_v48 = vadd.f32 %v632_v40, %v631_v36  ;;  %v560_v49 = vadd.f32 %v559_v39, %v1620_v38  ;;  %v576_v50 = vadd.f32 %v1634_v45, %v1626_v41  ;;  %v648_v51 = vmul.f32 %v1634_v45, %v1634_v45 }
  0xe1   :  { %v650_v61 = vmul.f32 %v1645_v52, %v1645_v52 }
  0xe2   :  { %v696_v54 = vadd.f32 %v695_v48, %v633_v42  ;;  %v712_v55 = vadd.f32 %v648_v51, %v647_v44  ;;  %v561_v56 = vadd.f32 %v560_v49, %v1630_v43  ;;  %v577_v57 = vadd.f32 %v576_v50, %v1638_v47 }
  0xe4   :  { %v697_v58 = vadd.f32 %v696_v54, %v634_v46  ;;  %v713_v59 = vadd.f32 %v712_v55, %v649_v53  ;;  %v578_v60 = vadd.f32 %v577_v57, %v1645_v52  ;;  %v1654_v62 = vpop.f32.mrb[4].mxu0  ;;  %v1660_v1 = vpop.f32.mrb[4].mxu1 }
  0xe5   :  { %v663_v63 = vmul.f32 %v1654_v62, %v1654_v62  ;;  %v1658_v0 = vpop.f32.mrb[5].mxu0  ;;  %v665_v6 = vmul.f32 %v1660_v1, %v1660_v1  ;;  %v1670_v7 = vpop.f32.mrb[5].mxu1 }
  0xe6   :  { %v714_v2 = vadd.f32 %v713_v59, %v650_v61  ;;  %v593_v3 = vadd.f32 %v1658_v0, %v1654_v62  ;;  %v664_v4 = vmul.f32 %v1658_v0, %v1658_v0  ;;  %v1666_v5 = vpop.f32.mrb[6].mxu0  ;;  %v666_v10 = vmul.f32 %v1670_v7, %v1670_v7  ;;  %v1678_v11 = vpop.f32.mrb[6].mxu1 }
  0xe7   :  { %2380 = vst [vmem:[#allocation2_spill] sm:$0xff] %v1666_v5  ;;  %v679_v8 = vmul.f32 %v1666_v5, %v1666_v5  ;;  %v1674_v9 = vpop.f32.mrb[7].mxu0  ;;  %2382 = vst [vmem:[#allocation4_spill] sm:$0xff] %v1678_v11  ;;  %v1685_v16 = vpop.f32.mrb[7].mxu1  ;;  %v681_v17 = vmul.f32 %v1678_v11, %v1678_v11 }
  0xe8   :  { %2381 = vst [vmem:[#allocation3_spill] sm:$0xff] %v1674_v9  ;;  %v729_v12 = vadd.f32 %v664_v4, %v663_v63  ;;  %v594_v13 = vadd.f32 %v593_v3, %v1660_v1  ;;  %v610_v14 = vadd.f32 %v1674_v9, %v1666_v5  ;;  %v680_v15 = vmul.f32 %v1674_v9, %v1674_v9 }
  0xe9   :  { %2383 = vst [vmem:[#allocation5_spill] sm:$0xff] %v1685_v16  ;;  %v682_v25 = vmul.f32 %v1685_v16, %v1685_v16 }
  0xea   :  { %v730_v18 = vadd.f32 %v729_v12, %v665_v6  ;;  %v746_v19 = vadd.f32 %v680_v15, %v679_v8  ;;  %v595_v20 = vadd.f32 %v594_v13, %v1670_v7  ;;  %v611_v21 = vadd.f32 %v610_v14, %v1678_v11 }
  0xec   :  { %v731_v22 = vadd.f32 %v730_v18, %v666_v10  ;;  %v747_v23 = vadd.f32 %v746_v19, %v681_v17  ;;  %v612_v24 = vadd.f32 %v611_v21, %v1685_v16  ;;  %v1694_v26 = vpop.f32.mrb[8].mxu0  ;;  %v1701_v30 = vpop.f32.mrb[8].mxu1 }
  0xed   :  { %v562_v27 = vadd.f32 %v561_v56, %v1694_v26  ;;  %v635_v28 = vmul.f32 %v1694_v26, %v1694_v26  ;;  %v1699_v29 = vpop.f32.mrb[9].mxu0  ;;  %v637_v34 = vmul.f32 %v1701_v30, %v1701_v30  ;;  %v1709_v36 = vpop.f32.mrb[9].mxu1 }
  0xee   :  { %v748_v31 = vadd.f32 %v747_v23, %v682_v25  ;;  %v636_v32 = vmul.f32 %v1699_v29, %v1699_v29  ;;  %v1705_v33 = vpop.f32.mrb[10].mxu0  ;;  %v1717_v48 = vpop.f32.mrb[10].mxu1  ;;  %v638_v56 = vmul.f32 %v1709_v36, %v1709_v36 }
  0xef   :  { %v698_v39 = vadd.f32 %v697_v58, %v635_v28  ;;  %v563_v40 = vadd.f32 %v562_v27, %v1699_v29  ;;  %v579_v42 = vadd.f32 %v578_v60, %v1705_v33  ;;  %v651_v44 = vmul.f32 %v1705_v33, %v1705_v33  ;;  %v1715_v46 = vpop.f32.mrb[11].mxu0  ;;  %v1721_v50 = vpop.f32.mrb[11].mxu1 }
  0xf0   :  { %v652_v49 = vmul.f32 %v1715_v46, %v1715_v46  ;;  %v653_v57 = vmul.f32 %v1717_v48, %v1717_v48  ;;  %v654_v63 = vmul.f32 %v1721_v50, %v1721_v50 }
  0xf1   :  { %v699_v51 = vadd.f32 %v698_v39, %v636_v32  ;;  %v715_v53 = vadd.f32 %v714_v2, %v651_v44  ;;  %v564_v54 = vadd.f32 %v563_v40, %v1701_v30  ;;  %v580_v55 = vadd.f32 %v579_v42, %v1715_v46 }
  0xf3   :  { %v700_v58 = vadd.f32 %v699_v51, %v637_v34  ;;  %v716_v59 = vadd.f32 %v715_v53, %v652_v49  ;;  %v565_v60 = vadd.f32 %v564_v54, %v1709_v36  ;;  %v581_v61 = vadd.f32 %v580_v55, %v1717_v48 }
  0xf4   :  { %v1733_v2 = vpop.f32.mrb[12].mxu0  ;;  %v1739_v12 = vpop.f32.mrb[12].mxu1 }
  0xf5   :  { %v701_v3 = vadd.f32 %v700_v58, %v638_v56  ;;  %v717_v4 = vadd.f32 %v716_v59, %v653_v57  ;;  %v582_v6 = vadd.f32 %v581_v61, %v1721_v50  ;;  %v596_v8 = vadd.f32 %v595_v20, %v1733_v2  ;;  %v1737_v10 = vpop.f32.mrb[13].mxu0  ;;  %v1747_v17 = vpop.f32.mrb[13].mxu1 }
  0xf6   :  { %v667_v13 = vmul.f32 %v1733_v2, %v1733_v2  ;;  %v668_v14 = vmul.f32 %v1737_v10, %v1737_v10  ;;  %v1745_v15 = vpop.f32.mrb[14].mxu0  ;;  %v1755_v25 = vpop.f32.mrb[14].mxu1  ;;  %v669_v28 = vmul.f32 %v1739_v12, %v1739_v12  ;;  %v670_v54 = vmul.f32 %v1747_v17, %v1747_v17 }
  0xf7   :  { %2384 = vst [vmem:[#allocation6_spill] sm:$0xff] %v1745_v15  ;;  %v718_v18 = vadd.f32 %v717_v4, %v654_v63  ;;  %v597_v19 = vadd.f32 %v596_v8, %v1737_v10  ;;  %v613_v21 = vadd.f32 %v612_v24, %v1745_v15  ;;  %v683_v20 = vmul.f32 %v1745_v15, %v1745_v15  ;;  %v1753_v23 = vpop.f32.mrb[15].mxu0  ;;  %v1761_v34 = vpop.f32.mrb[15].mxu1 }
  0xf8   :  { %2385 = vst [vmem:[#allocation7_spill] sm:$0xff] %v1753_v23  ;;  %2386 = vst [vmem:[#allocation8_spill] sm:$0xff] %v1755_v25  ;;  %v732_v27 = vadd.f32 %v731_v22, %v667_v13  ;;  %v684_v32 = vmul.f32 %v1753_v23, %v1753_v23  ;;  %v685_v22 = vmul.f32 %v1755_v25, %v1755_v25 }
  0xf9   :  { %2387 = vst [vmem:[#allocation9_spill] sm:$0xff] %v1761_v34  ;;  %v749_v39 = vadd.f32 %v748_v31, %v683_v20  ;;  %v598_v40 = vadd.f32 %v597_v19, %v1739_v12  ;;  %v614_v24 = vadd.f32 %v613_v21, %v1753_v23  ;;  %v686_v31 = vmul.f32 %v1761_v34, %v1761_v34 }
  0xfa   :  { %v733_v42 = vadd.f32 %v732_v27, %v668_v14 }
  0xfb   :  { %v750_v44 = vadd.f32 %v749_v39, %v684_v32  ;;  %v599_v49 = vadd.f32 %v598_v40, %v1747_v17  ;;  %v615_v51 = vadd.f32 %v614_v24, %v1755_v25 }
  0xfc   :  { %v734_v53 = vadd.f32 %v733_v42, %v669_v28  ;;  %v1773_v55 = vpop.f32.mrb[16].mxu0  ;;  %v1781_v63 = vpop.f32.mrb[16].mxu1 }
  0xfd   :  { %v751_v56 = vadd.f32 %v750_v44, %v685_v22  ;;  %v616_v57 = vadd.f32 %v615_v51, %v1761_v34  ;;  %v566_v58 = vadd.f32 %v565_v60, %v1773_v55  ;;  %v639_v59 = vmul.f32 %v1773_v55, %v1773_v55  ;;  %v1779_v61 = vpop.f32.mrb[17].mxu0  ;;  %2388 = vst [vmem:[#allocation10_spill] sm:$0xff] %v1781_v63  ;;  %v1789_v19 = vpop.f32.mrb[17].mxu1 }
  0xfe   :  { %v735_v4 = vadd.f32 %v734_v53, %v670_v54  ;;  %v640_v8 = vmul.f32 %v1779_v61, %v1779_v61  ;;  %v1785_v13 = vpop.f32.mrb[18].mxu0  ;;  %v641_v14 = vmul.f32 %v1781_v63, %v1781_v63  ;;  %2389 = vst [vmem:[#allocation11_spill] sm:$0xff] %v1789_v19  ;;  %v1795_v32 = vpop.f32.mrb[18].mxu1  ;;  %v642_v53 = vmul.f32 %v1789_v19, %v1789_v19 }
  0xff   :  { %v752_v21 = vadd.f32 %v751_v56, %v686_v31  ;;  %v702_v60 = vadd.f32 %v701_v3, %v639_v59  ;;  %v567_v20 = vadd.f32 %v566_v58, %v1779_v61  ;;  %v583_v27 = vadd.f32 %v582_v6, %v1785_v13  ;;  %v1793_v28 = vpop.f32.mrb[19].mxu0  ;;  %v1801_v24 = vpop.f32.mrb[19].mxu1 }
 0x100   :  { %v655_v39 = vmul.f32 %v1785_v13, %v1785_v13  ;;  %v656_v40 = vmul.f32 %v1793_v28, %v1793_v28  ;;  %v657_v56 = vmul.f32 %v1795_v32, %v1795_v32 }
 0x101   :  { %v703_v42 = vadd.f32 %v702_v60, %v640_v8  ;;  %v568_v44 = vadd.f32 %v567_v20, %v1781_v63  ;;  %v584_v3 = vadd.f32 %v583_v27, %v1793_v28 }
 0x102   :  { %v719_v51 = vadd.f32 %v718_v18, %v655_v39  ;;  %v658_v39 = vmul.f32 %v1801_v24, %v1801_v24 }
 0x103   :  { %v704_v22 = vadd.f32 %v703_v42, %v641_v14  ;;  %v569_v6 = vadd.f32 %v568_v44, %v1789_v19  ;;  %v585_v54 = vadd.f32 %v584_v3, %v1795_v32 }
 0x104   :  { %v720_v31 = vadd.f32 %v719_v51, %v656_v40  ;;  %v1811_v58 = vpop.f32.mrb[20].mxu0  ;;  %v1819_v20 = vpop.f32.mrb[20].mxu1 }
 0x105   :  { %2390 = vst [vmem:[#allocation12_spill] sm:$0xff] %v1811_v58  ;;  %v705_v59 = vadd.f32 %v704_v22, %v642_v53  ;;  %v586_v8 = vadd.f32 %v585_v54, %v1801_v24  ;;  %v600_v60 = vadd.f32 %v599_v49, %v1811_v58  ;;  %v671_v18 = vmul.f32 %v1811_v58, %v1811_v58  ;;  %v1817_v14 = vpop.f32.mrb[21].mxu0  ;;  %v1829_v49 = vpop.f32.mrb[21].mxu1 }
 0x106   :  { %2391 = vst [vmem:[#allocation13_spill] sm:$0xff] %v1817_v14  ;;  %2392 = vst [vmem:[#allocation14_spill] sm:$0xff] %v1819_v20  ;;  %v721_v27 = vadd.f32 %v720_v31, %v657_v56  ;;  %v672_v40 = vmul.f32 %v1817_v14, %v1817_v14  ;;  %v1825_v42 = vpop.f32.mrb[22].mxu0  ;;  %v673_v44 = vmul.f32 %v1819_v20, %v1819_v20  ;;  %v1837_v31 = vpop.f32.mrb[22].mxu1 }
 0x107   :  { %2393 = vst [vmem:[#allocation15_spill] sm:$0xff] %v1825_v42  ;;  %2394 = vst [vmem:[#allocation16_spill] sm:$0xff] %v1829_v49  ;;  %v736_v3 = vadd.f32 %v735_v4, %v671_v18  ;;  %v601_v51 = vadd.f32 %v600_v60, %v1817_v14  ;;  %v617_v22 = vadd.f32 %v616_v57, %v1825_v42  ;;  %v1835_v54 = vpop.f32.mrb[23].mxu0  ;;  %v1841_v25 = vpop.f32.mrb[23].mxu1 }
 0x108   :  { %v687_v53 = vmul.f32 %v1825_v42, %v1825_v42  ;;  %2395 = vst [vmem:[#allocation17_spill] sm:$0xff] %v1835_v54  ;;  %2396 = vst [vmem:[#allocation18_spill] sm:$0xff] %v1837_v31  ;;  %v722_v56 = vadd.f32 %v721_v27, %v658_v39  ;;  %v688_v34 = vmul.f32 %v1835_v54, %v1835_v54 }
 0x109   :  { %2397 = vst [vmem:[#allocation19_spill] sm:$0xff] %v1841_v25  ;;  %v737_v23 = vadd.f32 %v736_v3, %v672_v40  ;;  %v602_v4 = vadd.f32 %v601_v51, %v1819_v20  ;;  %v618_v60 = vadd.f32 %v617_v22, %v1835_v54  ;;  %v674_v57 = vmul.f32 %v1829_v49, %v1829_v49 }
 0x10a   :  { %v753_v15 = vadd.f32 %v752_v21, %v687_v53  ;;  %v689_v18 = vmul.f32 %v1837_v31, %v1837_v31  ;;  %v690_v40 = vmul.f32 %v1841_v25, %v1841_v25 }
 0x10b   :  { %v738_v42 = vadd.f32 %v737_v23, %v673_v44  ;;  %v603_v27 = vadd.f32 %v602_v4, %v1829_v49  ;;  %v619_v39 = vadd.f32 %v618_v60, %v1837_v31 }
 0x10c   :  { %v754_v16 = vadd.f32 %v753_v15, %v688_v34  ;;  %v1853_v21 = vpop.f32.mrb[24].mxu0  ;;  %v1859_v11 = vpop.f32.mrb[24].mxu1 }
 0x10d   :  { %2398 = vst [vmem:[#allocation20_spill] sm:$0xff] %v1853_v21  ;;  %v739_v3 = vadd.f32 %v738_v42, %v674_v57  ;;  %v620_v22 = vadd.f32 %v619_v39, %v1841_v25  ;;  %v570_v53 = vadd.f32 %v569_v6, %v1853_v21  ;;  %v1857_v54 = vpop.f32.mrb[25].mxu0  ;;  %2400 = vst [vmem:[#allocation22_spill] sm:$0xff] %v1859_v11  ;;  %v1867_v44 = vpop.f32.mrb[25].mxu1 }
 0x10e   :  { %v755_v51 = vadd.f32 %v754_v16, %v689_v18  ;;  %2399 = vst [vmem:[#allocation21_spill] sm:$0xff] %v1857_v54  ;;  %v643_v15 = vmul.f32 %v1853_v21, %v1853_v21  ;;  %v644_v23 = vmul.f32 %v1857_v54, %v1857_v54  ;;  %v1865_v34 = vpop.f32.mrb[26].mxu0  ;;  %2401 = vst [vmem:[#allocation23_spill] sm:$0xff] %v1867_v44  ;;  %v1875_v57 = vpop.f32.mrb[26].mxu1 }
 0x10f   :  { %v571_v16 = vadd.f32 %v570_v53, %v1857_v54  ;;  %v587_v4 = vadd.f32 %v586_v8, %v1865_v34  ;;  %v659_v6 = vmul.f32 %v1865_v34, %v1865_v34  ;;  %v1873_v60 = vpop.f32.mrb[27].mxu0  ;;  %v645_v39 = vmul.f32 %v1859_v11, %v1859_v11  ;;  %v1881_v31 = vpop.f32.mrb[27].mxu1 }
 0x110   :  { %v756_v42 = vadd.f32 %v755_v51, %v690_v40  ;;  %v706_v18 = vadd.f32 %v705_v59, %v643_v15  ;;  %v660_v25 = vmul.f32 %v1873_v60, %v1873_v60  ;;  %v661_v9 = vmul.f32 %v1875_v57, %v1875_v57 }
 0x111   :  { %v723_v40 = vadd.f32 %v722_v56, %v659_v6  ;;  %v588_v51 = vadd.f32 %v587_v4, %v1873_v60  ;;  %v572_v8 = vadd.f32 %v571_v16, %v1859_v11  ;;  %v646_v49 = vmul.f32 %v1867_v44, %v1867_v44 }
 0x112   :  { %v707_v53 = vadd.f32 %v706_v18, %v644_v23 }
 0x113   :  { %v573_v5 = vadd.f32 %v572_v8, %v1867_v44  ;;  %v724_v59 = vadd.f32 %v723_v40, %v660_v25  ;;  %v589_v15 = vadd.f32 %v588_v51, %v1875_v57 }
 0x114   :  { %v1889_v54 = vpop.f32.mrb[28].mxu0  ;;  %v708_v20 = vadd.f32 %v707_v53, %v645_v39  ;;  %v1898_v4 = vpop.f32.mrb[28].mxu1 }
 0x115   :  { %2402 = vst [vmem:[#allocation24_spill] sm:$0xff] %v1889_v54  ;;  %v604_v56 = vadd.f32 %v603_v27, %v1889_v54  ;;  %v675_v16 = vmul.f32 %v1889_v54, %v1889_v54  ;;  %574 = vadd.xlane.f32.xlu0 %v573_v5  ;;  %v1896_v23 = vpop.f32.mrb[29].mxu0  ;;  %v725_v6 = vadd.f32 %v724_v59, %v661_v9  ;;  %v1905_v51 = vpop.f32.mrb[29].mxu1 }
 0x116   :  { %2403 = vst [vmem:[#allocation25_spill] sm:$0xff] %v1896_v23  ;;  %v590_v25 = vadd.f32 %v589_v15, %v1881_v31  ;;  %v676_v18 = vmul.f32 %v1896_v23, %v1896_v23  ;;  %v1903_v40 = vpop.f32.mrb[30].mxu0  ;;  %v662_v27 = vmul.f32 %v1881_v31, %v1881_v31  ;;  %v709_v39 = vadd.f32 %v708_v20, %v646_v49  ;;  %v1915_v15 = vpop.f32.mrb[30].mxu1 }
 0x117   :  { %2404 = vst [vmem:[#allocation26_spill] sm:$0xff] %v1903_v40  ;;  %v740_v8 = vadd.f32 %v739_v3, %v675_v16  ;;  %v605_v5 = vadd.f32 %v604_v56, %v1896_v23  ;;  %v621_v53 = vadd.f32 %v620_v22, %v1903_v40  ;;  %v691_v9 = vmul.f32 %v1903_v40, %v1903_v40  ;;  %v1913_v59 = vpop.f32.mrb[31].mxu0  ;;  %v1921_v54 = vpop.f32.mrb[31].mxu1 }
 0x118   :  { %2405 = vst [vmem:[#allocation27_spill] sm:$0xff] %v1913_v59  ;;  %2406 = vst [vmem:[#allocation28_spill] sm:$0xff] %v1915_v15  ;;  %v677_v44 = vmul.f32 %v1898_v4, %v1898_v4  ;;  %v692_v11 = vmul.f32 %v1913_v59, %v1913_v59  ;;  %v726_v20 = vadd.f32 %v725_v6, %v662_v27 }
 0x119   :  { %2407 = vst [vmem:[#allocation29_spill] sm:$0xff] %v1921_v54  ;;  %v757_v49 = vadd.f32 %v756_v42, %v691_v9  ;;  %v622_v3 = vadd.f32 %v621_v53, %v1913_v59  ;;  %591 = vadd.xlane.f32.xlu0 %v590_v25  ;;  %v606_v22 = vadd.f32 %v605_v5, %v1898_v4  ;;  %v1002_v5 = vld [vmem:[%s2346_s3 + $0x18] sm:$0xff] }
 0x11a   :  { %727 = vadd.xlane.f32.xlu1 %v726_v20  ;;  %v741_v56 = vadd.f32 %v740_v8, %v676_v18  ;;  %v693_v40 = vmul.f32 %v1915_v15, %v1915_v15  ;;  %v678_v58 = vmul.f32 %v1905_v51, %v1905_v51  ;;  %v694_v42 = vmul.f32 %v1921_v54, %v1921_v54  ;;  %v912_v8 = vld [vmem:[%s2345_s2 + $0x8] sm:$0xff] }
 0x11b   :  { %v758_v16 = vadd.f32 %v757_v49, %v692_v11  ;;  %v607_v23 = vadd.f32 %v606_v22, %v1905_v51  ;;  %v623_v14 = vadd.f32 %v622_v3, %v1915_v15 }
 0x11c   :  { %v742_v6 = vadd.f32 %v741_v56, %v677_v44  ;;  %v913_v44 = vld [vmem:[%s2345_s2 + $0x10] sm:$0xff] }
 0x11d   :  { %710 = vadd.xlane.f32.xlu0 %v709_v39  ;;  %v624_v25 = vadd.f32 %v623_v14, %v1921_v54  ;;  %v759_v27 = vadd.f32 %v758_v16, %v693_v40  ;;  %v911_v39 = vld [vmem:[%s2345_s2] sm:$0xff]  ;;  %v1001_v40 = vld [vmem:[%s2346_s3 + $0x10] sm:$0xff] }
 0x11e   :  { %608 = vadd.xlane.f32.xlu1 %v607_v23  ;;  %v743_v11 = vadd.f32 %v742_v6, %v678_v58  ;;  %v914_v58 = vld [vmem:[%s2345_s2 + $0x18] sm:$0xff]  ;;  %v999_v14 = vld [vmem:[%s2346_s3] sm:$0xff]  ;;  %v1000_v23 = vld [vmem:[%s2346_s3 + $0x8] sm:$0xff] }
 0x11f   :  { %v760_v18 = vadd.f32 %v759_v27, %v694_v42 }
 0x121   :  { %744 = vadd.xlane.f32.xlu0 %v743_v11 }
 0x122   :  { %625 = vadd.xlane.f32.xlu1 %v624_v25 }
 0x133   :  { %922 = vperm.xlu1 %1479, %v912_v8  }
 0x137   :  { %927 = vperm.xlu1 %1479, %v913_v44   ;;  %917 = vperm.xlu0 %1478, %v911_v39  }
 0x13b   :  { %932 = vperm.xlu1 %1479, %v914_v58  }
 0x13f   :  { %1005 = vperm.xlu1 %1479, %v999_v14  }
 0x143   :  { %1010 = vperm.xlu1 %1479, %v1000_v23  }
 0x147   :  { %1015 = vperm.xlu1 %1479, %v1001_v40  }
 0x16b   :  { %761 = vadd.xlane.f32.xlu1 %v760_v18 }
 0x17c   :  { %1020 = vperm.xlu1 %1479, %v1002_v5  }
 0x1a2   :  { %v575_v53 = vpop.xlane.xlu0 %574 }
 0x1a3   :  { %v1958_v9 = vmul.f32 0.00048828125, %v575_v53  ;;  %v2414_v53 = vld [vmem:[#allocation25_spill] sm:$0xff] }
 0x1a5   :  { %v767_v16 = vmul.f32 %v1958_v9, %v1958_v9 }
 0x1a6   :  { %v592_v20 = vpop.xlane.xlu0 %591 }
 0x1a7   :  { %v728_v49 = vpop.xlane.xlu1 %727  ;;  %v1960_v3 = vmul.f32 0.00048828125, %v592_v20 }
 0x1a8   :  { %v764_v22 = vmul.f32 0.00048828125, %v728_v49 }
 0x1a9   :  { %v768_v56 = vmul.f32 %v1960_v3, %v1960_v3  ;;  %v797_v5 = vsub.f32 %v1717_v48, %v1960_v3  ;;  %v803_v48 = vsub.f32 %v1865_v34, %v1960_v3 }
 0x1aa   :  { %v711_v6 = vpop.xlane.xlu0 %710 }
 0x1ab   :  { %v772_v25 = vsub.f32 %v764_v22, %v768_v56  ;;  %v763_v27 = vmul.f32 0.00048828125, %v711_v6  ;;  %v609_v11 = vpop.xlane.xlu1 %608  ;;  %v793_v56 = vsub.f32 %v1638_v47, %v1960_v3  ;;  %v794_v6 = vsub.f32 %v1645_v52, %v1960_v3 }
 0x1ac   :  { %v1972_v44 = vmul.f32 0.00048828125, %v609_v11  ;;  %v796_v22 = vsub.f32 %v1715_v46, %v1960_v3  ;;  %v799_v47 = vsub.f32 %v1785_v13, %v1960_v3  ;;  %v800_v52 = vsub.f32 %v1793_v28, %v1960_v3 }
 0x1ad   :  { %v840_v23 = vadd.f32 1e-05, %v772_v25  ;;  %v771_v20 = vsub.f32 %v763_v27, %v767_v16  ;;  %v791_v16 = vsub.f32 %v1626_v41, %v1960_v3  ;;  %v792_v27 = vsub.f32 %v1634_v45, %v1960_v3 }
 0x1ae   :  { %v745_v49 = vpop.xlane.xlu0 %744  ;;  %v769_v11 = vmul.f32 %v1972_v44, %v1972_v44  ;;  %v798_v45 = vsub.f32 %v1721_v50, %v1960_v3  ;;  %v802_v46 = vsub.f32 %v1801_v24, %v1960_v3  ;;  %v805_v50 = vsub.f32 %v1875_v57, %v1960_v3 }
 0x1af   :  { %1482 = vrsqrt.f32 %v840_v23  ;;  %v765_v25 = vmul.f32 0.00048828125, %v745_v49  ;;  %v795_v49 = vsub.f32 %v1705_v33, %v1960_v3  ;;  %v839_v41 = vadd.f32 1e-05, %v771_v20  ;;  %v2042_v57 = vpop.xlane.xlu1 %625 }
 0x1b0   :  { %v801_v33 = vsub.f32 %v1795_v32, %v1960_v3  ;;  %v804_v20 = vsub.f32 %v1873_v60, %v1960_v3  ;;  %v806_v13 = vsub.f32 %v1881_v31, %v1960_v3  ;;  %v807_v28 = vsub.f32 %v1654_v62, %v1972_v44  ;;  %2408 = vst [vmem:[#allocation30_spill] sm:$0xff] %v2042_v57 }
 0x1b1   :  { %v773_v23 = vsub.f32 %v765_v25, %v769_v11  ;;  %v808_v32 = vsub.f32 %v1658_v0, %v1972_v44  ;;  %v809_v24 = vsub.f32 %v1660_v1, %v1972_v44  ;;  %v810_v34 = vsub.f32 %v1670_v7, %v1972_v44  ;;  %v2409_v1 = vld [vmem:[#allocation12_spill] sm:$0xff]  ;;  %v2410_v7 = vld [vmem:[#allocation13_spill] sm:$0xff] }
 0x1b2   :  { %v811_v60 = vsub.f32 %v1733_v2, %v1972_v44  ;;  %v812_v31 = vsub.f32 %v1737_v10, %v1972_v44  ;;  %v813_v62 = vsub.f32 %v1739_v12, %v1972_v44  ;;  %v814_v0 = vsub.f32 %v1747_v17, %v1972_v44 }
 0x1b3   :  { %v841_v25 = vadd.f32 1e-05, %v773_v23  ;;  %v815_v3 = vsub.f32 %v2409_v1, %v1972_v44  ;;  %v816_v11 = vsub.f32 %v2410_v7, %v1972_v44  ;;  %v2411_v23 = vld [vmem:[#allocation14_spill] sm:$0xff]  ;;  %v820_v40 = vsub.f32 %v2414_v53, %v1972_v44  ;;  %v923_v39 = vpop.permute.xlu1 %922 }
 0x1b4   :  { %v817_v2 = vsub.f32 %v2411_v23, %v1972_v44  ;;  %v821_v17 = vsub.f32 %v1898_v4, %v1972_v44  ;;  %v822_v1 = vsub.f32 %v1905_v51, %v1972_v44 }
 0x1b5   :  { %1484 = vrsqrt.f32 %v841_v25  ;;  %v2413_v25 = vld [vmem:[#allocation24_spill] sm:$0xff] }
 0x1b6   :  { %1486 = vrsqrt.f32 %v839_v41  ;;  %v2412_v41 = vld [vmem:[#allocation16_spill] sm:$0xff]  ;;  %v819_v12 = vsub.f32 %v2413_v25, %v1972_v44 }
 0x1b7   :  { %v818_v10 = vsub.f32 %v2412_v41, %v1972_v44  ;;  %v2417_v41 = vld [vmem:[#allocation23_spill] sm:$0xff] }
 0x1b9   :  { %v1483_v14 = vpop.eup %1482 }
 0x1ba   :  { %v863_v25 = vmul.f32 %v1483_v14, %v791_v16  ;;  %v864_v18 = vmul.f32 %v1483_v14, %v792_v27  ;;  %v865_v42 = vmul.f32 %v1483_v14, %v793_v56  ;;  %v866_v53 = vmul.f32 %v1483_v14, %v794_v6 }
 0x1bb   :  { %v867_v54 = vmul.f32 %v1483_v14, %v795_v49  ;;  %v868_v15 = vmul.f32 %v1483_v14, %v796_v22  ;;  %v869_v4 = vmul.f32 %v1483_v14, %v797_v5  ;;  %v870_v59 = vmul.f32 %v1483_v14, %v798_v45 }
 0x1bc   :  { %v871_v57 = vmul.f32 %v1483_v14, %v799_v47  ;;  %v872_v21 = vmul.f32 %v1483_v14, %v800_v52  ;;  %v873_v51 = vmul.f32 %v1483_v14, %v801_v33  ;;  %v874_v44 = vmul.f32 %v1483_v14, %v802_v46 }
 0x1bd   :  { %v875_v19 = vmul.f32 %v1483_v14, %v803_v48  ;;  %v876_v58 = vmul.f32 %v1483_v14, %v804_v20  ;;  %v877_v7 = vmul.f32 %v1483_v14, %v805_v50  ;;  %v878_v63 = vmul.f32 %v1483_v14, %v806_v13 }
 0x1be   :  { %v2068_v23 = vmul.f32 %v923_v39, %v863_v25  ;;  %v2070_v8 = vmul.f32 %v923_v39, %v864_v18  ;;  %v2072_v16 = vmul.f32 %v923_v39, %v865_v42  ;;  %v2074_v56 = vmul.f32 %v923_v39, %v866_v53  ;;  %v928_v25 = vpop.permute.xlu1 %927 }
 0x1bf   :  { %v1485_v22 = vpop.eup %1484  ;;  %v2076_v5 = vmul.f32 %v923_v39, %v867_v54  ;;  %v2078_v6 = vmul.f32 %v923_v39, %v868_v15  ;;  %v2080_v27 = vmul.f32 %v923_v39, %v869_v4  ;;  %v2082_v49 = vmul.f32 %v923_v39, %v870_v59 }
 0x1c0   :  { %v1487_v45 = vpop.eup %1486  ;;  %v2084_v14 = vmul.f32 %v923_v39, %v871_v57  ;;  %v2086_v47 = vmul.f32 %v923_v39, %v872_v21  ;;  %v2088_v18 = vmul.f32 %v923_v39, %v873_v51  ;;  %v2090_v42 = vmul.f32 %v923_v39, %v874_v44 }
 0x1c1   :  { %v2092_v52 = vmul.f32 %v923_v39, %v875_v19  ;;  %v2094_v33 = vmul.f32 %v923_v39, %v876_v58  ;;  %v2096_v54 = vmul.f32 %v923_v39, %v877_v7  ;;  %v2098_v15 = vmul.f32 %v923_v39, %v878_v63 }
 0x1c2   :  { %v879_v46 = vmul.f32 %v1485_v22, %v807_v28  ;;  %v880_v59 = vmul.f32 %v1485_v22, %v808_v32  ;;  %v881_v48 = vmul.f32 %v1485_v22, %v809_v24  ;;  %v882_v20 = vmul.f32 %v1485_v22, %v810_v34 }
 0x1c3   :  { %2418 = vst [vmem:[#allocation12_spill] sm:$0xff] %v2094_v33  ;;  %2419 = vst [vmem:[#allocation13_spill] sm:$0xff] %v2096_v54  ;;  %v883_v50 = vmul.f32 %v1485_v22, %v811_v60  ;;  %v884_v13 = vmul.f32 %v1485_v22, %v812_v31  ;;  %v885_v21 = vmul.f32 %v1485_v22, %v813_v62 }
 0x1c4   :  { %v886_v57 = vmul.f32 %v1485_v22, %v814_v0  ;;  %v887_v53 = vmul.f32 %v1485_v22, %v815_v3  ;;  %v888_v4 = vmul.f32 %v1485_v22, %v816_v11  ;;  %v889_v51 = vmul.f32 %v1485_v22, %v817_v2 }
 0x1c5   :  { %v890_v19 = vmul.f32 %v1485_v22, %v818_v10  ;;  %v891_v44 = vmul.f32 %v1485_v22, %v819_v12  ;;  %v892_v58 = vmul.f32 %v1485_v22, %v820_v40  ;;  %v893_v33 = vmul.f32 %v1485_v22, %v821_v17  ;;  %v2132_v12 = vpop.permute.xlu1 %932 }
 0x1c6   :  { %v894_v7 = vmul.f32 %v1485_v22, %v822_v1  ;;  %v2100_v54 = vmul.f32 %v928_v25, %v879_v46  ;;  %v2102_v63 = vmul.f32 %v928_v25, %v880_v59  ;;  %v2104_v39 = vmul.f32 %v928_v25, %v881_v48  ;;  %2425 = vst [vmem:[#allocation31_spill] sm:$0xff] %v2132_v12 }
 0x1c7   :  { %v2106_v28 = vmul.f32 %v928_v25, %v882_v20  ;;  %v2108_v32 = vmul.f32 %v928_v25, %v883_v50  ;;  %v2110_v24 = vmul.f32 %v928_v25, %v884_v13  ;;  %v2112_v34 = vmul.f32 %v928_v25, %v885_v21 }
 0x1c8   :  { %v2114_v60 = vmul.f32 %v928_v25, %v886_v57  ;;  %v2116_v31 = vmul.f32 %v928_v25, %v887_v53  ;;  %v2118_v40 = vmul.f32 %v928_v25, %v888_v4  ;;  %v2120_v62 = vmul.f32 %v928_v25, %v889_v51  ;;  %v918_v53 = vpop.permute.xlu0 %917 }
 0x1c9   :  { %v2122_v0 = vmul.f32 %v928_v25, %v890_v19  ;;  %v2124_v3 = vmul.f32 %v928_v25, %v891_v44  ;;  %v2126_v11 = vmul.f32 %v928_v25, %v892_v58  ;;  %v2128_v2 = vmul.f32 %v928_v25, %v893_v33  ;;  %v2436_v19 = vld [vmem:[#allocation10_spill] sm:$0xff]  ;;  %v2438_v58 = vld [vmem:[#allocation11_spill] sm:$0xff]  ;;  %v1006_v12 = vpop.permute.xlu1 %1005 }
 0x1ca   :  { %v2130_v10 = vmul.f32 %v928_v25, %v894_v7  ;;  %v2426_v17 = vsub.f32 %v1614_v35, %v1958_v9  ;;  %v2427_v22 = vsub.f32 %v1618_v37, %v1958_v9  ;;  %v2428_v59 = vsub.f32 %v1620_v38, %v1958_v9 }
 0x1cb   :  { %2420 = vst [vmem:[#allocation14_spill] sm:$0xff] %v2122_v0  ;;  %2421 = vst [vmem:[#allocation16_spill] sm:$0xff] %v2124_v3  ;;  %v2429_v33 = vsub.f32 %v1630_v43, %v1958_v9  ;;  %v2430_v50 = vsub.f32 %v1694_v26, %v1958_v9  ;;  %v2431_v35 = vsub.f32 %v1699_v29, %v1958_v9 }
 0x1cc   :  { %2422 = vst [vmem:[#allocation24_spill] sm:$0xff] %v2126_v11  ;;  %2423 = vst [vmem:[#allocation25_spill] sm:$0xff] %v2128_v2  ;;  %v847_v1 = vmul.f32 %v1487_v45, %v2426_v17  ;;  %v848_v46 = vmul.f32 %v1487_v45, %v2427_v22  ;;  %v849_v48 = vmul.f32 %v1487_v45, %v2428_v59  ;;  %v2440_v17 = vld [vmem:[#allocation20_spill] sm:$0xff]  ;;  %v2442_v59 = vld [vmem:[#allocation21_spill] sm:$0xff] }
 0x1cd   :  { %2424 = vst [vmem:[#allocation23_spill] sm:$0xff] %v2130_v10  ;;  %v850_v20 = vmul.f32 %v1487_v45, %v2429_v33  ;;  %v851_v13 = vmul.f32 %v1487_v45, %v2430_v50  ;;  %v852_v21 = vmul.f32 %v1487_v45, %v2431_v35  ;;  %v2432_v37 = vsub.f32 %v1701_v30, %v1958_v9  ;;  %v2444_v50 = vld [vmem:[#allocation22_spill] sm:$0xff] }
 0x1ce   :  { %v2433_v38 = vsub.f32 %v1709_v36, %v1958_v9  ;;  %v2434_v43 = vsub.f32 %v1773_v55, %v1958_v9  ;;  %v2435_v26 = vsub.f32 %v1779_v61, %v1958_v9  ;;  %v2437_v29 = vsub.f32 %v2436_v19, %v1958_v9 }
 0x1cf   :  { %v853_v57 = vmul.f32 %v1487_v45, %v2432_v37  ;;  %v2439_v30 = vsub.f32 %v2438_v58, %v1958_v9  ;;  %v2441_v36 = vsub.f32 %v2440_v17, %v1958_v9  ;;  %v2443_v55 = vsub.f32 %v2442_v59, %v1958_v9 }
 0x1d0   :  { %v854_v25 = vmul.f32 %v1487_v45, %v2433_v38  ;;  %v855_v4 = vmul.f32 %v1487_v45, %v2434_v43  ;;  %v856_v51 = vmul.f32 %v1487_v45, %v2435_v26  ;;  %v857_v44 = vmul.f32 %v1487_v45, %v2437_v29 }
 0x1d1   :  { %v858_v7 = vmul.f32 %v1487_v45, %v2439_v30  ;;  %v859_v22 = vmul.f32 %v1487_v45, %v2441_v36  ;;  %v860_v33 = vmul.f32 %v1487_v45, %v2443_v55  ;;  %v2445_v61 = vsub.f32 %v2444_v50, %v1958_v9 }
 0x1d2   :  { %v2446_v37 = vsub.f32 %v2417_v41, %v1958_v9  ;;  %v935_v43 = vmul.f32 %v918_v53, %v847_v1  ;;  %v936_v26 = vmul.f32 %v918_v53, %v848_v46  ;;  %v937_v19 = vmul.f32 %v918_v53, %v849_v48 }
 0x1d3   :  { %v861_v35 = vmul.f32 %v1487_v45, %v2445_v61  ;;  %v938_v29 = vmul.f32 %v918_v53, %v850_v20  ;;  %v939_v58 = vmul.f32 %v918_v53, %v851_v13  ;;  %v940_v30 = vmul.f32 %v918_v53, %v852_v21 }
 0x1d4   :  { %v862_v38 = vmul.f32 %v1487_v45, %v2446_v37  ;;  %v941_v17 = vmul.f32 %v918_v53, %v853_v57  ;;  %v942_v36 = vmul.f32 %v918_v53, %v854_v25  ;;  %v943_v10 = vmul.f32 %v918_v53, %v855_v4 }
 0x1d5   :  { %v944_v59 = vmul.f32 %v918_v53, %v856_v51  ;;  %v945_v55 = vmul.f32 %v918_v53, %v857_v44  ;;  %v946_v2 = vmul.f32 %v918_v53, %v858_v7  ;;  %v947_v11 = vmul.f32 %v918_v53, %v859_v22 }
 0x1d6   :  { %v948_v50 = vmul.f32 %v918_v53, %v860_v33  ;;  %v949_v61 = vmul.f32 %v918_v53, %v861_v35  ;;  %v950_v3 = vmul.f32 %v918_v53, %v862_v38  ;;  %v1023_v0 = vadd.f32 %v1006_v12, %v935_v43 }
 0x1d7   :  { %v1024_v9 = vadd.f32 %v1006_v12, %v936_v26  ;;  %v1025_v41 = vadd.f32 %v1006_v12, %v937_v19  ;;  %v1026_v45 = vadd.f32 %v1006_v12, %v938_v29  ;;  %v1027_v1 = vadd.f32 %v1006_v12, %v939_v58 }
 0x1d8   :  { %v1028_v46 = vadd.f32 %v1006_v12, %v940_v30  ;;  %v1029_v48 = vadd.f32 %v1006_v12, %v941_v17  ;;  %v1030_v20 = vadd.f32 %v1006_v12, %v942_v36  ;;  %v1031_v13 = vadd.f32 %v1006_v12, %v943_v10 }
 0x1d9   :  { %v1032_v21 = vadd.f32 %v1006_v12, %v944_v59  ;;  %v1033_v57 = vadd.f32 %v1006_v12, %v945_v55  ;;  %v1034_v25 = vadd.f32 %v1006_v12, %v946_v2  ;;  %v1035_v4 = vadd.f32 %v1006_v12, %v947_v11  ;;  %v1011_v11 = vpop.permute.xlu1 %1010 }
 0x1da   :  { %v1036_v51 = vadd.f32 %v1006_v12, %v948_v50  ;;  %v1037_v44 = vadd.f32 %v1006_v12, %v949_v61  ;;  %v1038_v7 = vadd.f32 %v1006_v12, %v950_v3  ;;  %v1087_v22 = vmax.f32 %v1023_v0, 0.0 }
 0x1db   :  { %v1088_v33 = vmax.f32 %v1024_v9, 0.0  ;;  %v1089_v35 = vmax.f32 %v1025_v41, 0.0  ;;  %v1090_v53 = vmax.f32 %v1026_v45, 0.0  ;;  %v1091_v37 = vmax.f32 %v1027_v1, 0.0 }
 0x1dc   :  { %v1092_v38 = vmax.f32 %v1028_v46, 0.0  ;;  %v1093_v43 = vmax.f32 %v1029_v48, 0.0  ;;  %v1094_v26 = vmax.f32 %v1030_v20, 0.0  ;;  %v1095_v19 = vmax.f32 %v1031_v13, 0.0 }
 0x1dd   :  { %v1096_v29 = vmax.f32 %v1032_v21, 0.0  ;;  %v1097_v58 = vmax.f32 %v1033_v57, 0.0  ;;  %v1098_v30 = vmax.f32 %v1034_v25, 0.0  ;;  %v1099_v10 = vmax.f32 %v1035_v4, 0.0  ;;  %v2447_v25 = vld [vmem:[#allocation12_spill] sm:$0xff] }
 0x1de   :  { %v1100_v17 = vmax.f32 %v1036_v51, 0.0  ;;  %v1101_v36 = vmax.f32 %v1037_v44, 0.0  ;;  %v1102_v2 = vmax.f32 %v1038_v7, 0.0  ;;  %v1445_v59 = vpack.c.bf16 %v1088_v33, %v1087_v22  ;;  %v2448_v51 = vld [vmem:[#allocation13_spill] sm:$0xff] }
 0x1df   :  { %v1446_v55 = vpack.c.bf16 %v1090_v53, %v1089_v35  ;;  %v1447_v3 = vpack.c.bf16 %v1092_v38, %v1091_v37  ;;  %v1448_v0 = vpack.c.bf16 %v1094_v26, %v1093_v43  ;;  %v1449_v12 = vpack.c.bf16 %v1096_v29, %v1095_v19  ;;  %v1016_v26 = vpop.permute.xlu1 %1015 }
 0x1e0   :  { %v1450_v50 = vpack.c.bf16 %v1098_v30, %v1097_v58  ;;  %v1451_v61 = vpack.c.bf16 %v1100_v17, %v1099_v10  ;;  %v1452_v9 = vpack.c.bf16 %v1102_v2, %v1101_v36  ;;  %1343 = vst [vmem:[%s2347_s4] sm:$0xff] %v1445_v59  ;;  %v1039_v41 = vadd.f32 %v1011_v11, %v2068_v23 }
 0x1e1   :  { %1344 = vst [vmem:[%s2347_s4 + $0x8] sm:$0xff] %v1446_v55  ;;  %1345 = vst [vmem:[%s2347_s4 + $0x10] sm:$0xff] %v1447_v3  ;;  %v1040_v45 = vadd.f32 %v1011_v11, %v2070_v8  ;;  %v1041_v1 = vadd.f32 %v1011_v11, %v2072_v16  ;;  %v1042_v46 = vadd.f32 %v1011_v11, %v2074_v56 }
 0x1e2   :  { %1346 = vst [vmem:[%s2347_s4 + $0x18] sm:$0xff] %v1448_v0  ;;  %1347 = vst [vmem:[%s2347_s4 + $0x20] sm:$0xff] %v1449_v12  ;;  %v1043_v8 = vadd.f32 %v1011_v11, %v2076_v5  ;;  %v1044_v23 = vadd.f32 %v1011_v11, %v2078_v6  ;;  %v1045_v16 = vadd.f32 %v1011_v11, %v2080_v27  ;;  %v1103_v44 = vmax.f32 %v1039_v41, 0.0 }
 0x1e3   :  { %1348 = vst [vmem:[%s2347_s4 + $0x28] sm:$0xff] %v1450_v50  ;;  %1349 = vst [vmem:[%s2347_s4 + $0x30] sm:$0xff] %v1451_v61  ;;  %v1046_v56 = vadd.f32 %v1011_v11, %v2082_v49  ;;  %v1047_v48 = vadd.f32 %v1011_v11, %v2084_v14  ;;  %v1048_v20 = vadd.f32 %v1011_v11, %v2086_v47  ;;  %v1104_v27 = vmax.f32 %v1040_v45, 0.0  ;;  %v2449_v50 = vld [vmem:[#allocation14_spill] sm:$0xff]  ;;  %v2451_v45 = vld [vmem:[#allocation24_spill] sm:$0xff] }
 0x1e4   :  { %1350 = vst [vmem:[%s2347_s4 + $0x38] sm:$0xff] %v1452_v9  ;;  %v1049_v13 = vadd.f32 %v1011_v11, %v2088_v18  ;;  %v1050_v21 = vadd.f32 %v1011_v11, %v2090_v42  ;;  %v1051_v57 = vadd.f32 %v1011_v11, %v2092_v52  ;;  %v1052_v4 = vadd.f32 %v1011_v11, %v2447_v25  ;;  %v2450_v9 = vld [vmem:[#allocation16_spill] sm:$0xff] }
 0x1e5   :  { %v1053_v5 = vadd.f32 %v1011_v11, %v2448_v51  ;;  %v1054_v6 = vadd.f32 %v1011_v11, %v2098_v15  ;;  %v1105_v7 = vmax.f32 %v1041_v1, 0.0  ;;  %v1106_v49 = vmax.f32 %v1042_v46, 0.0  ;;  %v2452_v46 = vld [vmem:[#allocation25_spill] sm:$0xff] }
 0x1e6   :  { %v1107_v22 = vmax.f32 %v1043_v8, 0.0  ;;  %v1108_v14 = vmax.f32 %v1044_v23, 0.0  ;;  %v1109_v33 = vmax.f32 %v1045_v16, 0.0  ;;  %v1110_v47 = vmax.f32 %v1046_v56, 0.0  ;;  %v2453_v8 = vld [vmem:[#allocation23_spill] sm:$0xff] }
 0x1e7   :  { %v1111_v35 = vmax.f32 %v1047_v48, 0.0  ;;  %v1112_v18 = vmax.f32 %v1048_v20, 0.0  ;;  %v1113_v53 = vmax.f32 %v1049_v13, 0.0  ;;  %v1114_v42 = vmax.f32 %v1050_v21, 0.0 }
 0x1e8   :  { %v1115_v37 = vmax.f32 %v1051_v57, 0.0  ;;  %v1116_v52 = vmax.f32 %v1052_v4, 0.0  ;;  %v1117_v38 = vmax.f32 %v1053_v5, 0.0  ;;  %v1118_v43 = vmax.f32 %v1054_v6, 0.0 }
 0x1e9   :  { %v1453_v19 = vpack.c.bf16 %v1104_v27, %v1103_v44  ;;  %v1454_v29 = vpack.c.bf16 %v1106_v49, %v1105_v7  ;;  %v1455_v15 = vpack.c.bf16 %v1108_v14, %v1107_v22  ;;  %v1456_v58 = vpack.c.bf16 %v1110_v47, %v1109_v33  ;;  %v2454_v33 = vld [vmem:[#allocation30_spill] sm:$0xff] }
 0x1ea   :  { %v1457_v30 = vpack.c.bf16 %v1112_v18, %v1111_v35  ;;  %v1458_v10 = vpack.c.bf16 %v1114_v42, %v1113_v53  ;;  %v1459_v17 = vpack.c.bf16 %v1116_v52, %v1115_v37  ;;  %v1460_v36 = vpack.c.bf16 %v1118_v43, %v1117_v38  ;;  %v2455_v52 = vld [vmem:[#allocation2_spill] sm:$0xff]  ;;  %v2456_v43 = vld [vmem:[#allocation3_spill] sm:$0xff] }
 0x1eb   :  { %1351 = vst [vmem:[%s2347_s4 + $0x40] sm:$0xff] %v1453_v19  ;;  %1352 = vst [vmem:[%s2347_s4 + $0x48] sm:$0xff] %v1454_v29  ;;  %v1055_v2 = vadd.f32 %v1016_v26, %v2100_v54  ;;  %v1056_v11 = vadd.f32 %v1016_v26, %v2102_v63  ;;  %v1057_v59 = vadd.f32 %v1016_v26, %v2104_v39  ;;  %v630_v47 = vmul.f32 0.00048828125, %v2454_v33  ;;  %v2457_v19 = vld [vmem:[#allocation4_spill] sm:$0xff] }
 0x1ec   :  { %1353 = vst [vmem:[%s2347_s4 + $0x50] sm:$0xff] %v1455_v15  ;;  %1354 = vst [vmem:[%s2347_s4 + $0x58] sm:$0xff] %v1456_v58  ;;  %v1058_v55 = vadd.f32 %v1016_v26, %v2106_v28  ;;  %v1059_v54 = vadd.f32 %v1016_v26, %v2108_v32  ;;  %v1060_v63 = vadd.f32 %v1016_v26, %v2110_v24  ;;  %v2458_v15 = vld [vmem:[#allocation5_spill] sm:$0xff] }
 0x1ed   :  { %1355 = vst [vmem:[%s2347_s4 + $0x60] sm:$0xff] %v1457_v30  ;;  %1356 = vst [vmem:[%s2347_s4 + $0x68] sm:$0xff] %v1458_v10  ;;  %v1061_v39 = vadd.f32 %v1016_v26, %v2112_v34  ;;  %v1062_v28 = vadd.f32 %v1016_v26, %v2114_v60  ;;  %v1063_v3 = vadd.f32 %v1016_v26, %v2116_v31  ;;  %v1119_v23 = vmax.f32 %v1055_v2, 0.0  ;;  %v2459_v30 = vld [vmem:[#allocation6_spill] sm:$0xff]  ;;  %v2461_v2 = vld [vmem:[#allocation8_spill] sm:$0xff] }
 0x1ee   :  { %1357 = vst [vmem:[%s2347_s4 + $0x70] sm:$0xff] %v1459_v17  ;;  %1358 = vst [vmem:[%s2347_s4 + $0x78] sm:$0xff] %v1460_v36  ;;  %v1064_v0 = vadd.f32 %v1016_v26, %v2118_v40  ;;  %v1065_v12 = vadd.f32 %v1016_v26, %v2120_v62  ;;  %v1066_v61 = vadd.f32 %v1016_v26, %v2449_v50  ;;  %v1120_v34 = vmax.f32 %v1056_v11, 0.0  ;;  %v2460_v17 = vld [vmem:[#allocation7_spill] sm:$0xff] }
 0x1ef   :  { %v1067_v41 = vadd.f32 %v1016_v26, %v2450_v9  ;;  %v1068_v1 = vadd.f32 %v1016_v26, %v2451_v45  ;;  %v1069_v32 = vadd.f32 %v1016_v26, %v2452_v46  ;;  %v1070_v24 = vadd.f32 %v1016_v26, %v2453_v8  ;;  %v2467_v9 = vld [vmem:[#allocation26_spill] sm:$0xff]  ;;  %v2468_v45 = vld [vmem:[#allocation27_spill] sm:$0xff]  ;;  %v2469_v46 = vld [vmem:[#allocation28_spill] sm:$0xff] }
 0x1f0   :  { %v1121_v16 = vmax.f32 %v1057_v59, 0.0  ;;  %v1122_v60 = vmax.f32 %v1058_v55, 0.0  ;;  %v1123_v56 = vmax.f32 %v1059_v54, 0.0  ;;  %v1124_v31 = vmax.f32 %v1060_v63, 0.0  ;;  %v2462_v59 = vld [vmem:[#allocation9_spill] sm:$0xff]  ;;  %v2463_v54 = vld [vmem:[#allocation15_spill] sm:$0xff] }
 0x1f1   :  { %v1125_v48 = vmax.f32 %v1061_v39, 0.0  ;;  %v1126_v40 = vmax.f32 %v1062_v28, 0.0  ;;  %v1127_v20 = vmax.f32 %v1063_v3, 0.0  ;;  %v1128_v62 = vmax.f32 %v1064_v0, 0.0  ;;  %v2464_v39 = vld [vmem:[#allocation17_spill] sm:$0xff]  ;;  %v2465_v3 = vld [vmem:[#allocation18_spill] sm:$0xff] }
 0x1f2   :  { %v1129_v13 = vmax.f32 %v1065_v12, 0.0  ;;  %v1130_v21 = vmax.f32 %v1066_v61, 0.0  ;;  %v1131_v57 = vmax.f32 %v1067_v41, 0.0  ;;  %v1132_v25 = vmax.f32 %v1068_v1, 0.0  ;;  %v2466_v12 = vld [vmem:[#allocation19_spill] sm:$0xff]  ;;  %v2470_v8 = vld [vmem:[#allocation29_spill] sm:$0xff] }
 0x1f3   :  { %v1133_v4 = vmax.f32 %v1069_v32, 0.0  ;;  %v1134_v51 = vmax.f32 %v1070_v24, 0.0  ;;  %v1461_v5 = vpack.c.bf16 %v1120_v34, %v1119_v23  ;;  %v1462_v6 = vpack.c.bf16 %v1122_v60, %v1121_v16 }
 0x1f4   :  { %v1463_v44 = vpack.c.bf16 %v1124_v31, %v1123_v56  ;;  %v1464_v27 = vpack.c.bf16 %v1126_v40, %v1125_v48  ;;  %v1465_v7 = vpack.c.bf16 %v1128_v62, %v1127_v20  ;;  %v1466_v49 = vpack.c.bf16 %v1130_v21, %v1129_v13 }
 0x1f5   :  { %v1467_v22 = vpack.c.bf16 %v1132_v25, %v1131_v57  ;;  %v1468_v14 = vpack.c.bf16 %v1134_v51, %v1133_v4  ;;  %1359 = vst [vmem:[%s2347_s4 + $0x80] sm:$0xff] %v1461_v5  ;;  %1360 = vst [vmem:[%s2347_s4 + $0x88] sm:$0xff] %v1462_v6  ;;  %v770_v18 = vmul.f32 %v630_v47, %v630_v47  ;;  %v2471_v5 = vld [vmem:[#allocation31_spill] sm:$0xff] }
 0x1f6   :  { %1361 = vst [vmem:[%s2347_s4 + $0x90] sm:$0xff] %v1463_v44  ;;  %1362 = vst [vmem:[%s2347_s4 + $0x98] sm:$0xff] %v1464_v27  ;;  %v823_v38 = vsub.f32 %v2455_v52, %v630_v47  ;;  %v824_v26 = vsub.f32 %v2456_v43, %v630_v47  ;;  %v825_v29 = vsub.f32 %v2457_v19, %v630_v47 }
 0x1f7   :  { %1363 = vst [vmem:[%s2347_s4 + $0xa0] sm:$0xff] %v1465_v7  ;;  %1364 = vst [vmem:[%s2347_s4 + $0xa8] sm:$0xff] %v1466_v49  ;;  %v826_v58 = vsub.f32 %v2458_v15, %v630_v47  ;;  %v827_v10 = vsub.f32 %v2459_v30, %v630_v47  ;;  %v828_v36 = vsub.f32 %v2460_v17, %v630_v47 }
 0x1f8   :  { %1365 = vst [vmem:[%s2347_s4 + $0xb0] sm:$0xff] %v1467_v22  ;;  %1366 = vst [vmem:[%s2347_s4 + $0xb8] sm:$0xff] %v1468_v14  ;;  %v762_v35 = vpop.xlane.xlu1 %761  ;;  %v829_v11 = vsub.f32 %v2461_v2, %v630_v47  ;;  %v830_v55 = vsub.f32 %v2462_v59, %v630_v47  ;;  %v831_v63 = vsub.f32 %v2463_v54, %v630_v47 }
 0x1f9   :  { %v766_v53 = vmul.f32 0.00048828125, %v762_v35  ;;  %v832_v28 = vsub.f32 %v2464_v39, %v630_v47  ;;  %v833_v0 = vsub.f32 %v2465_v3, %v630_v47  ;;  %v834_v50 = vsub.f32 %v2466_v12, %v630_v47 }
 0x1fa   :  { %v835_v41 = vsub.f32 %v2467_v9, %v630_v47  ;;  %v836_v1 = vsub.f32 %v2468_v45, %v630_v47  ;;  %v837_v32 = vsub.f32 %v2469_v46, %v630_v47  ;;  %v838_v24 = vsub.f32 %v2470_v8, %v630_v47 }
 0x1fb   :  { %v774_v42 = vsub.f32 %v766_v53, %v770_v18 }
 0x1fc   :  { %v1021_v43 = vpop.permute.xlu1 %1020 }
 0x1fd   :  { %v842_v37 = vadd.f32 1e-05, %v774_v42 }
 0x1ff   :  { %1488 = vrsqrt.f32 %v842_v37 }
 0x209   :  { %v1489_v61 = vpop.eup %1488 }
 0x20a   :  { %v895_v23 = vmul.f32 %v1489_v61, %v823_v38  ;;  %v896_v34 = vmul.f32 %v1489_v61, %v824_v26  ;;  %v897_v16 = vmul.f32 %v1489_v61, %v825_v29  ;;  %v898_v60 = vmul.f32 %v1489_v61, %v826_v58 }
 0x20b   :  { %v899_v56 = vmul.f32 %v1489_v61, %v827_v10  ;;  %v900_v31 = vmul.f32 %v1489_v61, %v828_v36  ;;  %v901_v48 = vmul.f32 %v1489_v61, %v829_v11  ;;  %v902_v40 = vmul.f32 %v1489_v61, %v830_v55 }
 0x20c   :  { %v903_v20 = vmul.f32 %v1489_v61, %v831_v63  ;;  %v904_v62 = vmul.f32 %v1489_v61, %v832_v28  ;;  %v905_v13 = vmul.f32 %v1489_v61, %v833_v0  ;;  %v906_v21 = vmul.f32 %v1489_v61, %v834_v50 }
 0x20d   :  { %v907_v57 = vmul.f32 %v1489_v61, %v835_v41  ;;  %v908_v25 = vmul.f32 %v1489_v61, %v836_v1  ;;  %v909_v4 = vmul.f32 %v1489_v61, %v837_v32  ;;  %v910_v51 = vmul.f32 %v1489_v61, %v838_v24 }
 0x20e   :  { %v983_v6 = vmul.f32 %v2471_v5, %v895_v23  ;;  %v984_v44 = vmul.f32 %v2471_v5, %v896_v34  ;;  %v985_v27 = vmul.f32 %v2471_v5, %v897_v16  ;;  %v986_v7 = vmul.f32 %v2471_v5, %v898_v60 }
 0x20f   :  { %v987_v49 = vmul.f32 %v2471_v5, %v899_v56  ;;  %v988_v22 = vmul.f32 %v2471_v5, %v900_v31  ;;  %v989_v14 = vmul.f32 %v2471_v5, %v901_v48  ;;  %v990_v33 = vmul.f32 %v2471_v5, %v902_v40 }
 0x210   :  { %v991_v47 = vmul.f32 %v2471_v5, %v903_v20  ;;  %v992_v35 = vmul.f32 %v2471_v5, %v904_v62  ;;  %v993_v18 = vmul.f32 %v2471_v5, %v905_v13  ;;  %v994_v53 = vmul.f32 %v2471_v5, %v906_v21 }
 0x211   :  { %v995_v42 = vmul.f32 %v2471_v5, %v907_v57  ;;  %v996_v37 = vmul.f32 %v2471_v5, %v908_v25  ;;  %v997_v52 = vmul.f32 %v2471_v5, %v909_v4  ;;  %v998_v38 = vmul.f32 %v2471_v5, %v910_v51 }
 0x212   :  { %v1071_v26 = vadd.f32 %v1021_v43, %v983_v6  ;;  %v1072_v19 = vadd.f32 %v1021_v43, %v984_v44  ;;  %v1073_v29 = vadd.f32 %v1021_v43, %v985_v27  ;;  %v1074_v15 = vadd.f32 %v1021_v43, %v986_v7 }
 0x213   :  { %v1075_v58 = vadd.f32 %v1021_v43, %v987_v49  ;;  %v1076_v30 = vadd.f32 %v1021_v43, %v988_v22  ;;  %v1077_v10 = vadd.f32 %v1021_v43, %v989_v14  ;;  %v1078_v17 = vadd.f32 %v1021_v43, %v990_v33 }
 0x214   :  { %v1079_v36 = vadd.f32 %v1021_v43, %v991_v47  ;;  %v1080_v2 = vadd.f32 %v1021_v43, %v992_v35  ;;  %v1081_v11 = vadd.f32 %v1021_v43, %v993_v18  ;;  %v1082_v59 = vadd.f32 %v1021_v43, %v994_v53 }
 0x215   :  { %v1083_v55 = vadd.f32 %v1021_v43, %v995_v42  ;;  %v1084_v54 = vadd.f32 %v1021_v43, %v996_v37  ;;  %v1085_v63 = vadd.f32 %v1021_v43, %v997_v52  ;;  %v1086_v39 = vadd.f32 %v1021_v43, %v998_v38 }
 0x216   :  { %v1135_v28 = vmax.f32 %v1071_v26, 0.0  ;;  %v1136_v3 = vmax.f32 %v1072_v19, 0.0  ;;  %v1137_v0 = vmax.f32 %v1073_v29, 0.0  ;;  %v1138_v12 = vmax.f32 %v1074_v15, 0.0 }
 0x217   :  { %v1139_v50 = vmax.f32 %v1075_v58, 0.0  ;;  %v1140_v61 = vmax.f32 %v1076_v30, 0.0  ;;  %v1141_v9 = vmax.f32 %v1077_v10, 0.0  ;;  %v1142_v41 = vmax.f32 %v1078_v17, 0.0 }
 0x218   :  { %v1143_v45 = vmax.f32 %v1079_v36, 0.0  ;;  %v1144_v1 = vmax.f32 %v1080_v2, 0.0  ;;  %v1145_v46 = vmax.f32 %v1081_v11, 0.0  ;;  %v1146_v32 = vmax.f32 %v1082_v59, 0.0 }
 0x219   :  { %v1147_v8 = vmax.f32 %v1083_v55, 0.0  ;;  %v1148_v24 = vmax.f32 %v1084_v54, 0.0  ;;  %v1149_v23 = vmax.f32 %v1085_v63, 0.0  ;;  %v1150_v34 = vmax.f32 %v1086_v39, 0.0 }
 0x21a   :  { %v1469_v16 = vpack.c.bf16 %v1136_v3, %v1135_v28  ;;  %v1470_v60 = vpack.c.bf16 %v1138_v12, %v1137_v0  ;;  %v1471_v56 = vpack.c.bf16 %v1140_v61, %v1139_v50  ;;  %v1472_v31 = vpack.c.bf16 %v1142_v41, %v1141_v9 }
 0x21b   :  { %v1473_v48 = vpack.c.bf16 %v1144_v1, %v1143_v45  ;;  %v1474_v40 = vpack.c.bf16 %v1146_v32, %v1145_v46  ;;  %v1475_v20 = vpack.c.bf16 %v1148_v24, %v1147_v8  ;;  %v1476_v62 = vpack.c.bf16 %v1150_v34, %v1149_v23 }
 0x21c   :  { %1367 = vst [vmem:[%s2347_s4 + $0xc0] sm:$0xff] %v1469_v16  ;;  %1368 = vst [vmem:[%s2347_s4 + $0xc8] sm:$0xff] %v1470_v60 }
 0x21d   :  { %1369 = vst [vmem:[%s2347_s4 + $0xd0] sm:$0xff] %v1471_v56  ;;  %1370 = vst [vmem:[%s2347_s4 + $0xd8] sm:$0xff] %v1472_v31 }
 0x21e   :  { %1371 = vst [vmem:[%s2347_s4 + $0xe0] sm:$0xff] %v1473_v48  ;;  %1372 = vst [vmem:[%s2347_s4 + $0xe8] sm:$0xff] %v1474_v40 }
 0x21f   :  { %1373 = vst [vmem:[%s2347_s4 + $0xf0] sm:$0xff] %v1475_v20  ;;  %1374 = vst [vmem:[%s2347_s4 + $0xf8] sm:$0xff] %v1476_v62 }

// kernel: reference_encoder_forward.4
= control target key start
LH: loop header
LB: loop body
LE: loop exit
PB: predicated region body
PF: predicated region fallthrough
CT: control target
= control target key end

     0   :  { %v1662_v1 = vmov 0   ;;  %vm526_vm0 = vcmask 261120   ;;  %s2392_s0 = inlined_call_operand.vmem [shape: bf16[288,512], index: 0, kind: input, shape index: {}]   ;;  %s2393_s1 = inlined_call_operand.vmem [shape: bf16[64,288], index: 1, kind: input, shape index: {}]   ;;  %s2394_s2 = inlined_call_operand.vmem [shape: f32[64,1], index: 2, kind: input, shape index: {}]   ;;  %s2395_s3 = inlined_call_operand.vmem [shape: f32[64,1], index: 3, kind: input, shape index: {}]   ;;  %s2396_s4 = inlined_call_operand.vmem [shape: bf16[64,512], index: 4, kind: output, shape index: {}]  }
   0x1   :  { %v1522_v0 = vld [vmem:[%s2392_s0 + $0x4] ss:$16 sps:$4 sm:$0xff]   ;;  %1521 = vset.pattern.permute.xlu1 %v1662_v1  ;;  %1520 = vset.pattern.permute.xlu0 %v1662_v1  ;;  %v1524_v2 = vld [vmem:[%s2392_s0 + $0xc] ss:$16 sps:$4 sm:$0xff]   ;;  %v1526_v3 = vld [vmem:[%s2392_s0] ss:$16 sps:$4 sm:$0xff]  }
   0x2   :  { %539 = vmatprep.subr.bf16.mxu0 %v1522_v0  ;;  %v1527_v4 = vld [vmem:[%s2392_s0 + $0x8] ss:$16 sps:$4 sm:$0xff]   ;;  %685 = vmatprep.subr.bf16.mxu1 %v1524_v2  ;;  %v1528_v5 = vld [vmem:[%s2392_s0 + $0x24] ss:$16 sps:$4 sm:$0xff]   ;;  %v1530_v6 = vld [vmem:[%s2392_s0 + $0x2c] ss:$16 sps:$4 sm:$0xff]  }
   0x3   :  { %540 = vmatpush1.bf16.msra.mxu0 %v1526_v3  ;;  %686 = vmatpush1.bf16.msra.mxu1 %v1527_v4  ;;  %v1532_v7 = vld [vmem:[%s2392_s0 + $0x20] ss:$16 sps:$4 sm:$0xff]   ;;  %v1533_v8 = vld [vmem:[%s2392_s0 + $0x28] ss:$16 sps:$4 sm:$0xff]   ;;  %v1534_v9 = vld [vmem:[%s2392_s0 + $0x44] ss:$16 sps:$4 sm:$0xff]  }
   0x4   :  { %541 = vmatprep.subr.bf16.mxu0 %v1528_v5  ;;  %687 = vmatprep.subr.bf16.mxu1 %v1530_v6  ;;  %v1536_v10 = vld [vmem:[%s2392_s0 + $0x4c] ss:$16 sps:$4 sm:$0xff]   ;;  %v1538_v11 = vld [vmem:[%s2392_s0 + $0x40] ss:$16 sps:$4 sm:$0xff]   ;;  %v1539_v12 = vld [vmem:[%s2392_s0 + $0x48] ss:$16 sps:$4 sm:$0xff]  }
   0x5   :  { %v1540_v13 = vld [vmem:[%s2392_s0 + $0x64] ss:$16 sps:$4 sm:$0xff]   ;;  %v1542_v14 = vld [vmem:[%s2392_s0 + $0x6c] ss:$16 sps:$4 sm:$0xff]   ;;  %v1544_v15 = vld [vmem:[%s2392_s0 + $0x60] ss:$16 sps:$4 sm:$0xff]  }
   0x6   :  { %v1545_v16 = vld [vmem:[%s2392_s0 + $0x68] ss:$16 sps:$4 sm:$0xff]   ;;  %v1546_v17 = vld [vmem:[%s2392_s0 + $0x84] ss:$16 sps:$4 sm:$0xff]   ;;  %v1548_v18 = vld [vmem:[%s2392_s0 + $0x8c] ss:$16 sps:$4 sm:$0xff]  }
   0x7   :  { %542 = vmatpush1.bf16.msra.mxu0 %v1532_v7  ;;  %688 = vmatpush1.bf16.msra.mxu1 %v1533_v8  ;;  %v1550_v19 = vld [vmem:[%s2392_s0 + $0x80] ss:$16 sps:$4 sm:$0xff]   ;;  %v1551_v20 = vld [vmem:[%s2392_s0 + $0x88] ss:$16 sps:$4 sm:$0xff]   ;;  %v1552_v21 = vld [vmem:[%s2392_s0 + $0xa4] ss:$16 sps:$4 sm:$0xff]  }
   0x8   :  { %543 = vmatprep.subr.bf16.mxu0 %v1534_v9  ;;  %689 = vmatprep.subr.bf16.mxu1 %v1536_v10  ;;  %v1554_v22 = vld [vmem:[%s2392_s0 + $0xac] ss:$16 sps:$4 sm:$0xff]   ;;  %v1556_v23 = vld [vmem:[%s2392_s0 + $0xa0] ss:$16 sps:$4 sm:$0xff]   ;;  %v1557_v24 = vld [vmem:[%s2392_s0 + $0xa8] ss:$16 sps:$4 sm:$0xff]  }
   0x9   :  { %v1558_v25 = vld [vmem:[%s2392_s0 + $0xc4] ss:$16 sps:$4 sm:$0xff]   ;;  %v1560_v26 = vld [vmem:[%s2392_s0 + $0xcc] ss:$16 sps:$4 sm:$0xff]   ;;  %v1562_v27 = vld [vmem:[%s2392_s0 + $0xc0] ss:$16 sps:$4 sm:$0xff]  }
   0xa   :  { %v1563_v28 = vld [vmem:[%s2392_s0 + $0xc8] ss:$16 sps:$4 sm:$0xff]   ;;  %v1564_v29 = vld [vmem:[%s2392_s0 + $0xe4] ss:$16 sps:$4 sm:$0xff]   ;;  %v1566_v30 = vld [vmem:[%s2392_s0 + $0xec] ss:$16 sps:$4 sm:$0xff]  }
   0xb   :  { %544 = vmatpush1.bf16.msra.mxu0 %v1538_v11  ;;  %690 = vmatpush1.bf16.msra.mxu1 %v1539_v12  ;;  %v1568_v31 = vld [vmem:[%s2392_s0 + $0xe0] ss:$16 sps:$4 sm:$0xff]   ;;  %v1569_v32 = vld [vmem:[%s2392_s0 + $0xe8] ss:$16 sps:$4 sm:$0xff]   ;;  %v1570_v33 = vld [vmem:[%s2392_s0 + $0x104] ss:$16 sps:$4 sm:$0xff]  }
   0xc   :  { %545 = vmatprep.subr.bf16.mxu0 %v1540_v13  ;;  %691 = vmatprep.subr.bf16.mxu1 %v1542_v14  ;;  %v1572_v34 = vld [vmem:[%s2392_s0 + $0x10c] ss:$16 sps:$4 sm:$0xff]   ;;  %v1574_v35 = vld [vmem:[%s2392_s0 + $0x100] ss:$16 sps:$4 sm:$0xff]   ;;  %v1575_v36 = vld [vmem:[%s2392_s0 + $0x108] ss:$16 sps:$4 sm:$0xff]  }
   0xd   :  { %v1576_v37 = vld [vmem:[%s2392_s0 + $0x124] ss:$16 sps:$4 sm:$0xff]   ;;  %v1578_v38 = vld [vmem:[%s2392_s0 + $0x12c] ss:$16 sps:$4 sm:$0xff]   ;;  %v1580_v39 = vld [vmem:[%s2392_s0 + $0x120] ss:$16 sps:$4 sm:$0xff]  }
   0xe   :  { %v1581_v40 = vld [vmem:[%s2392_s0 + $0x128] ss:$16 sps:$4 sm:$0xff]   ;;  %v1582_v41 = vld [vmem:[%s2392_s0 + $0x144] ss:$16 sps:$4 sm:$0xff]   ;;  %v1584_v42 = vld [vmem:[%s2392_s0 + $0x14c] ss:$16 sps:$4 sm:$0xff]  }
   0xf   :  { %546 = vmatpush1.bf16.msra.mxu0 %v1544_v15  ;;  %692 = vmatpush1.bf16.msra.mxu1 %v1545_v16  ;;  %v1586_v43 = vld [vmem:[%s2392_s0 + $0x140] ss:$16 sps:$4 sm:$0xff]   ;;  %v1587_v44 = vld [vmem:[%s2392_s0 + $0x148] ss:$16 sps:$4 sm:$0xff]   ;;  %v1588_v45 = vld [vmem:[%s2392_s0 + $0x164] ss:$16 sps:$4 sm:$0xff]  }
  0x10   :  { %547 = vmatprep.subr.bf16.mxu0 %v1546_v17  ;;  %693 = vmatprep.subr.bf16.mxu1 %v1548_v18  ;;  %v1590_v46 = vld [vmem:[%s2392_s0 + $0x16c] ss:$16 sps:$4 sm:$0xff]   ;;  %v1592_v47 = vld [vmem:[%s2392_s0 + $0x160] ss:$16 sps:$4 sm:$0xff]   ;;  %v1593_v48 = vld [vmem:[%s2392_s0 + $0x168] ss:$16 sps:$4 sm:$0xff]  }
  0x11   :  { %v1620_v49 = vld [vmem:[%s2393_s1 + $0x4] ss:$12 sps:$4 sm:$0xff]   ;;  %v1596_v51 = vld [vmem:[%s2392_s0 + $0x18c] ss:$16 sps:$4 sm:$0xff]   ;;  %v1599_v53 = vld [vmem:[%s2392_s0 + $0x188] ss:$16 sps:$4 sm:$0xff]  }
  0x12   :  { %v1594_v50 = vld [vmem:[%s2392_s0 + $0x184] ss:$16 sps:$4 sm:$0xff]   ;;  %571 = vmatprep.mubr.bf16.mxu0 %v1620_v49  ;;  %717 = vmatprep.mubr.bf16.mxu1 %v1620_v49  ;;  %v1598_v52 = vld [vmem:[%s2392_s0 + $0x180] ss:$16 sps:$4 sm:$0xff]   ;;  %v1602_v55 = vld [vmem:[%s2392_s0 + $0x1ac] ss:$16 sps:$4 sm:$0xff]  }
  0x13   :  { %548 = vmatpush1.bf16.msra.mxu0 %v1550_v19  ;;  %694 = vmatpush1.bf16.msra.mxu1 %v1551_v20  ;;  %v1600_v54 = vld [vmem:[%s2392_s0 + $0x1a4] ss:$16 sps:$4 sm:$0xff]   ;;  %v1604_v56 = vld [vmem:[%s2392_s0 + $0x1a0] ss:$16 sps:$4 sm:$0xff]   ;;  %v1605_v57 = vld [vmem:[%s2392_s0 + $0x1a8] ss:$16 sps:$4 sm:$0xff]  }
  0x14   :  { %549 = vmatprep.subr.bf16.mxu0 %v1552_v21  ;;  %695 = vmatprep.subr.bf16.mxu1 %v1554_v22  ;;  %v1606_v58 = vld [vmem:[%s2392_s0 + $0x1c4] ss:$16 sps:$4 sm:$0xff]   ;;  %v1608_v59 = vld [vmem:[%s2392_s0 + $0x1cc] ss:$16 sps:$4 sm:$0xff]   ;;  %v1610_v60 = vld [vmem:[%s2392_s0 + $0x1c0] ss:$16 sps:$4 sm:$0xff]  }
  0x15   :  { %v1611_v61 = vld [vmem:[%s2392_s0 + $0x1c8] ss:$16 sps:$4 sm:$0xff]   ;;  %v1612_v62 = vld [vmem:[%s2392_s0 + $0x1e4] ss:$16 sps:$4 sm:$0xff]   ;;  %v1614_v63 = vld [vmem:[%s2392_s0 + $0x1ec] ss:$16 sps:$4 sm:$0xff]  }
  0x16   :  { %v1056_v0 = vld [vmem:[%s2394_s2 + $0x8] sm:$0xff]  ;;  %v1057_v2 = vld [vmem:[%s2394_s2 + $0x10] sm:$0xff]  ;;  %v1055_v5 = vld [vmem:[%s2394_s2] sm:$0xff] }
  0x17   :  { %550 = vmatpush1.bf16.msra.mxu0 %v1556_v23  ;;  %696 = vmatpush1.bf16.msra.mxu1 %v1557_v24  ;;  %v1616_v3 = vld [vmem:[%s2392_s0 + $0x1e0] ss:$16 sps:$4 sm:$0xff]   ;;  %v1617_v4 = vld [vmem:[%s2392_s0 + $0x1e8] ss:$16 sps:$4 sm:$0xff]   ;;  %v1623_v6 = vld [vmem:[%s2392_s0 + $0x204] ss:$16 sps:$4 sm:$0xff]  }
  0x18   :  { %551 = vmatprep.subr.bf16.mxu0 %v1558_v25  ;;  %697 = vmatprep.subr.bf16.mxu1 %v1560_v26  ;;  %v1626_v7 = vld [vmem:[%s2392_s0 + $0x20c] ss:$16 sps:$4 sm:$0xff]   ;;  %v1621_v11 = vld [vmem:[%s2392_s0 + $0x200] ss:$16 sps:$4 sm:$0xff]   ;;  %v1624_v12 = vld [vmem:[%s2392_s0 + $0x208] ss:$16 sps:$4 sm:$0xff]  }
  0x19   :  { %1070 = vperm.xlu1 %1521, %v1056_v0   ;;  %1065 = vperm.xlu0 %1520, %v1055_v5   ;;  %v1618_v8 = vld [vmem:[%s2393_s1] ss:$12 sps:$4 sm:$0xff]   ;;  %v1058_v9 = vld [vmem:[%s2394_s2 + $0x18] sm:$0xff]  ;;  %v1635_v14 = vld [vmem:[%s2392_s0 + $0x224] ss:$16 sps:$4 sm:$0xff]  }
  0x1a   :  { %v1136_v10 = vld [vmem:[%s2395_s3 + $0x8] sm:$0xff]  ;;  %v1633_v16 = vld [vmem:[%s2392_s0 + $0x220] ss:$16 sps:$4 sm:$0xff]   ;;  %v1138_v19 = vld [vmem:[%s2395_s3 + $0x18] sm:$0xff] }
  0x1b   :  { %552 = vmatpush1.bf16.msra.mxu0 %v1562_v27  ;;  %698 = vmatpush1.bf16.msra.mxu1 %v1563_v28  ;;  %v1627_v13 = vld [vmem:[%s2393_s1 + $0x1c] ss:$12 sps:$4 sm:$0xff]   ;;  %v1059_v18 = vld [vmem:[%s2394_s2 + $0x20] sm:$0xff]  ;;  %v1061_v24 = vld [vmem:[%s2394_s2 + $0x30] sm:$0xff] }
  0x1c   :  { %553 = vmatprep.subr.bf16.mxu0 %v1564_v29  ;;  %699 = vmatprep.subr.bf16.mxu1 %v1566_v30  ;;  %v1638_v15 = vld [vmem:[%s2392_s0 + $0x22c] ss:$16 sps:$4 sm:$0xff]   ;;  %v1636_v17 = vld [vmem:[%s2392_s0 + $0x228] ss:$16 sps:$4 sm:$0xff]   ;;  %v1630_v21 = vld [vmem:[%s2393_s1 + $0x34] ss:$12 sps:$4 sm:$0xff]  }
  0x1d   :  { %1075 = vperm.xlu1 %1521, %v1057_v2   ;;  %1150 = vperm.xlu0 %1520, %v1136_v10   ;;  %v1629_v20 = vld [vmem:[%s2393_s1 + $0x18] ss:$12 sps:$4 sm:$0xff]   ;;  %v1060_v22 = vld [vmem:[%s2394_s2 + $0x28] sm:$0xff]  ;;  %v1632_v25 = vld [vmem:[%s2393_s1 + $0x30] ss:$12 sps:$4 sm:$0xff]  }
  0x1e   :  { %v1140_v23 = vld [vmem:[%s2395_s3 + $0x28] sm:$0xff]  ;;  %v1062_v27 = vld [vmem:[%s2394_s2 + $0x38] sm:$0xff]  ;;  %v1135_v28 = vld [vmem:[%s2395_s3] sm:$0xff] }
  0x1f   :  { %554 = vmatpush1.bf16.msra.mxu0 %v1568_v31  ;;  %700 = vmatpush1.bf16.msra.mxu1 %v1569_v32  ;;  %v1639_v26 = vld [vmem:[%s2393_s1 + $0x4c] ss:$12 sps:$4 sm:$0xff]   ;;  %v1641_v29 = vld [vmem:[%s2393_s1 + $0x48] ss:$12 sps:$4 sm:$0xff]   ;;  %v1139_v31 = vld [vmem:[%s2395_s3 + $0x20] sm:$0xff] }
  0x20   :  { %555 = vmatprep.subr.bf16.mxu0 %v1570_v33  ;;  %701 = vmatprep.subr.bf16.mxu1 %v1572_v34  ;;  %v1137_v30 = vld [vmem:[%s2395_s3 + $0x10] sm:$0xff]  ;;  %v1643_v33 = vld [vmem:[%s2393_s1 + $0x20] ss:$12 sps:$4 sm:$0xff]   ;;  %v1644_v34 = vld [vmem:[%s2393_s1 + $0x38] ss:$12 sps:$4 sm:$0xff]  }
  0x21   :  { %1080 = vperm.xlu1 %1521, %v1058_v9   ;;  %1160 = vperm.xlu0 %1520, %v1138_v19   ;;  %v1642_v32 = vld [vmem:[%s2393_s1 + $0x8] ss:$12 sps:$4 sm:$0xff]  }
  0x23   :  { %556 = vmatpush1.bf16.msra.mxu0 %v1574_v35  ;;  %702 = vmatpush1.bf16.msra.mxu1 %v1575_v36  ;;  %v1645_v35 = vld [vmem:[%s2393_s1 + $0x50] ss:$12 sps:$4 sm:$0xff]  }
  0x24   :  { %557 = vmatprep.subr.bf16.mxu0 %v1576_v37  ;;  %703 = vmatprep.subr.bf16.mxu1 %v1578_v38 }
  0x25   :  { %1085 = vperm.xlu1 %1521, %v1059_v18   ;;  %1170 = vperm.xlu0 %1520, %v1140_v23  }
  0x27   :  { %558 = vmatpush1.bf16.msra.mxu0 %v1580_v39  ;;  %704 = vmatpush1.bf16.msra.mxu1 %v1581_v40 }
  0x28   :  { %559 = vmatprep.subr.bf16.mxu0 %v1582_v41  ;;  %705 = vmatprep.subr.bf16.mxu1 %v1584_v42 }
  0x29   :  { %1090 = vperm.xlu1 %1521, %v1060_v22  }
  0x2b   :  { %560 = vmatpush1.bf16.msra.mxu0 %v1586_v43  ;;  %706 = vmatpush1.bf16.msra.mxu1 %v1587_v44 }
  0x2c   :  { %561 = vmatprep.subr.bf16.mxu0 %v1588_v45  ;;  %707 = vmatprep.subr.bf16.mxu1 %v1590_v46 }
  0x2d   :  { %1095 = vperm.xlu1 %1521, %v1061_v24  }
  0x2f   :  { %562 = vmatpush1.bf16.msra.mxu0 %v1592_v47  ;;  %708 = vmatpush1.bf16.msra.mxu1 %v1593_v48 }
  0x30   :  { %563 = vmatprep.subr.bf16.mxu0 %v1594_v50  ;;  %709 = vmatprep.subr.bf16.mxu1 %v1596_v51 }
  0x31   :  { %1100 = vperm.xlu1 %1521, %v1062_v27  }
  0x33   :  { %564 = vmatpush1.bf16.msra.mxu0 %v1598_v52  ;;  %710 = vmatpush1.bf16.msra.mxu1 %v1599_v53 }
  0x34   :  { %565 = vmatprep.subr.bf16.mxu0 %v1600_v54  ;;  %711 = vmatprep.subr.bf16.mxu1 %v1602_v55 }
  0x35   :  { %1145 = vperm.xlu1 %1521, %v1135_v28  }
  0x37   :  { %566 = vmatpush1.bf16.msra.mxu0 %v1604_v56  ;;  %712 = vmatpush1.bf16.msra.mxu1 %v1605_v57 }
  0x38   :  { %567 = vmatprep.subr.bf16.mxu0 %v1606_v58  ;;  %713 = vmatprep.subr.bf16.mxu1 %v1608_v59 }
  0x39   :  { %1155 = vperm.xlu1 %1521, %v1137_v30  }
  0x3b   :  { %568 = vmatpush1.bf16.msra.mxu0 %v1610_v60  ;;  %714 = vmatpush1.bf16.msra.mxu1 %v1611_v61 }
  0x3c   :  { %569 = vmatprep.subr.bf16.mxu0 %v1612_v62  ;;  %715 = vmatprep.subr.bf16.mxu1 %v1614_v63 }
  0x3d   :  { %1165 = vperm.xlu1 %1521, %v1139_v31  }
  0x3f   :  { %570 = vmatpush1.bf16.msra.mxu0 %v1616_v3  ;;  %716 = vmatpush1.bf16.msra.mxu1 %v1617_v4 }
  0x40   :  { %612 = vmatprep.subr.bf16.mxu0 %v1623_v6  ;;  %758 = vmatprep.subr.bf16.mxu1 %v1626_v7 }
  0x42   :  { %572 = vmatmul.mubr.bf16.vlgmr.msra.gmra.mrb[0].mxu0 %v1618_v8  ;;  %718 = vmatmul.mubr.bf16.vlgmr.msra.gmra.mrb[0].mxu1 %v1618_v8 }
  0x43   :  { %613 = vmatpush1.bf16.msra.mxu0 %v1621_v11  ;;  %759 = vmatpush1.bf16.msra.mxu1 %v1624_v12 }
  0x44   :  { %581 = vmatprep.mubr.bf16.mxu0 %v1627_v13  ;;  %727 = vmatprep.mubr.bf16.mxu1 %v1627_v13 }
  0x45   :  { %614 = vmatprep.subr.bf16.mxu0 %v1635_v14  ;;  %760 = vmatprep.subr.bf16.mxu1 %v1638_v15 }
  0x47   :  { %615 = vmatpush1.bf16.msra.mxu0 %v1633_v16  ;;  %761 = vmatpush1.bf16.msra.mxu1 %v1636_v17 }
  0x4a   :  { %582 = vmatmul.mubr.bf16.gmra.mrb[4].mxu0 %v1629_v20  ;;  %728 = vmatmul.mubr.bf16.gmra.mrb[4].mxu1 %v1629_v20 }
  0x4b   :  { %591 = vmatprep.mubr.bf16.mxu0 %v1630_v21  ;;  %737 = vmatprep.mubr.bf16.mxu1 %v1630_v21 }
  0x52   :  { %592 = vmatmul.mubr.bf16.gmra.mrb[8].mxu0 %v1632_v25  ;;  %738 = vmatmul.mubr.bf16.gmra.mrb[8].mxu1 %v1632_v25 }
  0x53   :  { %601 = vmatprep.mubr.bf16.mxu0 %v1639_v26  ;;  %747 = vmatprep.mubr.bf16.mxu1 %v1639_v26 }
  0x5a   :  { %602 = vmatmul.mubr.bf16.gmra.mrb[12].mxu0 %v1641_v29  ;;  %748 = vmatmul.mubr.bf16.gmra.mrb[12].mxu1 %v1641_v29 }
  0x5b   :  { %644 = vmatprep.mubr.bf16.mxu0 %v1662_v1  ;;  %790 = vmatprep.mubr.bf16.mxu1 %v1662_v1 }
  0x62   :  { %1447 = vmatmul.mubr.msk.bf16.vlgmr.msra.gmra.mrb[0].mxu0 %vm526_vm0, %v1642_v32  ;;  %1451 = vmatmul.mubr.msk.bf16.vlgmr.msra.gmra.mrb[0].mxu1 %vm526_vm0, %v1642_v32 }
  0x63   :  { %654 = vmatprep.mubr.bf16.mxu0 %v1662_v1  ;;  %800 = vmatprep.mubr.bf16.mxu1 %v1662_v1 }
  0x6a   :  { %1448 = vmatmul.mubr.msk.bf16.gmra.mrb[4].mxu0 %vm526_vm0, %v1643_v33  ;;  %1452 = vmatmul.mubr.msk.bf16.gmra.mrb[4].mxu1 %vm526_vm0, %v1643_v33 }
  0x6b   :  { %664 = vmatprep.mubr.bf16.mxu0 %v1662_v1  ;;  %810 = vmatprep.mubr.bf16.mxu1 %v1662_v1 }
  0x72   :  { %1449 = vmatmul.mubr.msk.bf16.gmra.mrb[8].mxu0 %vm526_vm0, %v1644_v34  ;;  %1453 = vmatmul.mubr.msk.bf16.gmra.mrb[8].mxu1 %vm526_vm0, %v1644_v34 }
  0x73   :  { %674 = vmatprep.mubr.bf16.mxu0 %v1662_v1  ;;  %820 = vmatprep.mubr.bf16.mxu1 %v1662_v1 }
  0x7a   :  { %1450 = vmatmul.mubr.msk.bf16.gmra.mrb[12].mxu0 %vm526_vm0, %v1645_v35  ;;  %1454 = vmatmul.mubr.msk.bf16.gmra.mrb[12].mxu1 %vm526_vm0, %v1645_v35 }
 0x135   :  { %v2000_v36 = vpop.f32.mrb[0].mxu0  ;;  %v2002_v37 = vpop.f32.mrb[0].mxu1 }
 0x136   :  { %v879_v38 = vmul.f32 %v2000_v36, %v2000_v36  ;;  %v2006_v39 = vpop.f32.mrb[1].mxu0  ;;  %v2008_v40 = vpop.f32.mrb[1].mxu1  ;;  %v881_v50 = vmul.f32 %v2002_v37, %v2002_v37 }
 0x137   :  { %v831_v1 = vadd.f32 %v2006_v39, %v2000_v36  ;;  %v880_v41 = vmul.f32 %v2006_v39, %v2006_v39  ;;  %v2014_v42 = vpop.f32.mrb[2].mxu0  ;;  %v2016_v43 = vpop.f32.mrb[2].mxu1  ;;  %v882_v56 = vmul.f32 %v2008_v40, %v2008_v40 }
 0x138   :  { %v883_v44 = vmul.f32 %v2014_v42, %v2014_v42  ;;  %v2020_v45 = vpop.f32.mrb[3].mxu0  ;;  %v2022_v46 = vpop.f32.mrb[3].mxu1  ;;  %v885_v52 = vmul.f32 %v2016_v43, %v2016_v43 }
 0x139   :  { %v836_v47 = vadd.f32 %v2020_v45, %v2014_v42  ;;  %v884_v48 = vmul.f32 %v2020_v45, %v2020_v45  ;;  %v832_v49 = vadd.f32 %v831_v1, %v2002_v37  ;;  %v911_v51 = vadd.f32 %v880_v41, %v879_v38 }
 0x13a   :  { %v886_v60 = vmul.f32 %v2022_v46, %v2022_v46 }
 0x13b   :  { %v833_v53 = vadd.f32 %v832_v49, %v2008_v40  ;;  %v916_v54 = vadd.f32 %v884_v48, %v883_v44  ;;  %v837_v55 = vadd.f32 %v836_v47, %v2016_v43  ;;  %v912_v57 = vadd.f32 %v911_v51, %v881_v50 }
 0x13d   :  { %v2037_v58 = vpop.f32.mrb[4].mxu1  ;;  %834 = vadd.xlane.f32.xlu0 %v833_v53  ;;  %v2039_v59 = vpop.f32.mrb[4].mxu0  ;;  %v917_v61 = vadd.f32 %v916_v54, %v885_v52  ;;  %v838_v62 = vadd.f32 %v837_v55, %v2022_v46  ;;  %v913_v3 = vadd.f32 %v912_v57, %v882_v56 }
 0x13e   :  { %v887_v63 = vmul.f32 %v2039_v59, %v2039_v59  ;;  %v2046_v0 = vpop.f32.mrb[5].mxu0  ;;  %v2048_v2 = vpop.f32.mrb[5].mxu1  ;;  %v889_v15 = vmul.f32 %v2037_v58, %v2037_v58 }
 0x13f   :  { %v841_v4 = vadd.f32 %v2046_v0, %v2039_v59  ;;  %v888_v5 = vmul.f32 %v2046_v0, %v2046_v0  ;;  %v2054_v6 = vpop.f32.mrb[6].mxu0  ;;  %v2056_v7 = vpop.f32.mrb[6].mxu1  ;;  %v918_v8 = vadd.f32 %v917_v61, %v886_v60  ;;  %v890_v21 = vmul.f32 %v2048_v2, %v2048_v2 }
 0x140   :  { %v891_v9 = vmul.f32 %v2054_v6, %v2054_v6  ;;  %v2060_v10 = vpop.f32.mrb[7].mxu0  ;;  %v2062_v11 = vpop.f32.mrb[7].mxu1  ;;  %v893_v17 = vmul.f32 %v2056_v7, %v2056_v7 }
 0x141   :  { %v846_v12 = vadd.f32 %v2060_v10, %v2054_v6  ;;  %v892_v13 = vmul.f32 %v2060_v10, %v2060_v10  ;;  %919 = vadd.xlane.f32.xlu1 %v918_v8  ;;  %839 = vadd.xlane.f32.xlu0 %v838_v62  ;;  %v842_v14 = vadd.f32 %v841_v4, %v2037_v58 }
 0x142   :  { %v921_v16 = vadd.f32 %v888_v5, %v887_v63  ;;  %v894_v26 = vmul.f32 %v2062_v11, %v2062_v11 }
 0x143   :  { %v843_v18 = vadd.f32 %v842_v14, %v2048_v2  ;;  %v847_v19 = vadd.f32 %v846_v12, %v2056_v7  ;;  %v926_v20 = vadd.f32 %v892_v13, %v891_v9 }
 0x144   :  { %v922_v22 = vadd.f32 %v921_v16, %v889_v15 }
 0x145   :  { %v2077_v23 = vpop.f32.mrb[8].mxu1  ;;  %914 = vadd.xlane.f32.xlu0 %v913_v3  ;;  %844 = vadd.xlane.f32.xlu1 %v843_v18  ;;  %v2079_v24 = vpop.f32.mrb[8].mxu0  ;;  %v848_v25 = vadd.f32 %v847_v19, %v2062_v11  ;;  %v927_v27 = vadd.f32 %v926_v20, %v893_v17 }
 0x146   :  { %v895_v28 = vmul.f32 %v2079_v24, %v2079_v24  ;;  %v2086_v29 = vpop.f32.mrb[9].mxu0  ;;  %v2088_v30 = vpop.f32.mrb[9].mxu1  ;;  %v923_v31 = vadd.f32 %v922_v22, %v890_v21  ;;  %v897_v50 = vmul.f32 %v2077_v23, %v2077_v23 }
 0x147   :  { %v851_v32 = vadd.f32 %v2086_v29, %v2079_v24  ;;  %v896_v33 = vmul.f32 %v2086_v29, %v2086_v29  ;;  %v2094_v34 = vpop.f32.mrb[10].mxu0  ;;  %v2096_v35 = vpop.f32.mrb[10].mxu1  ;;  %v928_v38 = vadd.f32 %v927_v27, %v894_v26  ;;  %v898_v56 = vmul.f32 %v2088_v30, %v2088_v30 }
 0x148   :  { %v899_v1 = vmul.f32 %v2094_v34, %v2094_v34  ;;  %v2100_v41 = vpop.f32.mrb[11].mxu0  ;;  %v2102_v44 = vpop.f32.mrb[11].mxu1  ;;  %v901_v52 = vmul.f32 %v2096_v35, %v2096_v35 }
 0x149   :  { %v856_v47 = vadd.f32 %v2100_v41, %v2094_v34  ;;  %v900_v48 = vmul.f32 %v2100_v41, %v2100_v41  ;;  %924 = vadd.xlane.f32.xlu0 %v923_v31  ;;  %849 = vadd.xlane.f32.xlu1 %v848_v25  ;;  %v852_v49 = vadd.f32 %v851_v32, %v2077_v23 }
 0x14a   :  { %v931_v51 = vadd.f32 %v896_v33, %v895_v28  ;;  %v902_v63 = vmul.f32 %v2102_v44, %v2102_v44 }
 0x14b   :  { %v853_v53 = vadd.f32 %v852_v49, %v2088_v30  ;;  %v857_v54 = vadd.f32 %v856_v47, %v2096_v35  ;;  %v936_v55 = vadd.f32 %v900_v48, %v899_v1 }
 0x14c   :  { %v932_v57 = vadd.f32 %v931_v51, %v897_v50  ;;  %v1141_v51 = vld [vmem:[%s2395_s3 + $0x30] sm:$0xff] }
 0x14d   :  { %v2117_v60 = vpop.f32.mrb[12].mxu1  ;;  %929 = vadd.xlane.f32.xlu1 %v928_v38  ;;  %854 = vadd.xlane.f32.xlu0 %v853_v53  ;;  %v2119_v61 = vpop.f32.mrb[12].mxu0  ;;  %v858_v62 = vadd.f32 %v857_v54, %v2102_v44  ;;  %v937_v3 = vadd.f32 %v936_v55, %v901_v52  ;;  %v1142_v52 = vld [vmem:[%s2395_s3 + $0x38] sm:$0xff] }
 0x14e   :  { %v903_v4 = vmul.f32 %v2119_v61, %v2119_v61  ;;  %v2126_v5 = vpop.f32.mrb[13].mxu0  ;;  %v2128_v8 = vpop.f32.mrb[13].mxu1  ;;  %v933_v9 = vadd.f32 %v932_v57, %v898_v56  ;;  %v905_v22 = vmul.f32 %v2117_v60, %v2117_v60 }
 0x14f   :  { %v861_v12 = vadd.f32 %v2126_v5, %v2119_v61  ;;  %v904_v13 = vmul.f32 %v2126_v5, %v2126_v5  ;;  %v2134_v14 = vpop.f32.mrb[14].mxu0  ;;  %v2136_v15 = vpop.f32.mrb[14].mxu1  ;;  %v938_v16 = vadd.f32 %v937_v3, %v902_v63  ;;  %v906_v33 = vmul.f32 %v2128_v8, %v2128_v8 }
 0x150   :  { %v907_v17 = vmul.f32 %v2134_v14, %v2134_v14  ;;  %v2140_v18 = vpop.f32.mrb[15].mxu0  ;;  %v2142_v19 = vpop.f32.mrb[15].mxu1  ;;  %v909_v27 = vmul.f32 %v2136_v15, %v2136_v15 }
 0x151   :  { %v866_v20 = vadd.f32 %v2140_v18, %v2134_v14  ;;  %v908_v21 = vmul.f32 %v2140_v18, %v2140_v18  ;;  %934 = vadd.xlane.f32.xlu0 %v933_v9  ;;  %859 = vadd.xlane.f32.xlu1 %v858_v62  ;;  %v862_v25 = vadd.f32 %v861_v12, %v2117_v60  ;;  %v2166_v53 = vpop.permute.xlu1 %1070  ;;  %v2178_v63 = vpop.permute.xlu0 %1065 }
 0x152   :  { %v941_v26 = vadd.f32 %v904_v13, %v903_v4  ;;  %v910_v1 = vmul.f32 %v2142_v19, %v2142_v19 }
 0x153   :  { %v946_v28 = vadd.f32 %v908_v21, %v907_v17  ;;  %v867_v31 = vadd.f32 %v866_v20, %v2136_v15  ;;  %v863_v32 = vadd.f32 %v862_v25, %v2128_v8 }
 0x154   :  { %v942_v38 = vadd.f32 %v941_v26, %v905_v22 }
 0x155   :  { %939 = vadd.xlane.f32.xlu1 %v938_v16  ;;  %v868_v47 = vadd.f32 %v867_v31, %v2142_v19  ;;  %v947_v48 = vadd.f32 %v946_v28, %v909_v27  ;;  %864 = vadd.xlane.f32.xlu0 %v863_v32  ;;  %v2168_v54 = vpop.permute.xlu1 %1075  ;;  %v2182_v4 = vpop.permute.xlu0 %1150 }
 0x156   :  { %v943_v49 = vadd.f32 %v942_v38, %v906_v33 }
 0x157   :  { %v948_v50 = vadd.f32 %v947_v48, %v910_v1 }
 0x159   :  { %869 = vadd.xlane.f32.xlu1 %v868_v47  ;;  %944 = vadd.xlane.f32.xlu0 %v943_v49  ;;  %v2170_v55 = vpop.permute.xlu1 %1080  ;;  %v2186_v12 = vpop.permute.xlu0 %1160 }
 0x15d   :  { %949 = vadd.xlane.f32.xlu1 %v948_v50  ;;  %v2172_v56 = vpop.permute.xlu1 %1085  ;;  %v2190_v16 = vpop.permute.xlu0 %1170 }
 0x161   :  { %v2174_v57 = vpop.permute.xlu1 %1090 }
 0x165   :  { %v2176_v62 = vpop.permute.xlu1 %1095 }
 0x166   :  { %2399 = vst [vmem:[#allocation2_spill] sm:$0xff] %v2176_v62 }
 0x169   :  { %v2180_v3 = vpop.permute.xlu1 %1100 }
 0x16a   :  { %2400 = vst [vmem:[#allocation3_spill] sm:$0xff] %v2180_v3 }
 0x16d   :  { %v2184_v9 = vpop.permute.xlu1 %1145 }
 0x16e   :  { %1175 = vperm.xlu1 %1521, %v1141_v51  }
 0x16f   :  { %1180 = vperm.xlu0 %1520, %v1142_v52  }
 0x171   :  { %v2188_v13 = vpop.permute.xlu1 %1155 }
 0x175   :  { %v2192_v17 = vpop.permute.xlu1 %1165 }
 0x1ca   :  { %v835_v20 = vpop.xlane.xlu0 %834 }
 0x1cb   :  { %v2194_v25 = vmul.f32 0.001953125, %v835_v20 }
 0x1cd   :  { %v959_v38 = vmul.f32 %v2194_v25, %v2194_v25 }
 0x1ce   :  { %v920_v21 = vpop.xlane.xlu1 %919  ;;  %v840_v22 = vpop.xlane.xlu0 %839 }
 0x1cf   :  { %v872_v26 = vmul.f32 0.001953125, %v840_v22  ;;  %v952_v27 = vmul.f32 0.001953125, %v920_v21 }
 0x1d1   :  { %v960_v28 = vmul.f32 %v872_v26, %v872_v26 }
 0x1d2   :  { %v915_v31 = vpop.xlane.xlu0 %914  ;;  %v845_v32 = vpop.xlane.xlu1 %844 }
 0x1d3   :  { %v968_v33 = vsub.f32 %v952_v27, %v960_v28  ;;  %v951_v1 = vmul.f32 0.001953125, %v915_v31  ;;  %v2198_v47 = vmul.f32 0.001953125, %v845_v32 }
 0x1d5   :  { %v1008_v48 = vadd.f32 1e-05, %v968_v33  ;;  %v967_v49 = vsub.f32 %v951_v1, %v959_v38  ;;  %v961_v51 = vmul.f32 %v2198_v47, %v2198_v47  ;;  %v975_v38 = vsub.f32 %v2000_v36, %v2194_v25 }
 0x1d6   :  { %v925_v50 = vpop.xlane.xlu0 %924  ;;  %v850_v52 = vpop.xlane.xlu1 %849  ;;  %v976_v1 = vsub.f32 %v2006_v39, %v2194_v25 }
 0x1d7   :  { %1646 = vrsqrt.f32 %v1008_v48  ;;  %v1007_v20 = vadd.f32 1e-05, %v967_v49  ;;  %v953_v21 = vmul.f32 0.001953125, %v925_v50  ;;  %v2202_v22 = vmul.f32 0.001953125, %v850_v52 }
 0x1d8   :  { %v977_v48 = vsub.f32 %v2002_v37, %v2194_v25  ;;  %v978_v49 = vsub.f32 %v2008_v40, %v2194_v25  ;;  %v980_v52 = vsub.f32 %v2020_v45, %v872_v26  ;;  %v983_v40 = vsub.f32 %v2039_v59, %v2198_v47 }
 0x1d9   :  { %1648 = vrsqrt.f32 %v1007_v20  ;;  %v969_v27 = vsub.f32 %v953_v21, %v961_v51  ;;  %v962_v31 = vmul.f32 %v2202_v22, %v2202_v22  ;;  %v979_v51 = vsub.f32 %v2014_v42, %v872_v26 }
 0x1da   :  { %v930_v28 = vpop.xlane.xlu1 %929  ;;  %v855_v62 = vpop.xlane.xlu0 %854  ;;  %v982_v20 = vsub.f32 %v2022_v46, %v872_v26  ;;  %v984_v42 = vsub.f32 %v2046_v0, %v2198_v47  ;;  %v986_v45 = vsub.f32 %v2048_v2, %v2198_v47  ;;  %v988_v25 = vsub.f32 %v2060_v10, %v2202_v22 }
 0x1db   :  { %v1009_v3 = vadd.f32 1e-05, %v969_v27  ;;  %v954_v32 = vmul.f32 0.001953125, %v930_v28  ;;  %v2206_v33 = vmul.f32 0.001953125, %v855_v62  ;;  %v981_v62 = vsub.f32 %v2016_v43, %v872_v26 }
 0x1dc   :  { %v985_v43 = vsub.f32 %v2037_v58, %v2198_v47  ;;  %v989_v58 = vsub.f32 %v2056_v7, %v2202_v22  ;;  %v990_v2 = vsub.f32 %v2062_v11, %v2202_v22 }
 0x1dd   :  { %1650 = vrsqrt.f32 %v1009_v3  ;;  %v970_v50 = vsub.f32 %v954_v32, %v962_v31  ;;  %v963_v39 = vmul.f32 %v2206_v33, %v2206_v33  ;;  %v987_v3 = vsub.f32 %v2054_v6, %v2202_v22 }
 0x1de   :  { %v935_v36 = vpop.xlane.xlu0 %934  ;;  %v860_v21 = vpop.xlane.xlu1 %859 }
 0x1df   :  { %v1010_v27 = vadd.f32 1e-05, %v970_v50  ;;  %v955_v37 = vmul.f32 0.001953125, %v935_v36  ;;  %v2222_v28 = vmul.f32 0.001953125, %v860_v21 }
 0x1e1   :  { %v1647_v46 = vpop.eup %1646  ;;  %1652 = vrsqrt.f32 %v1010_v27  ;;  %v971_v26 = vsub.f32 %v955_v37, %v963_v39  ;;  %v2244_v6 = vmul.f32 %v2222_v28, %v2222_v28 }
 0x1e2   :  { %v1027_v31 = vmul.f32 %v1647_v46, %v979_v51  ;;  %v1028_v59 = vmul.f32 %v1647_v46, %v980_v52  ;;  %v1029_v32 = vmul.f32 %v1647_v46, %v981_v62  ;;  %v1030_v50 = vmul.f32 %v1647_v46, %v982_v20 }
 0x1e3   :  { %v1649_v0 = vpop.eup %1648  ;;  %v2240_v47 = vadd.f32 1e-05, %v971_v26 }
 0x1e4   :  { %v1107_v10 = vmul.f32 %v2166_v53, %v1027_v31  ;;  %v1108_v51 = vmul.f32 %v2166_v53, %v1028_v59  ;;  %v1109_v52 = vmul.f32 %v2166_v53, %v1029_v32  ;;  %v1110_v62 = vmul.f32 %v2166_v53, %v1030_v50 }
 0x1e5   :  { %v1023_v20 = vmul.f32 %v1649_v0, %v975_v38  ;;  %v1024_v36 = vmul.f32 %v1649_v0, %v976_v1  ;;  %v1025_v7 = vmul.f32 %v1649_v0, %v977_v48  ;;  %v1026_v21 = vmul.f32 %v1649_v0, %v978_v49  ;;  %v940_v38 = vpop.xlane.xlu1 %939 }
 0x1e6   :  { %v1187_v11 = vadd.f32 %v2182_v4, %v1107_v10  ;;  %v1188_v22 = vadd.f32 %v2182_v4, %v1108_v51  ;;  %v1189_v27 = vadd.f32 %v2182_v4, %v1109_v52  ;;  %v1190_v39 = vadd.f32 %v2182_v4, %v1110_v62 }
 0x1e7   :  { %v1651_v37 = vpop.eup %1650  ;;  %v1103_v46 = vmul.f32 %v2178_v63, %v1023_v20  ;;  %v1104_v26 = vmul.f32 %v2178_v63, %v1024_v36  ;;  %v1105_v31 = vmul.f32 %v2178_v63, %v1025_v7  ;;  %v1106_v53 = vmul.f32 %v2178_v63, %v1026_v21 }
 0x1e8   :  { %v1219_v1 = vmax.f32 %v1187_v11, 0.0  ;;  %v1220_v48 = vmax.f32 %v1188_v22, 0.0  ;;  %v1221_v49 = vmax.f32 %v1189_v27, 0.0  ;;  %v1222_v59 = vmax.f32 %v1190_v39, 0.0  ;;  %v865_v11 = vpop.xlane.xlu0 %864 }
 0x1e9   :  { %v1183_v32 = vadd.f32 %v2184_v9, %v1103_v46  ;;  %v1184_v50 = vadd.f32 %v2184_v9, %v1104_v26  ;;  %v1185_v4 = vadd.f32 %v2184_v9, %v1105_v31  ;;  %v1186_v0 = vadd.f32 %v2184_v9, %v1106_v53  ;;  %v870_v31 = vpop.xlane.xlu1 %869 }
 0x1ea   :  { %v1473_v10 = vpack.c.bf16 %v1220_v48, %v1219_v1  ;;  %v1474_v51 = vpack.c.bf16 %v1222_v59, %v1221_v49  ;;  %v1031_v52 = vmul.f32 %v1651_v37, %v983_v40  ;;  %v1032_v62 = vmul.f32 %v1651_v37, %v984_v42 }
 0x1eb   :  { %v1653_v20 = vpop.eup %1652  ;;  %v1215_v36 = vmax.f32 %v1183_v32, 0.0  ;;  %v1216_v63 = vmax.f32 %v1184_v50, 0.0  ;;  %v1217_v7 = vmax.f32 %v1185_v4, 0.0  ;;  %v1218_v21 = vmax.f32 %v1186_v0, 0.0 }
 0x1ec   :  { %1345 = vst [vmem:[%s2396_s4 + $0x10] sm:$0xff] %v1473_v10  ;;  %1346 = vst [vmem:[%s2396_s4 + $0x18] sm:$0xff] %v1474_v51  ;;  %v1033_v22 = vmul.f32 %v1651_v37, %v985_v43  ;;  %v1034_v9 = vmul.f32 %v1651_v37, %v986_v45  ;;  %v1111_v27 = vmul.f32 %v2168_v54, %v1031_v52  ;;  %1654 = vrsqrt.f32 %v2240_v47 }
 0x1ed   :  { %v1112_v40 = vmul.f32 %v2168_v54, %v1032_v62  ;;  %v1471_v42 = vpack.c.bf16 %v1216_v63, %v1215_v36  ;;  %v1472_v39 = vpack.c.bf16 %v1218_v21, %v1217_v7  ;;  %v1035_v46 = vmul.f32 %v1653_v20, %v987_v3  ;;  %v950_v63 = vpop.xlane.xlu1 %949 }
 0x1ee   :  { %v1036_v26 = vmul.f32 %v1653_v20, %v988_v25  ;;  %v1113_v53 = vmul.f32 %v2168_v54, %v1033_v22  ;;  %v1114_v1 = vmul.f32 %v2168_v54, %v1034_v9  ;;  %v1191_v48 = vadd.f32 %v2188_v13, %v1111_v27 }
 0x1ef   :  { %v1192_v49 = vadd.f32 %v2188_v13, %v1112_v40  ;;  %1343 = vst [vmem:[%s2396_s4] sm:$0xff] %v1471_v42  ;;  %1344 = vst [vmem:[%s2396_s4 + $0x8] sm:$0xff] %v1472_v39  ;;  %v1037_v43 = vmul.f32 %v1653_v20, %v989_v58  ;;  %v1038_v45 = vmul.f32 %v1653_v20, %v990_v2  ;;  %v945_v58 = vpop.xlane.xlu0 %944  ;;  %v2294_v21 = vmul.f32 0.001953125, %v865_v11 }
 0x1f0   :  { %v1115_v3 = vmul.f32 %v2170_v55, %v1035_v46  ;;  %v1116_v25 = vmul.f32 %v2170_v55, %v1036_v26  ;;  %v1193_v54 = vadd.f32 %v2188_v13, %v1113_v53  ;;  %v1194_v37 = vadd.f32 %v2188_v13, %v1114_v1 }
 0x1f1   :  { %v1223_v59 = vmax.f32 %v1191_v48, 0.0  ;;  %v1224_v32 = vmax.f32 %v1192_v49, 0.0  ;;  %v1117_v50 = vmul.f32 %v2170_v55, %v1037_v43  ;;  %v1118_v4 = vmul.f32 %v2170_v55, %v1038_v45 }
 0x1f2   :  { %v1195_v0 = vadd.f32 %v2186_v12, %v1115_v3  ;;  %v1196_v10 = vadd.f32 %v2186_v12, %v1116_v25  ;;  %v1225_v2 = vmax.f32 %v1193_v54, 0.0  ;;  %v1226_v51 = vmax.f32 %v1194_v37, 0.0 }
 0x1f3   :  { %v1475_v52 = vpack.c.bf16 %v1224_v32, %v1223_v59  ;;  %v1197_v62 = vadd.f32 %v2186_v12, %v1117_v50  ;;  %v1198_v13 = vadd.f32 %v2186_v12, %v1118_v4  ;;  %v956_v55 = vmul.f32 0.001953125, %v940_v38 }
 0x1f4   :  { %v1227_v20 = vmax.f32 %v1195_v0, 0.0  ;;  %v1228_v36 = vmax.f32 %v1196_v10, 0.0  ;;  %v1476_v7 = vpack.c.bf16 %v1226_v51, %v1225_v2  ;;  %v957_v22 = vmul.f32 0.001953125, %v945_v58 }
 0x1f5   :  { %1347 = vst [vmem:[%s2396_s4 + $0x20] sm:$0xff] %v1475_v52  ;;  %v1229_v9 = vmax.f32 %v1197_v62, 0.0  ;;  %v1230_v27 = vmax.f32 %v1198_v13, 0.0  ;;  %v2296_v47 = vmul.f32 0.001953125, %v870_v31  ;;  %v972_v12 = vsub.f32 %v956_v55, %v2244_v6 }
 0x1f6   :  { %v1477_v40 = vpack.c.bf16 %v1228_v36, %v1227_v20  ;;  %1348 = vst [vmem:[%s2396_s4 + $0x28] sm:$0xff] %v1476_v7  ;;  %v965_v42 = vmul.f32 %v2294_v21, %v2294_v21  ;;  %v958_v39 = vmul.f32 0.001953125, %v950_v63  ;;  %v991_v6 = vsub.f32 %v2079_v24, %v2206_v33  ;;  %v1655_v45 = vpop.eup %1654 }
 0x1f7   :  { %v1478_v46 = vpack.c.bf16 %v1230_v27, %v1229_v9  ;;  %v966_v38 = vmul.f32 %v2296_v47, %v2296_v47  ;;  %v1012_v11 = vadd.f32 1e-05, %v972_v12  ;;  %v992_v1 = vsub.f32 %v2086_v29, %v2206_v33 }
 0x1f8   :  { %1349 = vst [vmem:[%s2396_s4 + $0x30] sm:$0xff] %v1477_v40  ;;  %v973_v26 = vsub.f32 %v957_v22, %v965_v42  ;;  %v993_v48 = vsub.f32 %v2077_v23, %v2206_v33  ;;  %v994_v49 = vsub.f32 %v2088_v30, %v2206_v33  ;;  %v1039_v3 = vmul.f32 %v1655_v45, %v991_v6  ;;  %v2401_v6 = vld [vmem:[#allocation3_spill] sm:$0xff] }
 0x1f9   :  { %1350 = vst [vmem:[%s2396_s4 + $0x38] sm:$0xff] %v1478_v46  ;;  %v974_v31 = vsub.f32 %v958_v39, %v966_v38  ;;  %1656 = vrsqrt.f32 %v1012_v11  ;;  %v1040_v25 = vmul.f32 %v1655_v45, %v992_v1  ;;  %v995_v23 = vsub.f32 %v2094_v34, %v2222_v28 }
 0x1fa   :  { %v1013_v53 = vadd.f32 1e-05, %v973_v26  ;;  %v1041_v54 = vmul.f32 %v1655_v45, %v993_v48  ;;  %v1042_v37 = vmul.f32 %v1655_v45, %v994_v49  ;;  %v1119_v24 = vmul.f32 %v2172_v56, %v1039_v3  ;;  %v1181_v49 = vpop.permute.xlu0 %1180 }
 0x1fb   :  { %v1014_v43 = vadd.f32 1e-05, %v974_v31  ;;  %v1120_v59 = vmul.f32 %v2172_v56, %v1040_v25  ;;  %v996_v30 = vsub.f32 %v2100_v41, %v2222_v28  ;;  %v997_v10 = vsub.f32 %v2096_v35, %v2222_v28 }
 0x1fc   :  { %1658 = vrsqrt.f32 %v1013_v53  ;;  %v1121_v29 = vmul.f32 %v2172_v56, %v1041_v54  ;;  %v1122_v32 = vmul.f32 %v2172_v56, %v1042_v37  ;;  %v1199_v33 = vadd.f32 %v2192_v17, %v1119_v24  ;;  %v2402_v37 = vld [vmem:[#allocation2_spill] sm:$0xff] }
 0x1fd   :  { %1660 = vrsqrt.f32 %v1014_v43  ;;  %v1200_v50 = vadd.f32 %v2192_v17, %v1120_v59  ;;  %v998_v56 = vsub.f32 %v2102_v44, %v2222_v28  ;;  %v1003_v34 = vsub.f32 %v2134_v14, %v2296_v47 }
 0x1fe   :  { %v1201_v4 = vadd.f32 %v2192_v17, %v1121_v29  ;;  %v1202_v0 = vadd.f32 %v2192_v17, %v1122_v32  ;;  %v999_v41 = vsub.f32 %v2119_v61, %v2294_v21  ;;  %v1231_v58 = vmax.f32 %v1199_v33, 0.0 }
 0x1ff   :  { %v1232_v2 = vmax.f32 %v1200_v50, 0.0  ;;  %v1004_v17 = vsub.f32 %v2140_v18, %v2296_v47  ;;  %v1005_v35 = vsub.f32 %v2136_v15, %v2296_v47  ;;  %v1006_v44 = vsub.f32 %v2142_v19, %v2296_v47 }
 0x200   :  { %v1233_v51 = vmax.f32 %v1201_v4, 0.0  ;;  %v1234_v52 = vmax.f32 %v1202_v0, 0.0  ;;  %v1000_v14 = vsub.f32 %v2126_v5, %v2294_v21  ;;  %v1001_v55 = vsub.f32 %v2117_v60, %v2294_v21  ;;  %v1176_v4 = vpop.permute.xlu1 %1175 }
 0x201   :  { %v1479_v28 = vpack.c.bf16 %v1232_v2, %v1231_v58  ;;  %v1002_v18 = vsub.f32 %v2128_v8, %v2294_v21 }
 0x202   :  { %v1480_v13 = vpack.c.bf16 %v1234_v52, %v1233_v51 }
 0x203   :  { %v1657_v62 = vpop.eup %1656  ;;  %1351 = vst [vmem:[%s2396_s4 + $0x40] sm:$0xff] %v1479_v28 }
 0x204   :  { %v1043_v61 = vmul.f32 %v1657_v62, %v995_v23  ;;  %v1044_v20 = vmul.f32 %v1657_v62, %v996_v30  ;;  %v1045_v63 = vmul.f32 %v1657_v62, %v997_v10  ;;  %v1046_v7 = vmul.f32 %v1657_v62, %v998_v56  ;;  %1352 = vst [vmem:[%s2396_s4 + $0x48] sm:$0xff] %v1480_v13 }
 0x206   :  { %v1659_v36 = vpop.eup %1658  ;;  %v1123_v5 = vmul.f32 %v2174_v57, %v1043_v61  ;;  %v1124_v15 = vmul.f32 %v2174_v57, %v1044_v20  ;;  %v1125_v60 = vmul.f32 %v2174_v57, %v1045_v63  ;;  %v1126_v27 = vmul.f32 %v2174_v57, %v1046_v7 }
 0x207   :  { %v1047_v19 = vmul.f32 %v1659_v36, %v999_v41  ;;  %v1048_v22 = vmul.f32 %v1659_v36, %v1000_v14  ;;  %v1661_v9 = vpop.eup %1660  ;;  %v1049_v8 = vmul.f32 %v1659_v36, %v1001_v55  ;;  %v1050_v21 = vmul.f32 %v1659_v36, %v1002_v18 }
 0x208   :  { %v1203_v40 = vadd.f32 %v2190_v16, %v1123_v5  ;;  %v1204_v47 = vadd.f32 %v2190_v16, %v1124_v15  ;;  %v1051_v12 = vmul.f32 %v1661_v9, %v1003_v34  ;;  %v1052_v42 = vmul.f32 %v1661_v9, %v1004_v17 }
 0x209   :  { %v1205_v39 = vadd.f32 %v2190_v16, %v1125_v60  ;;  %v1206_v46 = vadd.f32 %v2190_v16, %v1126_v27  ;;  %v1053_v38 = vmul.f32 %v1661_v9, %v1005_v35  ;;  %v1054_v11 = vmul.f32 %v1661_v9, %v1006_v44 }
 0x20a   :  { %v1235_v26 = vmax.f32 %v1203_v40, 0.0  ;;  %v1236_v31 = vmax.f32 %v1204_v47, 0.0  ;;  %v1131_v53 = vmul.f32 %v2401_v6, %v1051_v12  ;;  %v1132_v57 = vmul.f32 %v2401_v6, %v1052_v42 }
 0x20b   :  { %v1237_v1 = vmax.f32 %v1205_v39, 0.0  ;;  %v1238_v48 = vmax.f32 %v1206_v46, 0.0  ;;  %v1133_v43 = vmul.f32 %v2401_v6, %v1053_v38  ;;  %v1134_v45 = vmul.f32 %v2401_v6, %v1054_v11 }
 0x20c   :  { %v1481_v3 = vpack.c.bf16 %v1236_v31, %v1235_v26  ;;  %v1211_v25 = vadd.f32 %v1181_v49, %v1131_v53  ;;  %v1212_v54 = vadd.f32 %v1181_v49, %v1132_v57  ;;  %v1127_v16 = vmul.f32 %v2402_v37, %v1047_v19 }
 0x20d   :  { %v1482_v24 = vpack.c.bf16 %v1238_v48, %v1237_v1  ;;  %v1213_v59 = vadd.f32 %v1181_v49, %v1133_v43  ;;  %v1214_v29 = vadd.f32 %v1181_v49, %v1134_v45  ;;  %v1128_v32 = vmul.f32 %v2402_v37, %v1048_v22 }
 0x20e   :  { %1353 = vst [vmem:[%s2396_s4 + $0x50] sm:$0xff] %v1481_v3  ;;  %v1243_v23 = vmax.f32 %v1211_v25, 0.0  ;;  %v1244_v30 = vmax.f32 %v1212_v54, 0.0  ;;  %v1129_v33 = vmul.f32 %v2402_v37, %v1049_v8  ;;  %v1130_v50 = vmul.f32 %v2402_v37, %v1050_v21 }
 0x20f   :  { %1354 = vst [vmem:[%s2396_s4 + $0x58] sm:$0xff] %v1482_v24  ;;  %v1245_v0 = vmax.f32 %v1213_v59, 0.0  ;;  %v1246_v10 = vmax.f32 %v1214_v29, 0.0  ;;  %v1207_v56 = vadd.f32 %v1176_v4, %v1127_v16  ;;  %v1208_v34 = vadd.f32 %v1176_v4, %v1128_v32 }
 0x210   :  { %v1485_v41 = vpack.c.bf16 %v1244_v30, %v1243_v23  ;;  %v1209_v58 = vadd.f32 %v1176_v4, %v1129_v33  ;;  %v1210_v2 = vadd.f32 %v1176_v4, %v1130_v50 }
 0x211   :  { %v1486_v51 = vpack.c.bf16 %v1246_v10, %v1245_v0  ;;  %v1239_v52 = vmax.f32 %v1207_v56, 0.0  ;;  %v1240_v62 = vmax.f32 %v1208_v34, 0.0 }
 0x212   :  { %1357 = vst [vmem:[%s2396_s4 + $0x70] sm:$0xff] %v1485_v41  ;;  %v1241_v17 = vmax.f32 %v1209_v58, 0.0  ;;  %v1242_v35 = vmax.f32 %v1210_v2, 0.0 }
 0x213   :  { %1358 = vst [vmem:[%s2396_s4 + $0x78] sm:$0xff] %v1486_v51  ;;  %v1483_v44 = vpack.c.bf16 %v1240_v62, %v1239_v52 }
 0x214   :  { %v1484_v14 = vpack.c.bf16 %v1242_v35, %v1241_v17 }
 0x215   :  { %1355 = vst [vmem:[%s2396_s4 + $0x60] sm:$0xff] %v1483_v44 }
 0x216   :  { %1356 = vst [vmem:[%s2396_s4 + $0x68] sm:$0xff] %v1484_v14 }

// kernel: reference_encoder_forward.5
= control target key start
LH: loop header
LB: loop body
LE: loop exit
PB: predicated region body
PF: predicated region fallthrough
CT: control target
= control target key end

     0   :  { %vm567_vm0 = vcmask 523264   ;;  %s8131_s0 = inlined_call_operand.vmem [shape: bf16[128,576], index: 0, kind: input, shape index: {}]   ;;  %s8132_s1 = inlined_call_operand.vmem [shape: bf16[576,128], index: 1, kind: input, shape index: {}]   ;;  %s8133_s2 = inlined_call_operand.vmem [shape: f32[1,128], index: 2, kind: input, shape index: {}]   ;;  %s8134_s3 = inlined_call_operand.vmem [shape: f32[1,128], index: 3, kind: input, shape index: {}]   ;;  %s8135_s4 = inlined_call_operand.vmem [shape: bf16[8,128,384], index: 4, kind: input, shape index: {}]   ;;  %s8136_s5 = inlined_call_operand.vmem [shape: f32[1,384], index: 5, kind: input, shape index: {}]   ;;  %s8137_s6 = inlined_call_operand.vmem [shape: bf16[128,384], index: 6, kind: input, shape index: {}]   ;;  %s8138_s7 = inlined_call_operand.vmem [shape: f32[1,384], index: 7, kind: input, shape index: {}]   ;;  %s8139_s8 = inlined_call_operand.hbm [shape: f32[2,128], index: 8, kind: output, shape index: {}]  }
   0x1   :  { %v5661_v0 = vld [vmem:[%s8132_s1 + $0x40] sm:$0xff]   ;;  %v5665_v4 = vld [vmem:[%s8132_s1 + $0x48] sm:$0xff]   ;;  %v5669_v8 = vld [vmem:[%s8132_s1 + $0x50] sm:$0xff]  }
   0x2   :  { %v5662_v1 = vld [vmem:[%s8132_s1 + $0xc0] sm:$0xff]   ;;  %5001 = vmatprep.subr.bf16.mxu0 %v5661_v0  ;;  %v5666_v5 = vld [vmem:[%s8132_s1 + $0xc8] sm:$0xff]   ;;  %v5670_v9 = vld [vmem:[%s8132_s1 + $0xd0] sm:$0xff]  }
   0x3   :  { %v5663_v2 = vld [vmem:[%s8132_s1] sm:$0xff]   ;;  %5065 = vmatprep.subr.bf16.mxu1 %v5662_v1  ;;  %v5667_v6 = vld [vmem:[%s8132_s1 + $0x8] sm:$0xff]   ;;  %v5671_v10 = vld [vmem:[%s8132_s1 + $0x10] sm:$0xff]  }
   0x4   :  { %v5664_v3 = vld [vmem:[%s8132_s1 + $0x80] sm:$0xff]   ;;  %5002 = vmatpush3.bf16.msra.mxu0 %v5663_v2  ;;  %v5668_v7 = vld [vmem:[%s8132_s1 + $0x88] sm:$0xff]   ;;  %v5672_v11 = vld [vmem:[%s8132_s1 + $0x90] sm:$0xff]  }
   0x5   :  { %5066 = vmatpush3.bf16.msra.mxu1 %v5664_v3  ;;  %5003 = vmatprep.subr.bf16.mxu0 %v5665_v4  ;;  %v5673_v12 = vld [vmem:[%s8132_s1 + $0x58] sm:$0xff]   ;;  %v5677_v16 = vld [vmem:[%s8132_s1 + $0x60] sm:$0xff]   ;;  %v5681_v20 = vld [vmem:[%s8132_s1 + $0x68] sm:$0xff]  }
   0x6   :  { %5067 = vmatprep.subr.bf16.mxu1 %v5666_v5  ;;  %v5674_v13 = vld [vmem:[%s8132_s1 + $0xd8] sm:$0xff]   ;;  %v5678_v17 = vld [vmem:[%s8132_s1 + $0xe0] sm:$0xff]   ;;  %v5682_v21 = vld [vmem:[%s8132_s1 + $0xe8] sm:$0xff]  }
   0x7   :  { %v5675_v14 = vld [vmem:[%s8132_s1 + $0x18] sm:$0xff]   ;;  %v5679_v18 = vld [vmem:[%s8132_s1 + $0x20] sm:$0xff]   ;;  %v5683_v22 = vld [vmem:[%s8132_s1 + $0x28] sm:$0xff]  }
   0x8   :  { %5004 = vmatpush3.bf16.msra.mxu0 %v5667_v6  ;;  %v5676_v15 = vld [vmem:[%s8132_s1 + $0x98] sm:$0xff]   ;;  %v5680_v19 = vld [vmem:[%s8132_s1 + $0xa0] sm:$0xff]   ;;  %v5684_v23 = vld [vmem:[%s8132_s1 + $0xa8] sm:$0xff]  }
   0x9   :  { %5068 = vmatpush3.bf16.msra.mxu1 %v5668_v7  ;;  %5005 = vmatprep.subr.bf16.mxu0 %v5669_v8  ;;  %v5685_v24 = vld [vmem:[%s8132_s1 + $0x70] sm:$0xff]   ;;  %v5689_v28 = vld [vmem:[%s8132_s1 + $0x78] sm:$0xff]   ;;  %v5698_v35 = vld [vmem:[%s8131_s0 + $0xc] ss:$20 sps:$4 sm:$0xff]  }
   0xa   :  { %5069 = vmatprep.subr.bf16.mxu1 %v5670_v9  ;;  %v5686_v25 = vld [vmem:[%s8132_s1 + $0xf0] sm:$0xff]   ;;  %v5690_v29 = vld [vmem:[%s8132_s1 + $0xf8] sm:$0xff]   ;;  %v5699_v36 = vld [vmem:[%s8132_s1 + $0x100] sm:$0xff]   ;;  %721 = vmatprep.mubr.bf16.mxu1 %v5698_v35 }
   0xb   :  { %v5687_v26 = vld [vmem:[%s8132_s1 + $0x30] sm:$0xff]   ;;  %v5691_v30 = vld [vmem:[%s8132_s1 + $0x38] sm:$0xff]   ;;  %v5700_v37 = vld [vmem:[%s8131_s0 + $0x2c] ss:$20 sps:$4 sm:$0xff]  }
   0xc   :  { %5006 = vmatpush3.bf16.msra.mxu0 %v5671_v10  ;;  %v5688_v27 = vld [vmem:[%s8132_s1 + $0xb0] sm:$0xff]   ;;  %v5692_v31 = vld [vmem:[%s8132_s1 + $0xb8] sm:$0xff]   ;;  %v5712_v42 = vld [vmem:[%s8132_s1 + $0x108] sm:$0xff]  }
   0xd   :  { %5070 = vmatpush3.bf16.msra.mxu1 %v5672_v11  ;;  %5007 = vmatprep.subr.bf16.mxu0 %v5673_v12  ;;  %v5693_v32 = vld [vmem:[%s8131_s0] ss:$20 sps:$4 sm:$0xff]   ;;  %v5695_v33 = vld [vmem:[%s8131_s0 + $0x4] ss:$20 sps:$4 sm:$0xff]   ;;  %v5696_v34 = vld [vmem:[%s8131_s0 + $0x8] ss:$20 sps:$4 sm:$0xff]  }
   0xe   :  { %5071 = vmatprep.subr.bf16.mxu1 %v5674_v13  ;;  %624 = vmatprep.mubr.bf16.mxu0 %v5695_v33  ;;  %v5702_v38 = vld [vmem:[%s8131_s0 + $0x34] ss:$20 sps:$4 sm:$0xff]   ;;  %v5705_v40 = vld [vmem:[%s8131_s0 + $0x30] ss:$20 sps:$4 sm:$0xff]   ;;  %v5711_v45 = vld [vmem:[%s8131_s0 + $0x58] ss:$20 sps:$4 sm:$0xff]  }
   0xf   :  { %v5704_v39 = vld [vmem:[%s8131_s0 + $0x28] ss:$20 sps:$4 sm:$0xff]   ;;  %v5710_v44 = vld [vmem:[%s8131_s0 + $0x50] ss:$20 sps:$4 sm:$0xff]   ;;  %v5717_v50 = vld [vmem:[%s8131_s0 + $0x78] ss:$20 sps:$4 sm:$0xff]  }
  0x10   :  { %5008 = vmatpush3.bf16.msra.mxu0 %v5675_v14  ;;  %v5706_v41 = vld [vmem:[%s8131_s0 + $0x54] ss:$20 sps:$4 sm:$0xff]   ;;  %v5708_v43 = vld [vmem:[%s8131_s0 + $0x5c] ss:$20 sps:$4 sm:$0xff]   ;;  %v5715_v48 = vld [vmem:[%s8131_s0 + $0x84] ss:$20 sps:$4 sm:$0xff]  }
  0x11   :  { %5072 = vmatpush3.bf16.msra.mxu1 %v5676_v15  ;;  %5009 = vmatprep.subr.bf16.mxu0 %v5677_v16  ;;  %v5725_v46 = vld [vmem:[%s8132_s1 + $0x110] sm:$0xff]   ;;  %v5738_v49 = vld [vmem:[%s8132_s1 + $0x118] sm:$0xff]   ;;  %v5721_v53 = vld [vmem:[%s8131_s0 + $0xac] ss:$20 sps:$4 sm:$0xff]  }
  0x12   :  { %5073 = vmatprep.subr.bf16.mxu1 %v5678_v17  ;;  %v5713_v47 = vld [vmem:[%s8131_s0 + $0x7c] ss:$20 sps:$4 sm:$0xff]   ;;  %v5718_v51 = vld [vmem:[%s8131_s0 + $0x80] ss:$20 sps:$4 sm:$0xff]   ;;  %v5719_v52 = vld [vmem:[%s8131_s0 + $0xa4] ss:$20 sps:$4 sm:$0xff]  }
  0x13   :  { %v5723_v54 = vld [vmem:[%s8131_s0 + $0xa0] ss:$20 sps:$4 sm:$0xff]   ;;  %v5724_v55 = vld [vmem:[%s8131_s0 + $0xa8] ss:$20 sps:$4 sm:$0xff]   ;;  %v5731_v59 = vld [vmem:[%s8131_s0 + $0xd0] ss:$20 sps:$4 sm:$0xff]  }
  0x14   :  { %5010 = vmatpush3.bf16.msra.mxu0 %v5679_v18  ;;  %v5726_v56 = vld [vmem:[%s8131_s0 + $0xcc] ss:$20 sps:$4 sm:$0xff]   ;;  %v5728_v57 = vld [vmem:[%s8131_s0 + $0xd4] ss:$20 sps:$4 sm:$0xff]   ;;  %v5734_v61 = vld [vmem:[%s8131_s0 + $0xfc] ss:$20 sps:$4 sm:$0xff]  }
  0x15   :  { %5074 = vmatpush3.bf16.msra.mxu1 %v5680_v19  ;;  %5011 = vmatprep.subr.bf16.mxu0 %v5681_v20  ;;  %v5730_v58 = vld [vmem:[%s8131_s0 + $0xc8] ss:$20 sps:$4 sm:$0xff]   ;;  %v5736_v62 = vld [vmem:[%s8131_s0 + $0xf0] ss:$20 sps:$4 sm:$0xff]   ;;  %v5737_v63 = vld [vmem:[%s8131_s0 + $0xf8] ss:$20 sps:$4 sm:$0xff]  }
  0x16   :  { %5075 = vmatprep.subr.bf16.mxu1 %v5682_v21  ;;  %v5732_v60 = vld [vmem:[%s8131_s0 + $0xf4] ss:$20 sps:$4 sm:$0xff]   ;;  %v5739_v0 = vld [vmem:[%s8131_s0 + $0x11c] ss:$20 sps:$4 sm:$0xff]   ;;  %v5741_v1 = vld [vmem:[%s8131_s0 + $0x124] ss:$20 sps:$4 sm:$0xff]  }
  0x17   :  { %v5743_v2 = vld [vmem:[%s8131_s0 + $0x118] ss:$20 sps:$4 sm:$0xff]   ;;  %v5744_v3 = vld [vmem:[%s8131_s0 + $0x120] ss:$20 sps:$4 sm:$0xff]   ;;  %v5745_v4 = vld [vmem:[%s8131_s0 + $0x10] ss:$20 sps:$4 sm:$0xff]  }
  0x18   :  { %5012 = vmatpush3.bf16.msra.mxu0 %v5683_v22  ;;  %v5746_v5 = vld [vmem:[%s8131_s0 + $0x38] ss:$20 sps:$4 sm:$0xff]   ;;  %v5747_v6 = vld [vmem:[%s8131_s0 + $0x60] ss:$20 sps:$4 sm:$0xff]   ;;  %v5748_v7 = vld [vmem:[%s8131_s0 + $0x88] ss:$20 sps:$4 sm:$0xff]  }
  0x19   :  { %5076 = vmatpush3.bf16.msra.mxu1 %v5684_v23  ;;  %5013 = vmatprep.subr.bf16.mxu0 %v5685_v24  ;;  %v5749_v8 = vld [vmem:[%s8131_s0 + $0xb0] ss:$20 sps:$4 sm:$0xff]   ;;  %v5750_v9 = vld [vmem:[%s8131_s0 + $0xd8] ss:$20 sps:$4 sm:$0xff]   ;;  %v5751_v10 = vld [vmem:[%s8131_s0 + $0x100] ss:$20 sps:$4 sm:$0xff]  }
  0x1a   :  { %5077 = vmatprep.subr.bf16.mxu1 %v5686_v25  ;;  %v5752_v11 = vld [vmem:[%s8131_s0 + $0x128] ss:$20 sps:$4 sm:$0xff]  }
  0x1c   :  { %5014 = vmatpush3.bf16.msra.mxu0 %v5687_v26 }
  0x1d   :  { %5078 = vmatpush3.bf16.msra.mxu1 %v5688_v27  ;;  %5015 = vmatprep.subr.bf16.mxu0 %v5689_v28 }
  0x1e   :  { %5079 = vmatprep.subr.bf16.mxu1 %v5690_v29 }
  0x20   :  { %5016 = vmatpush3.bf16.msra.mxu0 %v5691_v30 }
  0x21   :  { %5080 = vmatpush3.bf16.msra.mxu1 %v5692_v31  ;;  %5285 = vmatprep.subr.bf16.mxu0 %v5699_v36 }
  0x23   :  { %625 = vmatmul.mubr.bf16.vlgmr.msra.gmra.mrb[0].mxu0 %v5693_v32 }
  0x24   :  { %722 = vmatmul.mubr.bf16.vlgmr.msra.gmra.mrb[0].mxu1 %v5696_v34  ;;  %5286 = vmatpush3.bf16.msra.mxu0 %v5699_v36 }
  0x25   :  { %632 = vmatprep.mubr.bf16.mxu0 %v5700_v37  ;;  %729 = vmatprep.mubr.bf16.mxu1 %v5702_v38 }
  0x26   :  { %5287 = vmatprep.subr.bf16.mxu0 %v5712_v42 }
  0x28   :  { %5288 = vmatpush3.bf16.msra.mxu0 %v5712_v42 }
  0x29   :  { %5289 = vmatprep.subr.bf16.mxu0 %v5725_v46 }
  0x2b   :  { %633 = vmatmul.mubr.bf16.gmra.mrb[4].mxu0 %v5704_v39 }
  0x2c   :  { %730 = vmatmul.mubr.bf16.gmra.mrb[4].mxu1 %v5705_v40  ;;  %640 = vmatprep.mubr.bf16.mxu0 %v5706_v41 }
  0x2d   :  { %737 = vmatprep.mubr.bf16.mxu1 %v5708_v43  ;;  %5290 = vmatpush3.bf16.msra.mxu0 %v5725_v46 }
  0x2e   :  { %5291 = vmatprep.subr.bf16.mxu0 %v5738_v49 }
  0x31   :  { %5292 = vmatpush3.bf16.msra.mxu0 %v5738_v49 }
  0x33   :  { %641 = vmatmul.mubr.bf16.gmra.mrb[8].mxu0 %v5710_v44 }
  0x34   :  { %738 = vmatmul.mubr.bf16.gmra.mrb[8].mxu1 %v5711_v45  ;;  %648 = vmatprep.mubr.bf16.mxu0 %v5713_v47 }
  0x35   :  { %745 = vmatprep.mubr.bf16.mxu1 %v5715_v48 }
  0x3b   :  { %649 = vmatmul.mubr.bf16.gmra.mrb[12].mxu0 %v5717_v50 }
  0x3c   :  { %746 = vmatmul.mubr.bf16.gmra.mrb[12].mxu1 %v5718_v51  ;;  %656 = vmatprep.mubr.bf16.mxu0 %v5719_v52 }
  0x3d   :  { %753 = vmatprep.mubr.bf16.mxu1 %v5721_v53 }
  0x43   :  { %657 = vmatmul.mubr.bf16.gmra.mrb[16].mxu0 %v5723_v54 }
  0x44   :  { %754 = vmatmul.mubr.bf16.gmra.mrb[16].mxu1 %v5724_v55  ;;  %664 = vmatprep.mubr.bf16.mxu0 %v5726_v56 }
  0x45   :  { %761 = vmatprep.mubr.bf16.mxu1 %v5728_v57 }
  0x4b   :  { %665 = vmatmul.mubr.bf16.gmra.mrb[20].mxu0 %v5730_v58 }
  0x4c   :  { %762 = vmatmul.mubr.bf16.gmra.mrb[20].mxu1 %v5731_v59  ;;  %672 = vmatprep.mubr.bf16.mxu0 %v5732_v60 }
  0x4d   :  { %769 = vmatprep.mubr.bf16.mxu1 %v5734_v61 }
  0x53   :  { %673 = vmatmul.mubr.bf16.gmra.mrb[24].mxu0 %v5736_v62 }
  0x54   :  { %770 = vmatmul.mubr.bf16.gmra.mrb[24].mxu1 %v5737_v63  ;;  %680 = vmatprep.mubr.bf16.mxu0 %v5739_v0 }
  0x55   :  { %777 = vmatprep.mubr.bf16.mxu1 %v5741_v1 }
  0x5b   :  { %681 = vmatmul.mubr.bf16.gmra.mrb[28].mxu0 %v5743_v2 }
  0x5c   :  { %778 = vmatmul.mubr.bf16.gmra.mrb[28].mxu1 %v5744_v3  ;;  %5293 = vmatprep.mubr.msk.bf16.mxu0 %vm567_vm0, %v5745_v4 }
  0x63   :  { %5294 = vmatmul.mubr.msk.bf16.vlgmr.msra.gmra.mrb[32].mxu0 %vm567_vm0, %v5746_v5 }
  0x64   :  { %5297 = vmatprep.mubr.msk.bf16.mxu0 %vm567_vm0, %v5747_v6 }
  0x6b   :  { %5298 = vmatmul.mubr.msk.bf16.gmra.mrb[36].mxu0 %vm567_vm0, %v5748_v7 }
  0x6c   :  { %5301 = vmatprep.mubr.msk.bf16.mxu0 %vm567_vm0, %v5749_v8 }
  0x73   :  { %5302 = vmatmul.mubr.msk.bf16.gmra.mrb[40].mxu0 %vm567_vm0, %v5750_v9 }
  0x74   :  { %5305 = vmatprep.mubr.msk.bf16.mxu0 %vm567_vm0, %v5751_v10 }
  0x7b   :  { %5306 = vmatmul.mubr.msk.bf16.gmra.mrb[44].mxu0 %vm567_vm0, %v5752_v11 }
  0x7c   :  { %13 = vsyncpa [#allocation3], 0  ;;  %v5753_v12 = vld [vmem:[%s8135_s4 + $0xc0] ss:$12 sps:$4 sm:$0xff]   ;;  %v5755_v13 = vld [vmem:[%s8135_s4 + $0xc4] ss:$12 sps:$4 sm:$0xff]  }
  0x7d   :  { %1319 = vmatprep.subr.bf16.mxu1 %v5755_v13  ;;  %v5768_v14 = vld [vmem:[%s8135_s4 + $0xc8] ss:$12 sps:$4 sm:$0xff]   ;;  %v6171_v15 = vmov 0.0   ;;  %v5756_v17 = vld [vmem:[%s8135_s4 + $0xd8] ss:$12 sps:$4 sm:$0xff]   ;;  %v6172_v2 = vmov 0  }
  0x7e   :  { %1320 = vmatpush1.bf16.msra.mxu1 %v5753_v12  ;;  %5309 = vmatprep.subr.bf16.mxu0 %v6171_v15  ;;  %v5758_v16 = vld [vmem:[%s8135_s4 + $0xdc] ss:$12 sps:$4 sm:$0xff]   ;;  %v5769_v18 = vld [vmem:[%s8135_s4 + $0xe0] ss:$12 sps:$4 sm:$0xff]   ;;  %v5773_v24 = vld [vmem:[%s8135_s4 + $0xf8] ss:$12 sps:$4 sm:$0xff]  }
  0x7f   :  { %5310 = vmatpush3.bf16.msra.mxu0 %v5768_v14  ;;  %1321 = vmatprep.subr.bf16.mxu1 %v5758_v16  ;;  %v5761_v20 = vld [vmem:[%s8135_s4 + $0xf4] ss:$12 sps:$4 sm:$0xff]   ;;  %v5759_v23 = vld [vmem:[%s8135_s4 + $0xf0] ss:$12 sps:$4 sm:$0xff]   ;;  %v5764_v33 = vld [vmem:[%s8135_s4 + $0x10c] ss:$12 sps:$4 sm:$0xff]  }
  0x80   :  { %5311 = vmatprep.subr.bf16.mxu0 %v6171_v15  ;;  %v5762_v36 = vld [vmem:[%s8135_s4 + $0x108] ss:$12 sps:$4 sm:$0xff]   ;;  %v5774_v37 = vld [vmem:[%s8135_s4 + $0x110] ss:$12 sps:$4 sm:$0xff]   ;;  %v5765_v43 = vld [vmem:[%s8135_s4 + $0x120] ss:$12 sps:$4 sm:$0xff]   ;;  %1351 = vmatprep.mubr.bf16.mxu1 %v6172_v2 }
  0x81   :  { %v5767_v40 = vld [vmem:[%s8135_s4 + $0x124] ss:$12 sps:$4 sm:$0xff]   ;;  %v5778_v44 = vld [vmem:[%s8135_s4 + $0x128] ss:$12 sps:$4 sm:$0xff]   ;;  %v5779_v58 = vld [vmem:[%s8135_s4 + $0x140] ss:$12 sps:$4 sm:$0xff]  }
  0x82   :  { %1322 = vmatpush1.bf16.msra.mxu1 %v5756_v17  ;;  %v5772_v53 = vld [vmem:[%s8135_s4 + $0x13c] ss:$12 sps:$4 sm:$0xff]   ;;  %v5770_v56 = vld [vmem:[%s8135_s4 + $0x138] ss:$12 sps:$4 sm:$0xff]   ;;  %v5777_v57 = vld [vmem:[%s8135_s4 + $0x154] ss:$12 sps:$4 sm:$0xff]  }
  0x83   :  { %5312 = vmatpush3.bf16.msra.mxu0 %v5769_v18  ;;  %1323 = vmatprep.subr.bf16.mxu1 %v5761_v20  ;;  %v5775_v60 = vld [vmem:[%s8135_s4 + $0x150] ss:$12 sps:$4 sm:$0xff]   ;;  %v5782_v62 = vld [vmem:[%s8135_s4 + $0x16c] ss:$12 sps:$4 sm:$0xff]   ;;  %vm6173_vm1 = vmmov 0   ;;  %vm1155_vm2 = vcmask 1041409  }
  0x84   :  { %5313 = vmatprep.subr.bf16.mxu0 %v6171_v15  ;;  %v5783_v63 = vld [vmem:[%s8135_s4 + $0x158] ss:$12 sps:$4 sm:$0xff]   ;;  %5325 = vmatprep.mubr.msk.bf16.mxu0 %vm6173_vm1, %v6171_v15  ;;  %v5780_v9 = vld [vmem:[%s8135_s4 + $0x168] ss:$12 sps:$4 sm:$0xff]   ;;  %v5784_v12 = vld [vmem:[%s8135_s4 + $0x170] ss:$12 sps:$4 sm:$0xff]  }
  0x85   :  { %v5787_v13 = vld [vmem:[%s8135_s4 + $0x4] ss:$12 sps:$4 sm:$0xff]   ;;  %vm1158_vm3 = vcmask 1042434   ;;  %vm1161_vm4 = vcmask 1043459   ;;  %vm1164_vm5 = vcmask 1044484   ;;  %vm1167_vm6 = vcmask 1045509  }
  0x86   :  { %1324 = vmatpush1.bf16.msra.mxu1 %v5759_v23  ;;  %vm1170_vm7 = vcmask 1046534   ;;  %vm1173_vm8 = vcmask 1047559  }
  0x87   :  { %5314 = vmatpush3.bf16.msra.mxu0 %v5773_v24  ;;  %1325 = vmatprep.subr.bf16.mxu1 %v5764_v33 }
  0x88   :  { %5315 = vmatprep.subr.bf16.mxu0 %v6171_v15 }
  0x8a   :  { %1326 = vmatpush1.bf16.msra.mxu1 %v5762_v36 }
  0x8b   :  { %5316 = vmatpush3.bf16.msra.mxu0 %v5774_v37  ;;  %1327 = vmatprep.subr.bf16.mxu1 %v5767_v40 }
  0x8c   :  { %5317 = vmatprep.subr.bf16.mxu0 %v6171_v15 }
  0x8e   :  { %1328 = vmatpush1.bf16.msra.mxu1 %v5765_v43 }
  0x8f   :  { %5318 = vmatpush3.bf16.msra.mxu0 %v5778_v44  ;;  %1329 = vmatprep.subr.bf16.mxu1 %v5772_v53 }
  0x90   :  { %5319 = vmatprep.subr.bf16.mxu0 %v6171_v15 }
  0x92   :  { %1330 = vmatpush1.bf16.msra.mxu1 %v5770_v56 }
  0x93   :  { %1331 = vmatprep.subr.bf16.mxu1 %v5777_v57  ;;  %5320 = vmatpush3.bf16.msra.mxu0 %v5779_v58 }
  0x94   :  { %5321 = vmatprep.subr.bf16.mxu0 %v6171_v15 }
  0x96   :  { %1332 = vmatpush1.bf16.msra.mxu1 %v5775_v60 }
  0x97   :  { %1333 = vmatprep.subr.bf16.mxu1 %v5782_v62  ;;  %5322 = vmatpush3.bf16.msra.mxu0 %v5783_v63 }
  0x98   :  { %5323 = vmatprep.subr.bf16.mxu0 %v6171_v15 }
  0x9a   :  { %1334 = vmatpush1.bf16.msra.mxu1 %v5780_v9 }
  0x9b   :  { %5324 = vmatpush3.bf16.msra.mxu0 %v5784_v12  ;;  %1561 = vmatprep.subr.bf16.mxu1 %v5787_v13 }
  0x9c   :  { %5329 = vmatprep.subr.bf16.mxu0 %v6171_v15 }
  0xf6   :  { %v5017_v19 = vpop.f32.mrb[0].mxu0 }
  0xf7   :  { %v5081_v21 = vpop.f32.mrb[0].mxu1  ;;  %v5018_v22 = vpop.f32.mrb[1].mxu0 }
  0xf8   :  { %v5019_v25 = vadd.f32 %v5018_v22, %v5017_v19  ;;  %v5082_v26 = vpop.f32.mrb[1].mxu1  ;;  %v5020_v27 = vpop.f32.mrb[2].mxu0 }
  0xf9   :  { %v5083_v28 = vadd.f32 %v5082_v26, %v5081_v21  ;;  %v5084_v29 = vpop.f32.mrb[2].mxu1  ;;  %v5021_v30 = vpop.f32.mrb[3].mxu0 }
  0xfa   :  { %v5022_v31 = vadd.f32 %v5021_v30, %v5020_v27  ;;  %v5085_v32 = vpop.f32.mrb[3].mxu1 }
  0xfb   :  { %v5086_v34 = vadd.f32 %v5085_v32, %v5084_v29  ;;  %v6490_v35 = vadd.f32 %v5083_v28, %v5019_v25 }
  0xfd   :  { %v6498_v38 = vadd.f32 %v5086_v34, %v5022_v31 }
  0xfe   :  { %v5023_v39 = vpop.f32.mrb[4].mxu0 }
  0xff   :  { %v5087_v41 = vpop.f32.mrb[4].mxu1  ;;  %v5024_v42 = vpop.f32.mrb[5].mxu0 }
 0x100   :  { %v5025_v45 = vadd.f32 %v5024_v42, %v5023_v39  ;;  %v5088_v46 = vpop.f32.mrb[5].mxu1  ;;  %v5026_v47 = vpop.f32.mrb[6].mxu0 }
 0x101   :  { %v5089_v48 = vadd.f32 %v5088_v46, %v5087_v41  ;;  %v5090_v49 = vpop.f32.mrb[6].mxu1  ;;  %v5027_v50 = vpop.f32.mrb[7].mxu0 }
 0x102   :  { %v5028_v51 = vadd.f32 %v5027_v50, %v5026_v47  ;;  %v5091_v52 = vpop.f32.mrb[7].mxu1 }
 0x103   :  { %v5092_v54 = vadd.f32 %v5091_v52, %v5090_v49  ;;  %v6514_v55 = vadd.f32 %v5089_v48, %v5025_v45 }
 0x105   :  { %v6525_v59 = vadd.f32 %v5092_v54, %v5028_v51 }
 0x106   :  { %v5029_v61 = vpop.f32.mrb[8].mxu0 }
 0x107   :  { %v5093_v0 = vpop.f32.mrb[8].mxu1  ;;  %v5030_v1 = vpop.f32.mrb[9].mxu0 }
 0x108   :  { %v5031_v3 = vadd.f32 %v5030_v1, %v5029_v61  ;;  %v5094_v4 = vpop.f32.mrb[9].mxu1  ;;  %v5032_v5 = vpop.f32.mrb[10].mxu0 }
 0x109   :  { %v5095_v6 = vadd.f32 %v5094_v4, %v5093_v0  ;;  %v5096_v7 = vpop.f32.mrb[10].mxu1  ;;  %v5033_v8 = vpop.f32.mrb[11].mxu0 }
 0x10a   :  { %v5034_v10 = vadd.f32 %v5033_v8, %v5032_v5  ;;  %v5097_v11 = vpop.f32.mrb[11].mxu1 }
 0x10b   :  { %v5098_v14 = vadd.f32 %v5097_v11, %v5096_v7  ;;  %v6549_v16 = vadd.f32 %v5095_v6, %v5031_v3 }
 0x10d   :  { %v6552_v17 = vadd.f32 %v5098_v14, %v5034_v10 }
 0x10e   :  { %v5035_v18 = vpop.f32.mrb[12].mxu0 }
 0x10f   :  { %v5099_v19 = vpop.f32.mrb[12].mxu1  ;;  %v5036_v20 = vpop.f32.mrb[13].mxu0 }
 0x110   :  { %v5037_v21 = vadd.f32 %v5036_v20, %v5035_v18  ;;  %v5100_v22 = vpop.f32.mrb[13].mxu1  ;;  %v5038_v23 = vpop.f32.mrb[14].mxu0 }
 0x111   :  { %v5101_v24 = vadd.f32 %v5100_v22, %v5099_v19  ;;  %v5102_v25 = vpop.f32.mrb[14].mxu1  ;;  %v5039_v26 = vpop.f32.mrb[15].mxu0 }
 0x112   :  { %v5040_v27 = vadd.f32 %v5039_v26, %v5038_v23  ;;  %v5103_v28 = vpop.f32.mrb[15].mxu1 }
 0x113   :  { %v5104_v29 = vadd.f32 %v5103_v28, %v5102_v25  ;;  %v6555_v30 = vadd.f32 %v5101_v24, %v5037_v21 }
 0x115   :  { %v6557_v31 = vadd.f32 %v5104_v29, %v5040_v27 }
 0x116   :  { %v5041_v32 = vpop.f32.mrb[16].mxu0 }
 0x117   :  { %v5105_v33 = vpop.f32.mrb[16].mxu1  ;;  %v5042_v34 = vpop.f32.mrb[17].mxu0 }
 0x118   :  { %v5043_v36 = vadd.f32 %v5042_v34, %v5041_v32  ;;  %v5106_v37 = vpop.f32.mrb[17].mxu1  ;;  %v5044_v39 = vpop.f32.mrb[18].mxu0 }
 0x119   :  { %v5107_v40 = vadd.f32 %v5106_v37, %v5105_v33  ;;  %v5108_v41 = vpop.f32.mrb[18].mxu1  ;;  %v5045_v42 = vpop.f32.mrb[19].mxu0 }
 0x11a   :  { %v5046_v43 = vadd.f32 %v5045_v42, %v5044_v39  ;;  %v5109_v44 = vpop.f32.mrb[19].mxu1 }
 0x11b   :  { %v5110_v45 = vadd.f32 %v5109_v44, %v5108_v41  ;;  %v6559_v46 = vadd.f32 %v5107_v40, %v5043_v36 }
 0x11d   :  { %v6561_v47 = vadd.f32 %v5110_v45, %v5046_v43 }
 0x11e   :  { %v5047_v48 = vpop.f32.mrb[20].mxu0 }
 0x11f   :  { %v5111_v49 = vpop.f32.mrb[20].mxu1  ;;  %v5048_v50 = vpop.f32.mrb[21].mxu0 }
 0x120   :  { %v5049_v51 = vadd.f32 %v5048_v50, %v5047_v48  ;;  %v5112_v52 = vpop.f32.mrb[21].mxu1  ;;  %v5050_v53 = vpop.f32.mrb[22].mxu0 }
 0x121   :  { %v5113_v54 = vadd.f32 %v5112_v52, %v5111_v49  ;;  %v5114_v56 = vpop.f32.mrb[22].mxu1  ;;  %v5051_v57 = vpop.f32.mrb[23].mxu0 }
 0x122   :  { %v5052_v58 = vadd.f32 %v5051_v57, %v5050_v53  ;;  %v5115_v60 = vpop.f32.mrb[23].mxu1 }
 0x123   :  { %v5116_v61 = vadd.f32 %v5115_v60, %v5114_v56  ;;  %v6563_v62 = vadd.f32 %v5113_v54, %v5049_v51 }
 0x125   :  { %v6565_v63 = vadd.f32 %v5116_v61, %v5052_v58 }
 0x126   :  { %v5053_v0 = vpop.f32.mrb[24].mxu0 }
 0x127   :  { %v5117_v1 = vpop.f32.mrb[24].mxu1  ;;  %v5054_v3 = vpop.f32.mrb[25].mxu0 }
 0x128   :  { %v5055_v4 = vadd.f32 %v5054_v3, %v5053_v0  ;;  %v5118_v5 = vpop.f32.mrb[25].mxu1  ;;  %v5056_v6 = vpop.f32.mrb[26].mxu0 }
 0x129   :  { %v5119_v7 = vadd.f32 %v5118_v5, %v5117_v1  ;;  %v5120_v8 = vpop.f32.mrb[26].mxu1  ;;  %v5057_v9 = vpop.f32.mrb[27].mxu0 }
 0x12a   :  { %v5058_v10 = vadd.f32 %v5057_v9, %v5056_v6  ;;  %v5121_v11 = vpop.f32.mrb[27].mxu1 }
 0x12b   :  { %v5122_v12 = vadd.f32 %v5121_v11, %v5120_v8  ;;  %v6567_v13 = vadd.f32 %v5119_v7, %v5055_v4 }
 0x12d   :  { %v6569_v14 = vadd.f32 %v5122_v12, %v5058_v10 }
 0x12e   :  { %v5059_v18 = vpop.f32.mrb[28].mxu0 }
 0x12f   :  { %v5123_v19 = vpop.f32.mrb[28].mxu1  ;;  %v5060_v20 = vpop.f32.mrb[29].mxu0 }
 0x130   :  { %v5061_v21 = vadd.f32 %v5060_v20, %v5059_v18  ;;  %v5124_v22 = vpop.f32.mrb[29].mxu1  ;;  %v5062_v23 = vpop.f32.mrb[30].mxu0 }
 0x131   :  { %v5125_v24 = vadd.f32 %v5124_v22, %v5123_v19  ;;  %v5126_v25 = vpop.f32.mrb[30].mxu1  ;;  %v5063_v26 = vpop.f32.mrb[31].mxu0 }
 0x132   :  { %v5064_v27 = vadd.f32 %v5063_v26, %v5062_v23  ;;  %v5127_v28 = vpop.f32.mrb[31].mxu1 }
 0x133   :  { %v5128_v29 = vadd.f32 %v5127_v28, %v5126_v25  ;;  %v780_v32 = vadd.f32 %v5125_v24, %v5061_v21 }
 0x135   :  { %v6571_v33 = vadd.f32 %v5128_v29, %v5064_v27 }
 0x136   :  { %v5295_v34 = vpop.f32.mrb[32].mxu0 }
 0x137   :  { %v6574_v36 = vadd.f32 %v5295_v34, %v6514_v55  ;;  %v820_v37 = vpop.f32.mrb[33].mxu0 }
 0x138   :  { %v6577_v39 = vadd.f32 %v820_v37, %v6490_v35  ;;  %v5296_v40 = vpop.f32.mrb[34].mxu0 }
 0x139   :  { %v6580_v41 = vadd.f32 %v5296_v40, %v6525_v59  ;;  %v823_v42 = vpop.f32.mrb[35].mxu0  ;;  %v907_v35 = vmul.f32 %v6574_v36, %v6574_v36 }
 0x13a   :  { %v6583_v43 = vadd.f32 %v823_v42, %v6498_v38  ;;  %v905_v44 = vmul.f32 %v6577_v39, %v6577_v39 }
 0x13b   :  { %v908_v51 = vmul.f32 %v6580_v41, %v6580_v41 }
 0x13c   :  { %v883_v45 = vadd.f32 %v6583_v43, %v6577_v39  ;;  %v906_v55 = vmul.f32 %v6583_v43, %v6583_v43 }
 0x13e   :  { %v884_v48 = vadd.f32 %v883_v45, %v6574_v36  ;;  %v921_v59 = vadd.f32 %v906_v55, %v905_v44  ;;  %v5299_v49 = vpop.f32.mrb[36].mxu0 }
 0x13f   :  { %v6595_v50 = vadd.f32 %v5299_v49, %v6555_v30  ;;  %v836_v38 = vpop.f32.mrb[37].mxu0 }
 0x140   :  { %v922_v52 = vadd.f32 %v921_v59, %v907_v35  ;;  %v6600_v53 = vadd.f32 %v836_v38, %v6549_v16  ;;  %v885_v54 = vadd.f32 %v884_v48, %v6580_v41  ;;  %v5300_v56 = vpop.f32.mrb[38].mxu0 }
 0x141   :  { %v6604_v57 = vadd.f32 %v5300_v56, %v6557_v31  ;;  %v839_v58 = vpop.f32.mrb[39].mxu0  ;;  %v911_v31 = vmul.f32 %v6595_v50, %v6595_v50 }
 0x142   :  { %v886_v60 = vadd.f32 %v885_v54, %v6600_v53  ;;  %v909_v30 = vmul.f32 %v6600_v53, %v6600_v53  ;;  %v923_v61 = vadd.f32 %v922_v52, %v908_v51  ;;  %v6610_v0 = vadd.f32 %v839_v58, %v6552_v17 }
 0x143   :  { %v912_v17 = vmul.f32 %v6604_v57, %v6604_v57 }
 0x144   :  { %v924_v1 = vadd.f32 %v923_v61, %v909_v30  ;;  %v887_v16 = vadd.f32 %v886_v60, %v6610_v0  ;;  %v910_v3 = vmul.f32 %v6610_v0, %v6610_v0 }
 0x146   :  { %v888_v4 = vadd.f32 %v887_v16, %v6595_v50  ;;  %v925_v5 = vadd.f32 %v924_v1, %v910_v3  ;;  %v5303_v6 = vpop.f32.mrb[40].mxu0 }
 0x147   :  { %v6619_v7 = vadd.f32 %v5303_v6, %v6563_v62  ;;  %v852_v8 = vpop.f32.mrb[41].mxu0 }
 0x148   :  { %v926_v9 = vadd.f32 %v925_v5, %v911_v31  ;;  %v6624_v10 = vadd.f32 %v852_v8, %v6559_v46  ;;  %v889_v11 = vadd.f32 %v888_v4, %v6604_v57  ;;  %v5304_v12 = vpop.f32.mrb[42].mxu0 }
 0x149   :  { %v6628_v18 = vadd.f32 %v5304_v12, %v6565_v63  ;;  %v855_v19 = vpop.f32.mrb[43].mxu0  ;;  %v915_v63 = vmul.f32 %v6619_v7, %v6619_v7 }
 0x14a   :  { %v890_v20 = vadd.f32 %v889_v11, %v6624_v10  ;;  %v913_v62 = vmul.f32 %v6624_v10, %v6624_v10  ;;  %v927_v21 = vadd.f32 %v926_v9, %v912_v17  ;;  %v6634_v22 = vadd.f32 %v855_v19, %v6561_v47 }
 0x14b   :  { %v916_v47 = vmul.f32 %v6628_v18, %v6628_v18 }
 0x14c   :  { %v928_v23 = vadd.f32 %v927_v21, %v913_v62  ;;  %v891_v46 = vadd.f32 %v890_v20, %v6634_v22  ;;  %v914_v24 = vmul.f32 %v6634_v22, %v6634_v22 }
 0x14e   :  { %v892_v25 = vadd.f32 %v891_v46, %v6619_v7  ;;  %v929_v26 = vadd.f32 %v928_v23, %v914_v24  ;;  %v5307_v27 = vpop.f32.mrb[44].mxu0 }
 0x14f   :  { %v6642_v28 = vadd.f32 %v5307_v27, %v780_v32  ;;  %v868_v29 = vpop.f32.mrb[45].mxu0 }
 0x150   :  { %v930_v34 = vadd.f32 %v929_v26, %v915_v63  ;;  %v6647_v37 = vadd.f32 %v868_v29, %v6567_v13  ;;  %v893_v40 = vadd.f32 %v892_v25, %v6628_v18  ;;  %v5308_v42 = vpop.f32.mrb[46].mxu0 }
 0x151   :  { %v6651_v44 = vadd.f32 %v5308_v42, %v6571_v33  ;;  %v871_v45 = vpop.f32.mrb[47].mxu0  ;;  %v919_v13 = vmul.f32 %v6642_v28, %v6642_v28 }
 0x152   :  { %v894_v55 = vadd.f32 %v893_v40, %v6647_v37  ;;  %v917_v32 = vmul.f32 %v6647_v37, %v6647_v37  ;;  %v931_v35 = vadd.f32 %v930_v34, %v916_v47  ;;  %v872_v48 = vadd.f32 %v871_v45, %v6569_v14 }
 0x153   :  { %v920_v33 = vmul.f32 %v6651_v44, %v6651_v44 }
 0x154   :  { %v932_v59 = vadd.f32 %v931_v35, %v917_v32  ;;  %v895_v49 = vadd.f32 %v894_v55, %v872_v48  ;;  %v918_v38 = vmul.f32 %v872_v48, %v872_v48 }
 0x156   :  { %v896_v51 = vadd.f32 %v895_v49, %v6642_v28  ;;  %v933_v52 = vadd.f32 %v932_v59, %v918_v38 }
 0x158   :  { %v897_v54 = vadd.f32 %v896_v51, %v6651_v44  ;;  %v934_v56 = vadd.f32 %v933_v52, %v919_v13 }
 0x15a   :  { %v898_v58 = vrot.slane %v897_v54, 4  ;;  %v935_v60 = vadd.f32 %v934_v56, %v920_v33 }
 0x15c   :  { %v899_v30 = vadd.f32 %v898_v58, %v897_v54  ;;  %v936_v61 = vrot.slane %v935_v60, 4 }
 0x15e   :  { %v900_v14 = vrot.slane %v899_v30, 2  ;;  %v937_v1 = vadd.f32 %v936_v61, %v935_v60 }
 0x160   :  { %v901_v16 = vadd.f32 %v900_v14, %v899_v30  ;;  %v938_v3 = vrot.slane %v937_v1, 2 }
 0x162   :  { %v902_v31 = vrot.slane %v901_v16, 1  ;;  %v939_v4 = vadd.f32 %v938_v3, %v937_v1 }
 0x164   :  { %v903_v5 = vadd.f32 %v902_v31, %v901_v16  ;;  %v940_v6 = vrot.slane %v939_v4, 1 }
 0x166   :  { %v904_v8 = vmul.f32 0.0078125, %v903_v5  ;;  %v941_v17 = vadd.f32 %v940_v6, %v939_v4 }
 0x168   :  { %v942_v9 = vmul.f32 0.0078125, %v941_v17  ;;  %v943_v11 = vmul.f32 %v904_v8, %v904_v8  ;;  %v958_v12 = vsub.f32 %v872_v48, %v904_v8  ;;  %v945_v19 = vsub.f32 %v6577_v39, %v904_v8 }
 0x169   :  { %v946_v20 = vsub.f32 %v6583_v43, %v904_v8  ;;  %v947_v62 = vsub.f32 %v6574_v36, %v904_v8  ;;  %v948_v21 = vsub.f32 %v6580_v41, %v904_v8  ;;  %v949_v23 = vsub.f32 %v6600_v53, %v904_v8 }
 0x16a   :  { %v944_v46 = vsub.f32 %v942_v9, %v943_v11  ;;  %v950_v24 = vsub.f32 %v6610_v0, %v904_v8  ;;  %v951_v63 = vsub.f32 %v6595_v50, %v904_v8  ;;  %v952_v25 = vsub.f32 %v6604_v57, %v904_v8  ;;  %v4543_v50 = vld [vmem:[%s8133_s2] ss:$0 sm:$0xff] }
 0x16b   :  { %v953_v26 = vsub.f32 %v6624_v10, %v904_v8  ;;  %v954_v27 = vsub.f32 %v6634_v22, %v904_v8  ;;  %v955_v39 = vsub.f32 %v6619_v7, %v904_v8  ;;  %v956_v43 = vsub.f32 %v6628_v18, %v904_v8  ;;  %v4544_v7 = vld [vmem:[%s8134_s3] ss:$0 sm:$0xff] }
 0x16c   :  { %v961_v36 = vadd.f32 1e-05, %v944_v46  ;;  %v957_v41 = vsub.f32 %v6647_v37, %v904_v8  ;;  %v959_v53 = vsub.f32 %v6642_v28, %v904_v8  ;;  %v960_v29 = vsub.f32 %v6651_v44, %v904_v8 }
 0x16e   :  { %6041 = vrsqrt.f32 %v961_v36 }
 0x178   :  { %v6042_v0 = vpop.eup %6041 }
 0x179   :  { %v976_v57 = vmul.f32 %v6042_v0, %v958_v12  ;;  %v963_v10 = vmul.f32 %v6042_v0, %v945_v19  ;;  %v964_v22 = vmul.f32 %v6042_v0, %v946_v20  ;;  %v965_v47 = vmul.f32 %v6042_v0, %v947_v62 }
 0x17a   :  { %v966_v18 = vmul.f32 %v6042_v0, %v948_v21  ;;  %v967_v34 = vmul.f32 %v6042_v0, %v949_v23  ;;  %v968_v37 = vmul.f32 %v6042_v0, %v950_v24  ;;  %v969_v28 = vmul.f32 %v6042_v0, %v951_v63 }
 0x17b   :  { %v999_v40 = vmul.f32 %v4543_v50, %v976_v57  ;;  %v970_v42 = vmul.f32 %v6042_v0, %v952_v25  ;;  %v971_v44 = vmul.f32 %v6042_v0, %v953_v26  ;;  %v972_v45 = vmul.f32 %v6042_v0, %v954_v27 }
 0x17c   :  { %v973_v55 = vmul.f32 %v6042_v0, %v955_v39  ;;  %v974_v32 = vmul.f32 %v6042_v0, %v956_v43  ;;  %v975_v35 = vmul.f32 %v6042_v0, %v957_v41  ;;  %v977_v48 = vmul.f32 %v6042_v0, %v959_v53 }
 0x17d   :  { %v1022_v59 = vadd.f32 %v4544_v7, %v999_v40  ;;  %v978_v49 = vmul.f32 %v6042_v0, %v960_v29  ;;  %v986_v38 = vmul.f32 %v4543_v50, %v963_v10  ;;  %v987_v13 = vmul.f32 %v4543_v50, %v964_v22 }
 0x17e   :  { %v988_v51 = vmul.f32 %v4543_v50, %v965_v47  ;;  %v989_v52 = vmul.f32 %v4543_v50, %v966_v18  ;;  %v990_v33 = vmul.f32 %v4543_v50, %v967_v34  ;;  %v991_v56 = vmul.f32 %v4543_v50, %v968_v37 }
 0x17f   :  { %v1038_v54 = vmax.f32 %v1022_v59, 0.0  ;;  %v992_v58 = vmul.f32 %v4543_v50, %v969_v28  ;;  %v993_v60 = vmul.f32 %v4543_v50, %v970_v42  ;;  %v994_v30 = vmul.f32 %v4543_v50, %v971_v44 }
 0x180   :  { %v995_v61 = vmul.f32 %v4543_v50, %v972_v45  ;;  %v996_v14 = vmul.f32 %v4543_v50, %v973_v55  ;;  %v997_v1 = vmul.f32 %v4543_v50, %v974_v32  ;;  %v998_v16 = vmul.f32 %v4543_v50, %v975_v35 }
 0x181   :  { %v1000_v3 = vmul.f32 %v4543_v50, %v977_v48  ;;  %v1001_v31 = vmul.f32 %v4543_v50, %v978_v49  ;;  %v1009_v4 = vadd.f32 %v4544_v7, %v986_v38  ;;  %v1010_v5 = vadd.f32 %v4544_v7, %v987_v13 }
 0x182   :  { %v1011_v6 = vadd.f32 %v4544_v7, %v988_v51  ;;  %v1012_v8 = vadd.f32 %v4544_v7, %v989_v52  ;;  %v1013_v17 = vadd.f32 %v4544_v7, %v990_v33  ;;  %v1054_v9 = vpack.c.bf16 %v1038_v54, %v1038_v54 }
 0x183   :  { %v1014_v11 = vadd.f32 %v4544_v7, %v991_v56  ;;  %v1015_v12 = vadd.f32 %v4544_v7, %v992_v58  ;;  %v1016_v19 = vadd.f32 %v4544_v7, %v993_v60  ;;  %v1017_v20 = vadd.f32 %v4544_v7, %v994_v30 }
 0x184   :  { %v1018_v62 = vadd.f32 %v4544_v7, %v995_v61  ;;  %v1019_v21 = vadd.f32 %v4544_v7, %v996_v14  ;;  %v1020_v23 = vadd.f32 %v4544_v7, %v997_v1  ;;  %v1021_v46 = vadd.f32 %v4544_v7, %v998_v16 }
 0x185   :  { %v1023_v24 = vadd.f32 %v4544_v7, %v1000_v3  ;;  %v1024_v63 = vadd.f32 %v4544_v7, %v1001_v31  ;;  %v1025_v25 = vmax.f32 %v1009_v4, 0.0  ;;  %v1026_v26 = vmax.f32 %v1010_v5, 0.0 }
 0x186   :  { %v1027_v27 = vmax.f32 %v1011_v6, 0.0  ;;  %v1028_v39 = vmax.f32 %v1012_v8, 0.0  ;;  %v1029_v43 = vmax.f32 %v1013_v17, 0.0  ;;  %v1030_v36 = vmax.f32 %v1014_v11, 0.0 }
 0x187   :  { %v1031_v41 = vmax.f32 %v1015_v12, 0.0  ;;  %v1032_v53 = vmax.f32 %v1016_v19, 0.0  ;;  %v1033_v29 = vmax.f32 %v1017_v20, 0.0  ;;  %v1034_v0 = vmax.f32 %v1018_v62, 0.0 }
 0x188   :  { %v1035_v50 = vmax.f32 %v1019_v21, 0.0  ;;  %v1036_v57 = vmax.f32 %v1020_v23, 0.0  ;;  %v1037_v10 = vmax.f32 %v1021_v46, 0.0  ;;  %v1039_v22 = vmax.f32 %v1023_v24, 0.0 }
 0x189   :  { %v1040_v47 = vmax.f32 %v1024_v63, 0.0  ;;  %v1041_v18 = vpack.c.bf16 %v1025_v25, %v1025_v25  ;;  %v1042_v34 = vpack.c.bf16 %v1026_v26, %v1026_v26  ;;  %v1043_v7 = vpack.c.bf16 %v1027_v27, %v1027_v27 }
 0x18a   :  { %v1044_v37 = vpack.c.bf16 %v1028_v39, %v1028_v39  ;;  %v1045_v28 = vpack.c.bf16 %v1029_v43, %v1029_v43  ;;  %v1046_v40 = vpack.c.bf16 %v1030_v36, %v1030_v36  ;;  %v1047_v42 = vpack.c.bf16 %v1031_v41, %v1031_v41 }
 0x18b   :  { %v1048_v44 = vpack.c.bf16 %v1032_v53, %v1032_v53  ;;  %v1049_v45 = vpack.c.bf16 %v1033_v29, %v1033_v29  ;;  %v1050_v55 = vpack.c.bf16 %v1034_v0, %v1034_v0  ;;  %v1051_v32 = vpack.c.bf16 %v1035_v50, %v1035_v50 }
 0x18c   :  { %v1052_v35 = vpack.c.bf16 %v1036_v57, %v1036_v57  ;;  %v1053_v48 = vpack.c.bf16 %v1037_v10, %v1037_v10  ;;  %v1055_v59 = vpack.c.bf16 %v1039_v22, %v1039_v22  ;;  %v6684_v49 = vunpack.c.l.b16 %v1054_v9 }
 0x18d   :  { %v1056_v38 = vpack.c.bf16 %v1040_v47, %v1040_v47  ;;  %v6686_v13 = vunpack.c.l.b16 %v1041_v18  ;;  %v6688_v51 = vunpack.c.l.b16 %v1043_v7  ;;  %v6690_v52 = vunpack.c.l.b16 %v1044_v37 }
 0x18e   :  { %v6692_v33 = vunpack.c.l.b16 %v1045_v28  ;;  %v6694_v54 = vunpack.c.l.b16 %v1046_v40  ;;  %v6696_v56 = vunpack.c.l.b16 %v1047_v42  ;;  %v6698_v58 = vunpack.c.l.b16 %v1042_v34  ;;  %v5785_v28 = vld [vmem:[%s8135_s4] ss:$12 sps:$4 sm:$0xff]   ;;  %v5788_v42 = vld [vmem:[%s8135_s4 + $0x8] ss:$12 sps:$4 sm:$0xff]  }
 0x18f   :  { %v6700_v60 = vunpack.c.l.b16 %v1048_v44  ;;  %v6702_v30 = vunpack.c.l.b16 %v1049_v45  ;;  %v6704_v61 = vunpack.c.l.b16 %v1051_v32  ;;  %v6706_v14 = vunpack.c.l.b16 %v1050_v55 }
 0x190   :  { %v6708_v1 = vunpack.c.l.b16 %v1052_v35  ;;  %v6710_v16 = vunpack.c.l.b16 %v1053_v48  ;;  %v6712_v3 = vunpack.c.l.b16 %v1055_v59  ;;  %v6714_v31 = vunpack.c.l.b16 %v1056_v38  ;;  %v5791_v35 = vld [vmem:[%s8135_s4 + $0x1c] ss:$12 sps:$4 sm:$0xff]  }
 0x191   :  { %v1154_v4 = vrot.slane %v6686_v13, 1  ;;  %v1157_v5 = vrot.slane %v6688_v51, 7  ;;  %v1160_v6 = vrot.slane %v6690_v52, 6  ;;  %v1163_v8 = vrot.slane %v6692_v33, 5 }
 0x192   :  { %v1166_v17 = vrot.slane %v6694_v54, 4  ;;  %v1169_v9 = vrot.slane %v6696_v56, 3  ;;  %v1175_v11 = vrot.slane %v6702_v30, 1  ;;  %v1172_v19 = vrot.slane %v6700_v60, 2 }
 0x193   :  { %v1156_v12 = vsel %vm1155_vm2, %v6698_v58, %v1154_v4  ;;  %v1177_v20 = vrot.slane %v6704_v61, 7  ;;  %v1179_v62 = vrot.slane %v6708_v1, 6  ;;  %v1181_v46 = vrot.slane %v6710_v16, 5 }
 0x194   :  { %v1159_v21 = vsel %vm1158_vm3, %v1157_v5, %v1156_v12  ;;  %v1176_v23 = vsel %vm1155_vm2, %v6706_v14, %v1175_v11  ;;  %v1183_v24 = vrot.slane %v6684_v49, 4  ;;  %v1185_v26 = vrot.slane %v6712_v3, 3 }
 0x195   :  { %v1162_v63 = vsel %vm1161_vm4, %v1160_v6, %v1159_v21  ;;  %v1178_v25 = vsel %vm1158_vm3, %v1177_v20, %v1176_v23  ;;  %v1403_v27 = vrot.slane %v6698_v58, 7  ;;  %v1187_v36 = vrot.slane %v6714_v31, 2 }
 0x196   :  { %v1165_v39 = vsel %vm1164_vm5, %v1163_v8, %v1162_v63  ;;  %v1180_v43 = vsel %vm1161_vm4, %v1179_v62, %v1178_v25  ;;  %v1405_v41 = vrot.slane %v6688_v51, 6  ;;  %v1407_v50 = vrot.slane %v6690_v52, 5  ;;  %v5789_v8 = vld [vmem:[%s8135_s4 + $0x18] ss:$12 sps:$4 sm:$0xff]  }
 0x197   :  { %v1168_v53 = vsel %vm1167_vm6, %v1166_v17, %v1165_v39  ;;  %v1182_v29 = vsel %vm1164_vm5, %v1181_v46, %v1180_v43  ;;  %v1404_v0 = vsel %vm1155_vm2, %v1403_v27, %v6686_v13  ;;  %v1409_v47 = vrot.slane %v6692_v33, 4  ;;  %v5795_v46 = vld [vmem:[%s8135_s4 + $0x34] ss:$12 sps:$4 sm:$0xff]  }
 0x198   :  { %v1171_v57 = vsel %vm1170_vm7, %v1169_v9, %v1168_v53  ;;  %v1184_v10 = vsel %vm1167_vm6, %v1183_v24, %v1182_v29  ;;  %v1406_v22 = vsel %vm1158_vm3, %v1405_v41, %v1404_v0  ;;  %v1411_v37 = vrot.slane %v6694_v54, 3 }
 0x199   :  { %v1174_v18 = vsel %vm1173_vm8, %v1172_v19, %v1171_v57  ;;  %v1186_v34 = vsel %vm1170_vm7, %v1185_v26, %v1184_v10  ;;  %v1408_v7 = vsel %vm1161_vm4, %v1407_v50, %v1406_v22  ;;  %v1413_v45 = vrot.slane %v6696_v56, 2  ;;  %v5792_v19 = vld [vmem:[%s8135_s4 + $0x20] ss:$12 sps:$4 sm:$0xff]   ;;  %v5793_v50 = vld [vmem:[%s8135_s4 + $0x30] ss:$12 sps:$4 sm:$0xff]  }
 0x19a   :  { %v1188_v40 = vsel %vm1173_vm8, %v1187_v36, %v1186_v34  ;;  %v1410_v44 = vsel %vm1164_vm5, %v1409_v47, %v1408_v7  ;;  %v1417_v55 = vrot.slane %v6706_v14, 7  ;;  %v1415_v59 = vrot.slane %v6700_v60, 1  ;;  %v5796_v57 = vld [vmem:[%s8135_s4 + $0x38] ss:$12 sps:$4 sm:$0xff]  }
 0x19b   :  { %v1189_v32 = vpack.c.b16 %v1188_v40, %v1174_v18  ;;  %v1412_v48 = vsel %vm1167_vm6, %v1411_v37, %v1410_v44  ;;  %v1419_v38 = vrot.slane %v6704_v61, 6  ;;  %v1421_v6 = vrot.slane %v6708_v1, 5  ;;  %v5799_v34 = vld [vmem:[%s8135_s4 + $0x4c] ss:$12 sps:$4 sm:$0xff]  }
 0x19c   :  { %v1414_v4 = vsel %vm1170_vm7, %v1413_v45, %v1412_v48  ;;  %v1418_v5 = vsel %vm1155_vm2, %v1417_v55, %v6702_v30  ;;  %v1423_v11 = vrot.slane %v6710_v16, 4  ;;  %v1425_v12 = vrot.slane %v6684_v49, 3 }
 0x19d   :  { %1352 = vmatmul.mubr.bf16.vlgmr.msra.gmra.mrb[32].mxu1 %v1189_v32  ;;  %5326 = vmatmul.mubr.bf16.vlgmr.msra.gmra.mrb[48].mxu0 %v1189_v32  ;;  %v1416_v17 = vsel %vm1173_vm8, %v1415_v59, %v1414_v4  ;;  %v1420_v9 = vsel %vm1158_vm3, %v1419_v38, %v1418_v5  ;;  %v1427_v62 = vrot.slane %v6712_v3, 2  ;;  %v1678_v21 = vrot.slane %v6686_v13, 2  ;;  %v5797_v38 = vld [vmem:[%s8135_s4 + $0x48] ss:$12 sps:$4 sm:$0xff]   ;;  %v5800_v4 = vld [vmem:[%s8135_s4 + $0x50] ss:$12 sps:$4 sm:$0xff]  }
 0x19e   :  { %1562 = vmatpush1.bf16.msra.mxu1 %v5785_v28  ;;  %5330 = vmatpush3.bf16.msra.mxu0 %v5788_v42  ;;  %v1422_v20 = vsel %vm1161_vm4, %v1421_v6, %v1420_v9  ;;  %v1679_v23 = vrot.slane %v6698_v58, 1  ;;  %v1429_v63 = vrot.slane %v6714_v31, 1  ;;  %v1682_v25 = vrot.slane %v6690_v52, 7  ;;  %v5803_v9 = vld [vmem:[%s8135_s4 + $0x64] ss:$12 sps:$4 sm:$0xff]  }
 0x19f   :  { %1563 = vmatprep.subr.bf16.mxu1 %v5791_v35  ;;  %5331 = vmatprep.subr.bf16.mxu0 %v6171_v15  ;;  %v1424_v24 = vsel %vm1164_vm5, %v1423_v11, %v1422_v20  ;;  %v1684_v26 = vrot.slane %v6692_v33, 6  ;;  %v1686_v43 = vrot.slane %v6694_v54, 5  ;;  %v1692_v36 = vrot.slane %v6702_v30, 2 }
 0x1a0   :  { %1593 = vmatprep.mubr.bf16.mxu1 %v6172_v2  ;;  %5345 = vmatprep.mubr.msk.bf16.mxu0 %vm6173_vm1, %v6171_v15  ;;  %v1426_v27 = vsel %vm1167_vm6, %v1425_v12, %v1424_v24  ;;  %v1680_v39 = vsel %vm1155_vm2, %v1679_v23, %v1678_v21  ;;  %v1688_v29 = vrot.slane %v6696_v56, 4  ;;  %v1693_v0 = vrot.slane %v6706_v14, 1 }
 0x1a1   :  { %v1428_v41 = vsel %vm1170_vm7, %v1427_v62, %v1426_v27  ;;  %v1681_v53 = vsel %vm1158_vm3, %v6688_v51, %v1680_v39  ;;  %v1690_v47 = vrot.slane %v6700_v60, 3  ;;  %v1696_v18 = vrot.slane %v6708_v1, 7  ;;  %v5801_v27 = vld [vmem:[%s8135_s4 + $0x60] ss:$12 sps:$4 sm:$0xff]   ;;  %v5804_v39 = vld [vmem:[%s8135_s4 + $0x68] ss:$12 sps:$4 sm:$0xff]  }
 0x1a2   :  { %1564 = vmatpush1.bf16.msra.mxu1 %v5789_v8  ;;  %5332 = vmatpush3.bf16.msra.mxu0 %v5792_v19  ;;  %v1430_v10 = vsel %vm1173_vm8, %v1429_v63, %v1428_v41  ;;  %v1683_v22 = vsel %vm1161_vm4, %v1682_v25, %v1681_v53  ;;  %v1694_v28 = vsel %vm1155_vm2, %v1693_v0, %v1692_v36  ;;  %v1698_v40 = vrot.slane %v6710_v16, 6 }
 0x1a3   :  { %1565 = vmatprep.subr.bf16.mxu1 %v5795_v46  ;;  %5333 = vmatprep.subr.bf16.mxu0 %v6171_v15  ;;  %v6822_v7 = vpack.c.b16 %v1430_v10, %v1416_v17  ;;  %v1685_v37 = vsel %vm1164_vm5, %v1684_v26, %v1683_v22  ;;  %v1695_v44 = vsel %vm1158_vm3, %v6704_v61, %v1694_v28  ;;  %v1700_v45 = vrot.slane %v6684_v49, 5 }
 0x1a4   :  { %v1687_v42 = vsel %vm1167_vm6, %v1686_v43, %v1685_v37  ;;  %v1959_v55 = vrot.slane %v6686_v13, 3  ;;  %v1697_v35 = vsel %vm1161_vm4, %v1696_v18, %v1695_v44  ;;  %v1960_v48 = vrot.slane %v6698_v58, 2  ;;  %v5805_v44 = vld [vmem:[%s8135_s4 + $0x78] ss:$12 sps:$4 sm:$0xff]  }
 0x1a5   :  { %v1689_v32 = vsel %vm1170_vm7, %v1688_v29, %v1687_v42  ;;  %v1962_v59 = vrot.slane %v6688_v51, 1  ;;  %v1699_v6 = vsel %vm1164_vm5, %v1698_v40, %v1697_v35  ;;  %v1702_v8 = vrot.slane %v6712_v3, 4  ;;  %v5807_v29 = vld [vmem:[%s8135_s4 + $0x7c] ss:$12 sps:$4 sm:$0xff]  }
 0x1a6   :  { %1566 = vmatpush1.bf16.msra.mxu1 %v5793_v50  ;;  %5334 = vmatpush3.bf16.msra.mxu0 %v5796_v57  ;;  %v1691_v5 = vsel %vm1173_vm8, %v1690_v47, %v1689_v32  ;;  %v1704_v17 = vrot.slane %v6714_v31, 3  ;;  %v1701_v11 = vsel %vm1167_vm6, %v1700_v45, %v1699_v6  ;;  %v1961_v12 = vsel %vm1155_vm2, %v1960_v48, %v1959_v55  ;;  %v5808_v45 = vld [vmem:[%s8135_s4 + $0x80] ss:$12 sps:$4 sm:$0xff]  }
 0x1a7   :  { %1567 = vmatprep.subr.bf16.mxu1 %v5799_v34  ;;  %5335 = vmatprep.subr.bf16.mxu0 %v6171_v15  ;;  %v1965_v19 = vrot.slane %v6692_v33, 7  ;;  %v1967_v20 = vrot.slane %v6694_v54, 6  ;;  %v1703_v62 = vsel %vm1170_vm7, %v1702_v8, %v1701_v11  ;;  %v1963_v21 = vsel %vm1158_vm3, %v1962_v59, %v1961_v12  ;;  %v5811_v59 = vld [vmem:[%s8135_s4 + $0x94] ss:$12 sps:$4 sm:$0xff]  }
 0x1a8   :  { %v1973_v23 = vrot.slane %v6702_v30, 3  ;;  %v1974_v46 = vrot.slane %v6706_v14, 2  ;;  %v1705_v24 = vsel %vm1173_vm8, %v1704_v17, %v1703_v62  ;;  %v1964_v63 = vsel %vm1161_vm4, %v6690_v52, %v1963_v21  ;;  %v5809_v62 = vld [vmem:[%s8135_s4 + $0x90] ss:$12 sps:$4 sm:$0xff]   ;;  %v5812_v21 = vld [vmem:[%s8135_s4 + $0x98] ss:$12 sps:$4 sm:$0xff]  }
 0x1a9   :  { %v1969_v25 = vrot.slane %v6696_v56, 5  ;;  %v1976_v26 = vrot.slane %v6704_v61, 1  ;;  %v6869_v43 = vpack.c.b16 %v1705_v24, %v1691_v5  ;;  %v1966_v36 = vsel %vm1164_vm5, %v1965_v19, %v1964_v63 }
 0x1aa   :  { %1568 = vmatpush1.bf16.msra.mxu1 %v5797_v38  ;;  %5336 = vmatpush3.bf16.msra.mxu0 %v5800_v4  ;;  %v1971_v41 = vrot.slane %v6700_v60, 4  ;;  %v1975_v53 = vsel %vm1155_vm2, %v1974_v46, %v1973_v23  ;;  %v1968_v0 = vsel %vm1167_vm6, %v1967_v20, %v1966_v36  ;;  %v1979_v57 = vrot.slane %v6710_v16, 7 }
 0x1ab   :  { %1569 = vmatprep.subr.bf16.mxu1 %v5803_v9  ;;  %5337 = vmatprep.subr.bf16.mxu0 %v6171_v15  ;;  %v1977_v50 = vsel %vm1158_vm3, %v1976_v26, %v1975_v53  ;;  %v1981_v10 = vrot.slane %v6684_v49, 6  ;;  %v1970_v22 = vsel %vm1170_vm7, %v1969_v25, %v1968_v0  ;;  %v2240_v18 = vrot.slane %v6686_v13, 4  ;;  %v5815_v25 = vld [vmem:[%s8135_s4 + $0xac] ss:$12 sps:$4 sm:$0xff]  }
 0x1ac   :  { %v1978_v47 = vsel %vm1161_vm4, %v6708_v1, %v1977_v50  ;;  %v2241_v34 = vrot.slane %v6698_v58, 3  ;;  %v1972_v37 = vsel %vm1173_vm8, %v1971_v41, %v1970_v22  ;;  %v1983_v40 = vrot.slane %v6712_v3, 5 }
 0x1ad   :  { %v1980_v28 = vsel %vm1164_vm5, %v1979_v57, %v1978_v47  ;;  %v2243_v42 = vrot.slane %v6688_v51, 2  ;;  %v1985_v32 = vrot.slane %v6714_v31, 4  ;;  %v2245_v48 = vrot.slane %v6690_v52, 1  ;;  %v5813_v47 = vld [vmem:[%s8135_s4 + $0xa8] ss:$12 sps:$4 sm:$0xff]  }
 0x1ae   :  { %1570 = vmatpush1.bf16.msra.mxu1 %v5801_v27  ;;  %5338 = vmatpush3.bf16.msra.mxu0 %v5804_v39  ;;  %v1982_v55 = vsel %vm1167_vm6, %v1981_v10, %v1980_v28  ;;  %v2242_v35 = vsel %vm1155_vm2, %v2241_v34, %v2240_v18  ;;  %v2248_v5 = vrot.slane %v6694_v54, 7  ;;  %v2254_v6 = vrot.slane %v6702_v30, 4  ;;  %v5816_v18 = vld [vmem:[%s8135_s4 + $0xb0] ss:$12 sps:$4 sm:$0xff]  }
 0x1af   :  { %1571 = vmatprep.subr.bf16.mxu1 %v5807_v29  ;;  %5339 = vmatprep.subr.bf16.mxu0 %v6171_v15  ;;  %v1984_v38 = vsel %vm1170_vm7, %v1983_v40, %v1982_v55  ;;  %v2244_v4 = vsel %vm1158_vm3, %v2243_v42, %v2242_v35  ;;  %v2255_v9 = vrot.slane %v6706_v14, 3  ;;  %v2257_v11 = vrot.slane %v6704_v61, 2  ;;  %v5819_v42 = vld [vmem:[%s8135_s4 + $0x184] ss:$12 sps:$4 sm:$0xff]  }
 0x1b0   :  { %v1986_v8 = vsel %vm1173_vm8, %v1985_v32, %v1984_v38  ;;  %v2246_v17 = vsel %vm1161_vm4, %v2245_v48, %v2244_v4  ;;  %v2250_v20 = vrot.slane %v6696_v56, 6  ;;  %v2252_v46 = vrot.slane %v6700_v60, 5 }
 0x1b1   :  { %v6913_v12 = vpack.c.b16 %v1986_v8, %v1972_v37  ;;  %v2247_v19 = vsel %vm1164_vm5, %v6692_v33, %v2246_v17  ;;  %v2256_v24 = vsel %vm1155_vm2, %v2255_v9, %v2254_v6  ;;  %v2259_v63 = vrot.slane %v6708_v1, 1  ;;  %v5817_v8 = vld [vmem:[%s8135_s4 + $0x180] ss:$12 sps:$4 sm:$0xff]   ;;  %v5820_v17 = vld [vmem:[%s8135_s4 + $0x188] ss:$12 sps:$4 sm:$0xff]  }
 0x1b2   :  { %1572 = vmatpush1.bf16.msra.mxu1 %v5805_v44  ;;  %5340 = vmatpush3.bf16.msra.mxu0 %v5808_v45  ;;  %v2249_v23 = vsel %vm1167_vm6, %v2248_v5, %v2247_v19  ;;  %v2258_v27 = vsel %vm1158_vm3, %v2257_v11, %v2256_v24  ;;  %v2521_v39 = vrot.slane %v6686_v13, 5  ;;  %v2522_v36 = vrot.slane %v6698_v58, 4 }
 0x1b3   :  { %1573 = vmatprep.subr.bf16.mxu1 %v5811_v59  ;;  %5341 = vmatprep.subr.bf16.mxu0 %v6171_v15  ;;  %v2251_v26 = vsel %vm1170_vm7, %v2250_v20, %v2249_v23  ;;  %v2260_v53 = vsel %vm1161_vm4, %v2259_v63, %v2258_v27  ;;  %v2262_v29 = vrot.slane %v6684_v49, 7  ;;  %v2524_v0 = vrot.slane %v6688_v51, 3 }
 0x1b4   :  { %v2253_v41 = vsel %vm1173_vm8, %v2252_v46, %v2251_v26  ;;  %v2261_v50 = vsel %vm1164_vm5, %v6710_v16, %v2260_v53  ;;  %v2264_v57 = vrot.slane %v6712_v3, 6  ;;  %v2523_v10 = vsel %vm1155_vm2, %v2522_v36, %v2521_v39  ;;  %v5821_v53 = vld [vmem:[%s8135_s4 + $0x198] ss:$12 sps:$4 sm:$0xff]  }
 0x1b5   :  { %v2526_v22 = vrot.slane %v6690_v52, 2  ;;  %v2263_v34 = vsel %vm1167_vm6, %v2262_v29, %v2261_v50  ;;  %v2266_v37 = vrot.slane %v6714_v31, 5  ;;  %v2525_v28 = vsel %vm1158_vm3, %v2524_v0, %v2523_v10  ;;  %v5824_v29 = vld [vmem:[%s8135_s4 + $0x1a0] ss:$12 sps:$4 sm:$0xff]  }
 0x1b6   :  { %1574 = vmatpush1.bf16.msra.mxu1 %v5809_v62  ;;  %5342 = vmatpush3.bf16.msra.mxu0 %v5812_v21  ;;  %v2528_v40 = vrot.slane %v6692_v33, 1  ;;  %v2265_v44 = vsel %vm1170_vm7, %v2264_v57, %v2263_v34  ;;  %v2531_v55 = vrot.slane %v6696_v56, 7  ;;  %v2535_v32 = vrot.slane %v6702_v30, 5  ;;  %v5823_v62 = vld [vmem:[%s8135_s4 + $0x19c] ss:$12 sps:$4 sm:$0xff]  }
 0x1b7   :  { %1575 = vmatprep.subr.bf16.mxu1 %v5815_v25  ;;  %5343 = vmatprep.subr.bf16.mxu0 %v6171_v15  ;;  %v2527_v45 = vsel %vm1161_vm4, %v2526_v22, %v2525_v28  ;;  %v2267_v35 = vsel %vm1173_vm8, %v2266_v37, %v2265_v44  ;;  %v2536_v59 = vrot.slane %v6706_v14, 4  ;;  %v2538_v38 = vrot.slane %v6704_v61, 3  ;;  %v5827_v10 = vld [vmem:[%s8135_s4 + $0x1b4] ss:$12 sps:$4 sm:$0xff]  }
 0x1b8   :  { %v2529_v48 = vsel %vm1164_vm5, %v2528_v40, %v2527_v45  ;;  %v6967_v4 = vpack.c.b16 %v2267_v35, %v2253_v41  ;;  %v2533_v6 = vrot.slane %v6700_v60, 6  ;;  %v2540_v19 = vrot.slane %v6708_v1, 2  ;;  %v5825_v35 = vld [vmem:[%s8135_s4 + $0x1b0] ss:$12 sps:$4 sm:$0xff]  }
 0x1b9   :  { %v2530_v5 = vsel %vm1167_vm6, %v6694_v54, %v2529_v48  ;;  %v2537_v11 = vsel %vm1155_vm2, %v2536_v59, %v2535_v32  ;;  %v2542_v20 = vrot.slane %v6710_v16, 1  ;;  %v2802_v46 = vrot.slane %v6686_v13, 6  ;;  %v5828_v48 = vld [vmem:[%s8135_s4 + $0x1b8] ss:$12 sps:$4 sm:$0xff]  }
 0x1ba   :  { %1576 = vmatpush1.bf16.msra.mxu1 %v5813_v47  ;;  %5344 = vmatpush3.bf16.msra.mxu0 %v5816_v18  ;;  %v2532_v9 = vsel %vm1170_vm7, %v2531_v55, %v2530_v5  ;;  %v2539_v23 = vsel %vm1158_vm3, %v2538_v38, %v2537_v11  ;;  %v2803_v24 = vrot.slane %v6698_v58, 5  ;;  %v2545_v25 = vrot.slane %v6712_v3, 7 }
 0x1bb   :  { %1836 = vmatprep.subr.bf16.mxu1 %v5819_v42  ;;  %5349 = vmatprep.subr.bf16.mxu0 %v6171_v15  ;;  %v2534_v21 = vsel %vm1173_vm8, %v2533_v6, %v2532_v9  ;;  %v2541_v63 = vsel %vm1161_vm4, %v2540_v19, %v2539_v23  ;;  %v2805_v26 = vrot.slane %v6688_v51, 4  ;;  %v2547_v39 = vrot.slane %v6714_v31, 6  ;;  %v5831_v6 = vld [vmem:[%s8135_s4 + $0x1cc] ss:$12 sps:$4 sm:$0xff]  }
 0x1bc   :  { %v2543_v27 = vsel %vm1164_vm5, %v2542_v20, %v2541_v63  ;;  %v2804_v36 = vsel %vm1155_vm2, %v2803_v24, %v2802_v46  ;;  %v2807_v41 = vrot.slane %v6690_v52, 3  ;;  %v2809_v50 = vrot.slane %v6692_v33, 2  ;;  %v5829_v46 = vld [vmem:[%s8135_s4 + $0x1c8] ss:$12 sps:$4 sm:$0xff]   ;;  %v5832_v24 = vld [vmem:[%s8135_s4 + $0x1d0] ss:$12 sps:$4 sm:$0xff]  }
 0x1bd   :  { %1594 = vmatmul.mubr.bf16.vlgmr.msra.gmra.mrb[32].mxu1 %v6822_v7  ;;  %5346 = vmatmul.mubr.bf16.vlgmr.msra.gmra.mrb[52].mxu0 %v6822_v7  ;;  %v2544_v7 = vsel %vm1167_vm6, %v6684_v49, %v2543_v27  ;;  %v2806_v0 = vsel %vm1158_vm3, %v2805_v26, %v2804_v36  ;;  %v2811_v57 = vrot.slane %v6694_v54, 1  ;;  %v2816_v18 = vrot.slane %v6702_v30, 6 }
 0x1be   :  { %1837 = vmatpush1.bf16.msra.mxu1 %v5817_v8  ;;  %5350 = vmatpush3.bf16.msra.mxu0 %v5820_v17  ;;  %v2546_v22 = vsel %vm1170_vm7, %v2545_v25, %v2544_v7  ;;  %v2808_v47 = vsel %vm1161_vm4, %v2807_v41, %v2806_v0  ;;  %v2817_v34 = vrot.slane %v6706_v14, 5  ;;  %v2814_v40 = vrot.slane %v6700_v60, 7  ;;  %v5835_v25 = vld [vmem:[%s8135_s4 + $0x1e4] ss:$12 sps:$4 sm:$0xff]  }
 0x1bf   :  { %1838 = vmatprep.subr.bf16.mxu1 %v5823_v62  ;;  %5351 = vmatprep.subr.bf16.mxu0 %v6171_v15  ;;  %v2548_v37 = vsel %vm1173_vm8, %v2547_v39, %v2546_v22  ;;  %v2810_v28 = vsel %vm1164_vm5, %v2809_v50, %v2808_v47  ;;  %v2819_v42 = vrot.slane %v6704_v61, 4  ;;  %v2821_v32 = vrot.slane %v6708_v1, 3 }
 0x1c0   :  { %1868 = vmatprep.mubr.bf16.mxu1 %v6172_v2  ;;  %5365 = vmatprep.mubr.msk.bf16.mxu0 %vm6173_vm1, %v6171_v15  ;;  %v7025_v44 = vpack.c.b16 %v2548_v37, %v2534_v21  ;;  %v2812_v45 = vsel %vm1167_vm6, %v2811_v57, %v2810_v28  ;;  %v2818_v55 = vsel %vm1155_vm2, %v2817_v34, %v2816_v18  ;;  %v2823_v5 = vrot.slane %v6710_v16, 2  ;;  %v5837_v37 = vld [vmem:[%s8135_s4 + $0x1f8] ss:$12 sps:$4 sm:$0xff]  }
 0x1c1   :  { %v2813_v59 = vsel %vm1170_vm7, %v6696_v56, %v2812_v45  ;;  %v2820_v38 = vsel %vm1158_vm3, %v2819_v42, %v2818_v55  ;;  %v2825_v9 = vrot.slane %v6684_v49, 1  ;;  %v3083_v19 = vrot.slane %v6686_v13, 7  ;;  %v5841_v42 = vld [vmem:[%s8135_s4 + $0x210] ss:$12 sps:$4 sm:$0xff]   ;;  %v5844_v45 = vld [vmem:[%s8135_s4 + $0x218] ss:$12 sps:$4 sm:$0xff]  }
 0x1c2   :  { %1839 = vmatpush1.bf16.msra.mxu1 %v5821_v53  ;;  %5352 = vmatpush3.bf16.msra.mxu0 %v5824_v29  ;;  %v2815_v8 = vsel %vm1173_vm8, %v2814_v40, %v2813_v59  ;;  %v2822_v17 = vsel %vm1161_vm4, %v2821_v32, %v2820_v38  ;;  %v3084_v20 = vrot.slane %v6698_v58, 6  ;;  %v3086_v62 = vrot.slane %v6688_v51, 5  ;;  %v5847_v55 = vld [vmem:[%s8135_s4 + $0x22c] ss:$12 sps:$4 sm:$0xff]   ;;  %v5848_v32 = vld [vmem:[%s8135_s4 + $0x230] ss:$12 sps:$4 sm:$0xff]  }
 0x1c3   :  { %1840 = vmatprep.subr.bf16.mxu1 %v5827_v10  ;;  %5353 = vmatprep.subr.bf16.mxu0 %v6171_v15  ;;  %v2824_v11 = vsel %vm1164_vm5, %v2823_v5, %v2822_v17  ;;  %v2828_v23 = vrot.slane %v6714_v31, 7  ;;  %v3088_v51 = vrot.slane %v6690_v52, 4  ;;  %v3090_v63 = vrot.slane %v6692_v33, 3  ;;  %v5852_v59 = vld [vmem:[%s8135_s4 + $0x248] ss:$12 sps:$4 sm:$0xff]  }
 0x1c4   :  { %v2826_v21 = vsel %vm1167_vm6, %v2825_v9, %v2824_v11  ;;  %v3085_v58 = vsel %vm1155_vm2, %v3084_v20, %v3083_v19  ;;  %v3092_v39 = vrot.slane %v6694_v54, 2  ;;  %v3097_v36 = vrot.slane %v6702_v30, 7  ;;  %v5833_v54 = vld [vmem:[%s8135_s4 + $0x1e0] ss:$12 sps:$4 sm:$0xff]   ;;  %v5836_v30 = vld [vmem:[%s8135_s4 + $0x1e8] ss:$12 sps:$4 sm:$0xff]  }
 0x1c5   :  { %v2827_v13 = vsel %vm1170_vm7, %v6712_v3, %v2826_v21  ;;  %v3087_v27 = vsel %vm1158_vm3, %v3086_v62, %v3085_v58  ;;  %v3098_v33 = vrot.slane %v6706_v14, 6  ;;  %v3100_v53 = vrot.slane %v6704_v61, 5  ;;  %v5855_v38 = vld [vmem:[%s8135_s4 + $0x25c] ss:$12 sps:$4 sm:$0xff]   ;;  %v5853_v5 = vld [vmem:[%s8135_s4 + $0x258] ss:$12 sps:$4 sm:$0xff]  }
 0x1c6   :  { %1841 = vmatpush1.bf16.msra.mxu1 %v5825_v35  ;;  %5354 = vmatpush3.bf16.msra.mxu0 %v5828_v48  ;;  %v2829_v26 = vsel %vm1173_vm8, %v2828_v23, %v2827_v13  ;;  %v3089_v52 = vsel %vm1161_vm4, %v3088_v51, %v3087_v27  ;;  %v3094_v7 = vrot.slane %v6696_v56, 1  ;;  %v3102_v61 = vrot.slane %v6708_v1, 4  ;;  %v5839_v56 = vld [vmem:[%s8135_s4 + $0x1fc] ss:$12 sps:$4 sm:$0xff]   ;;  %v5851_v35 = vld [vmem:[%s8135_s4 + $0x244] ss:$12 sps:$4 sm:$0xff]  }
 0x1c7   :  { %1842 = vmatprep.subr.bf16.mxu1 %v5831_v6  ;;  %5355 = vmatprep.subr.bf16.mxu0 %v6171_v15  ;;  %v7072_v41 = vpack.c.b16 %v2829_v26, %v2815_v8  ;;  %v3091_v29 = vsel %vm1164_vm5, %v3090_v63, %v3089_v52  ;;  %v3099_v14 = vsel %vm1155_vm2, %v3098_v33, %v3097_v36  ;;  %v3104_v10 = vrot.slane %v6710_v16, 3  ;;  %v5840_v16 = vld [vmem:[%s8135_s4 + $0x200] ss:$12 sps:$4 sm:$0xff]   ;;  %v5860_v17 = vld [vmem:[%s8135_s4 + $0x278] ss:$12 sps:$4 sm:$0xff]  }
 0x1c8   :  { %v3093_v0 = vsel %vm1167_vm6, %v3092_v39, %v3091_v29  ;;  %v3101_v57 = vsel %vm1158_vm3, %v3100_v53, %v3099_v14  ;;  %v3106_v1 = vrot.slane %v6684_v49, 2  ;;  %v3108_v34 = vrot.slane %v6712_v3, 1  ;;  %v5843_v49 = vld [vmem:[%s8135_s4 + $0x214] ss:$12 sps:$4 sm:$0xff]   ;;  %v5863_v9 = vld [vmem:[%s8135_s4 + $0x28c] ss:$12 sps:$4 sm:$0xff]  }
 0x1c9   :  { %v3095_v50 = vsel %vm1170_vm7, %v3094_v7, %v3093_v0  ;;  %v3103_v47 = vsel %vm1161_vm4, %v3102_v61, %v3101_v57  ;;  %v5849_v48 = vld [vmem:[%s8135_s4 + $0x240] ss:$12 sps:$4 sm:$0xff]   ;;  %v5861_v11 = vld [vmem:[%s8135_s4 + $0x288] ss:$12 sps:$4 sm:$0xff]   ;;  %v5864_v19 = vld [vmem:[%s8135_s4 + $0x290] ss:$12 sps:$4 sm:$0xff]  }
 0x1ca   :  { %1843 = vmatpush1.bf16.msra.mxu1 %v5829_v46  ;;  %5356 = vmatpush3.bf16.msra.mxu0 %v5832_v24  ;;  %v3096_v22 = vsel %vm1173_vm8, %v6700_v60, %v3095_v50  ;;  %v3105_v18 = vsel %vm1164_vm5, %v3104_v10, %v3103_v47  ;;  %v5856_v6 = vld [vmem:[%s8135_s4 + $0x260] ss:$12 sps:$4 sm:$0xff]   ;;  %v5867_v20 = vld [vmem:[%s8135_s4 + $0x2a4] ss:$12 sps:$4 sm:$0xff]   ;;  %v5868_v21 = vld [vmem:[%s8135_s4 + $0x2a8] ss:$12 sps:$4 sm:$0xff]  }
 0x1cb   :  { %1844 = vmatprep.subr.bf16.mxu1 %v5835_v25  ;;  %5357 = vmatprep.subr.bf16.mxu0 %v6171_v15  ;;  %v3107_v60 = vsel %vm1167_vm6, %v3106_v1, %v3105_v18  ;;  %v5859_v8 = vld [vmem:[%s8135_s4 + $0x274] ss:$12 sps:$4 sm:$0xff]   ;;  %v5871_v23 = vld [vmem:[%s8135_s4 + $0x2bc] ss:$12 sps:$4 sm:$0xff]   ;;  %v5869_v46 = vld [vmem:[%s8135_s4 + $0x2b8] ss:$12 sps:$4 sm:$0xff]  }
 0x1cc   :  { %v3109_v3 = vsel %vm1170_vm7, %v3108_v34, %v3107_v60  ;;  %v5865_v62 = vld [vmem:[%s8135_s4 + $0x2a0] ss:$12 sps:$4 sm:$0xff]   ;;  %v5873_v58 = vld [vmem:[%s8135_s4 + $0x2d0] ss:$12 sps:$4 sm:$0xff]   ;;  %v5876_v51 = vld [vmem:[%s8135_s4 + $0x2d8] ss:$12 sps:$4 sm:$0xff]  }
 0x1cd   :  { %v3110_v28 = vsel %vm1173_vm8, %v6714_v31, %v3109_v3  ;;  %v5845_v31 = vld [vmem:[%s8135_s4 + $0x228] ss:$12 sps:$4 sm:$0xff]   ;;  %v5872_v24 = vld [vmem:[%s8135_s4 + $0x2c0] ss:$12 sps:$4 sm:$0xff]   ;;  %v5880_v26 = vld [vmem:[%s8135_s4 + $0x2f0] ss:$12 sps:$4 sm:$0xff]  }
 0x1ce   :  { %1845 = vmatpush1.bf16.msra.mxu1 %v5833_v54  ;;  %5358 = vmatpush3.bf16.msra.mxu0 %v5836_v30  ;;  %v7115_v40 = vpack.c.b16 %v3110_v28, %v3096_v22  ;;  %v5875_v13 = vld [vmem:[%s8135_s4 + $0x2d4] ss:$12 sps:$4 sm:$0xff]   ;;  %v5879_v63 = vld [vmem:[%s8135_s4 + $0x2ec] ss:$12 sps:$4 sm:$0xff]   ;;  %v5883_v27 = vld [vmem:[%s8135_s4 + $0x304] ss:$12 sps:$4 sm:$0xff]  }
 0x1cf   :  { %1846 = vmatprep.subr.bf16.mxu1 %v5839_v56  ;;  %5359 = vmatprep.subr.bf16.mxu0 %v6171_v15  ;;  %v5877_v25 = vld [vmem:[%s8135_s4 + $0x2e8] ss:$12 sps:$4 sm:$0xff]   ;;  %v5881_v39 = vld [vmem:[%s8135_s4 + $0x300] ss:$12 sps:$4 sm:$0xff]   ;;  %v5885_v33 = vld [vmem:[%s8135_s4 + $0x318] ss:$12 sps:$4 sm:$0xff]  }
 0x1d0   :  { %v5884_v36 = vld [vmem:[%s8135_s4 + $0x308] ss:$12 sps:$4 sm:$0xff]   ;;  %v5888_v53 = vld [vmem:[%s8135_s4 + $0x320] ss:$12 sps:$4 sm:$0xff]   ;;  %v5892_v7 = vld [vmem:[%s8135_s4 + $0x338] ss:$12 sps:$4 sm:$0xff]  }
 0x1d1   :  { %v5887_v52 = vld [vmem:[%s8135_s4 + $0x31c] ss:$12 sps:$4 sm:$0xff]   ;;  %v5891_v29 = vld [vmem:[%s8135_s4 + $0x334] ss:$12 sps:$4 sm:$0xff]   ;;  %v5895_v54 = vld [vmem:[%s8135_s4 + $0x34c] ss:$12 sps:$4 sm:$0xff]  }
 0x1d2   :  { %1847 = vmatpush1.bf16.msra.mxu1 %v5837_v37  ;;  %5360 = vmatpush3.bf16.msra.mxu0 %v5840_v16  ;;  %v5893_v30 = vld [vmem:[%s8135_s4 + $0x348] ss:$12 sps:$4 sm:$0xff]   ;;  %v5896_v0 = vld [vmem:[%s8135_s4 + $0x350] ss:$12 sps:$4 sm:$0xff]   ;;  %v5897_v61 = vld [vmem:[%s8135_s4 + $0x360] ss:$12 sps:$4 sm:$0xff]  }
 0x1d3   :  { %1848 = vmatprep.subr.bf16.mxu1 %v5843_v49  ;;  %5361 = vmatprep.subr.bf16.mxu0 %v6171_v15  ;;  %v5899_v14 = vld [vmem:[%s8135_s4 + $0x364] ss:$12 sps:$4 sm:$0xff]   ;;  %v5900_v56 = vld [vmem:[%s8135_s4 + $0x368] ss:$12 sps:$4 sm:$0xff]   ;;  %v5904_v10 = vld [vmem:[%s8135_s4 + $0x380] ss:$12 sps:$4 sm:$0xff]  }
 0x1d4   :  { %v5903_v50 = vld [vmem:[%s8135_s4 + $0x37c] ss:$12 sps:$4 sm:$0xff]   ;;  %v5901_v57 = vld [vmem:[%s8135_s4 + $0x378] ss:$12 sps:$4 sm:$0xff]   ;;  %v5907_v22 = vld [vmem:[%s8135_s4 + $0x394] ss:$12 sps:$4 sm:$0xff]  }
 0x1d5   :  { %v5905_v47 = vld [vmem:[%s8135_s4 + $0x390] ss:$12 sps:$4 sm:$0xff]   ;;  %v5908_v1 = vld [vmem:[%s8135_s4 + $0x398] ss:$12 sps:$4 sm:$0xff]   ;;  %v5909_v34 = vld [vmem:[%s8135_s4 + $0x3a8] ss:$12 sps:$4 sm:$0xff]  }
 0x1d6   :  { %1849 = vmatpush1.bf16.msra.mxu1 %v5841_v42  ;;  %5362 = vmatpush3.bf16.msra.mxu0 %v5844_v45  ;;  %v5911_v18 = vld [vmem:[%s8135_s4 + $0x3ac] ss:$12 sps:$4 sm:$0xff]   ;;  %v5912_v37 = vld [vmem:[%s8135_s4 + $0x3b0] ss:$12 sps:$4 sm:$0xff]   ;;  %v5916_v49 = vld [vmem:[%s8135_s4 + $0x3c8] ss:$12 sps:$4 sm:$0xff]  }
 0x1d7   :  { %1850 = vmatprep.subr.bf16.mxu1 %v5847_v55  ;;  %5363 = vmatprep.subr.bf16.mxu0 %v6171_v15  ;;  %v5915_v16 = vld [vmem:[%s8135_s4 + $0x3c4] ss:$12 sps:$4 sm:$0xff]   ;;  %v5913_v60 = vld [vmem:[%s8135_s4 + $0x3c0] ss:$12 sps:$4 sm:$0xff]   ;;  %v5919_v3 = vld [vmem:[%s8135_s4 + $0x3dc] ss:$12 sps:$4 sm:$0xff]  }
 0x1d8   :  { %v5917_v28 = vld [vmem:[%s8135_s4 + $0x3d8] ss:$12 sps:$4 sm:$0xff]   ;;  %v5920_v42 = vld [vmem:[%s8135_s4 + $0x3e0] ss:$12 sps:$4 sm:$0xff]  }
 0x1d9   :  { %v5923_v45 = vld [vmem:[%s8135_s4 + $0x3f4] ss:$12 sps:$4 sm:$0xff]   ;;  %v5924_v55 = vld [vmem:[%s8135_s4 + $0x3f8] ss:$12 sps:$4 sm:$0xff]  }
 0x1da   :  { %1851 = vmatpush1.bf16.msra.mxu1 %v5845_v31  ;;  %5364 = vmatpush3.bf16.msra.mxu0 %v5848_v32  ;;  %v5927_v31 = vld [vmem:[%s8135_s4 + $0x40c] ss:$12 sps:$4 sm:$0xff]   ;;  %v5925_v32 = vld [vmem:[%s8135_s4 + $0x408] ss:$12 sps:$4 sm:$0xff]  }
 0x1db   :  { %2117 = vmatprep.subr.bf16.mxu1 %v5851_v35  ;;  %5369 = vmatprep.subr.bf16.mxu0 %v6171_v15  ;;  %v5928_v35 = vld [vmem:[%s8135_s4 + $0x410] ss:$12 sps:$4 sm:$0xff]  }
 0x1dd   :  { %1869 = vmatmul.mubr.bf16.vlgmr.msra.gmra.mrb[32].mxu1 %v6869_v43  ;;  %5366 = vmatmul.mubr.bf16.vlgmr.msra.gmra.mrb[56].mxu0 %v6869_v43  ;;  %v5857_v43 = vld [vmem:[%s8135_s4 + $0x270] ss:$12 sps:$4 sm:$0xff]  }
 0x1de   :  { %2118 = vmatpush1.bf16.msra.mxu1 %v5849_v48  ;;  %5370 = vmatpush3.bf16.msra.mxu0 %v5852_v59  ;;  %v5931_v48 = vld [vmem:[%s8135_s4 + $0x424] ss:$12 sps:$4 sm:$0xff]   ;;  %v5929_v59 = vld [vmem:[%s8135_s4 + $0x420] ss:$12 sps:$4 sm:$0xff]  }
 0x1df   :  { %2119 = vmatprep.subr.bf16.mxu1 %v5855_v38  ;;  %5371 = vmatprep.subr.bf16.mxu0 %v6171_v15  ;;  %v5932_v38 = vld [vmem:[%s8135_s4 + $0x428] ss:$12 sps:$4 sm:$0xff]  }
 0x1e0   :  { %2149 = vmatprep.mubr.bf16.mxu1 %v6172_v2  ;;  %5385 = vmatprep.mubr.msk.bf16.mxu0 %vm6173_vm1, %v6171_v15 }
 0x1e2   :  { %2120 = vmatpush1.bf16.msra.mxu1 %v5853_v5  ;;  %5372 = vmatpush3.bf16.msra.mxu0 %v5856_v6  ;;  %v5935_v5 = vld [vmem:[%s8135_s4 + $0x43c] ss:$12 sps:$4 sm:$0xff]   ;;  %v5933_v6 = vld [vmem:[%s8135_s4 + $0x438] ss:$12 sps:$4 sm:$0xff]  }
 0x1e3   :  { %2121 = vmatprep.subr.bf16.mxu1 %v5859_v8  ;;  %5373 = vmatprep.subr.bf16.mxu0 %v6171_v15  ;;  %v5936_v8 = vld [vmem:[%s8135_s4 + $0x440] ss:$12 sps:$4 sm:$0xff]  }
 0x1e6   :  { %2122 = vmatpush1.bf16.msra.mxu1 %v5857_v43  ;;  %5374 = vmatpush3.bf16.msra.mxu0 %v5860_v17  ;;  %v5939_v43 = vld [vmem:[%s8135_s4 + $0x454] ss:$12 sps:$4 sm:$0xff]   ;;  %v5937_v17 = vld [vmem:[%s8135_s4 + $0x450] ss:$12 sps:$4 sm:$0xff]  }
 0x1e7   :  { %2123 = vmatprep.subr.bf16.mxu1 %v5863_v9  ;;  %5375 = vmatprep.subr.bf16.mxu0 %v6171_v15  ;;  %v5940_v9 = vld [vmem:[%s8135_s4 + $0x458] ss:$12 sps:$4 sm:$0xff]  }
 0x1ea   :  { %2124 = vmatpush1.bf16.msra.mxu1 %v5861_v11  ;;  %5376 = vmatpush3.bf16.msra.mxu0 %v5864_v19  ;;  %v5943_v11 = vld [vmem:[%s8135_s4 + $0x46c] ss:$12 sps:$4 sm:$0xff]   ;;  %v5941_v19 = vld [vmem:[%s8135_s4 + $0x468] ss:$12 sps:$4 sm:$0xff]  }
 0x1eb   :  { %2125 = vmatprep.subr.bf16.mxu1 %v5867_v20  ;;  %5377 = vmatprep.subr.bf16.mxu0 %v6171_v15  ;;  %v5944_v20 = vld [vmem:[%s8135_s4 + $0x470] ss:$12 sps:$4 sm:$0xff]  }
 0x1ee   :  { %2126 = vmatpush1.bf16.msra.mxu1 %v5865_v62  ;;  %5378 = vmatpush3.bf16.msra.mxu0 %v5868_v21  ;;  %v5947_v62 = vld [vmem:[%s8135_s4 + $0x484] ss:$12 sps:$4 sm:$0xff]   ;;  %v5945_v21 = vld [vmem:[%s8135_s4 + $0x480] ss:$12 sps:$4 sm:$0xff]  }
 0x1ef   :  { %2127 = vmatprep.subr.bf16.mxu1 %v5871_v23  ;;  %5379 = vmatprep.subr.bf16.mxu0 %v6171_v15  ;;  %v5948_v23 = vld [vmem:[%s8135_s4 + $0x488] ss:$12 sps:$4 sm:$0xff]  }
 0x1f2   :  { %2128 = vmatpush1.bf16.msra.mxu1 %v5869_v46  ;;  %5380 = vmatpush3.bf16.msra.mxu0 %v5872_v24  ;;  %v5951_v46 = vld [vmem:[%s8135_s4 + $0x49c] ss:$12 sps:$4 sm:$0xff]   ;;  %v5949_v24 = vld [vmem:[%s8135_s4 + $0x498] ss:$12 sps:$4 sm:$0xff]  }
 0x1f3   :  { %2129 = vmatprep.subr.bf16.mxu1 %v5875_v13  ;;  %5381 = vmatprep.subr.bf16.mxu0 %v6171_v15  ;;  %v5952_v13 = vld [vmem:[%s8135_s4 + $0x4a0] ss:$12 sps:$4 sm:$0xff]  }
 0x1f6   :  { %2130 = vmatpush1.bf16.msra.mxu1 %v5873_v58  ;;  %5382 = vmatpush3.bf16.msra.mxu0 %v5876_v51  ;;  %v5955_v58 = vld [vmem:[%s8135_s4 + $0x4b4] ss:$12 sps:$4 sm:$0xff]   ;;  %v5956_v51 = vld [vmem:[%s8135_s4 + $0x4b8] ss:$12 sps:$4 sm:$0xff]  }
 0x1f7   :  { %2131 = vmatprep.subr.bf16.mxu1 %v5879_v63  ;;  %5383 = vmatprep.subr.bf16.mxu0 %v6171_v15  ;;  %v5959_v63 = vld [vmem:[%s8135_s4 + $0x4cc] ss:$12 sps:$4 sm:$0xff]  }
 0x1fa   :  { %2132 = vmatpush1.bf16.msra.mxu1 %v5877_v25  ;;  %5384 = vmatpush3.bf16.msra.mxu0 %v5880_v26  ;;  %v5957_v25 = vld [vmem:[%s8135_s4 + $0x4c8] ss:$12 sps:$4 sm:$0xff]   ;;  %v5960_v26 = vld [vmem:[%s8135_s4 + $0x4d0] ss:$12 sps:$4 sm:$0xff]  }
 0x1fb   :  { %2398 = vmatprep.subr.bf16.mxu1 %v5883_v27  ;;  %5389 = vmatprep.subr.bf16.mxu0 %v6171_v15  ;;  %v5963_v27 = vld [vmem:[%s8135_s4 + $0x4e4] ss:$12 sps:$4 sm:$0xff]  }
 0x1fd   :  { %2150 = vmatmul.mubr.bf16.vlgmr.msra.gmra.mrb[32].mxu1 %v6913_v12  ;;  %5386 = vmatmul.mubr.bf16.vlgmr.msra.gmra.mrb[60].mxu0 %v6913_v12  ;;  %v5889_v12 = vld [vmem:[%s8135_s4 + $0x330] ss:$12 sps:$4 sm:$0xff]  }
 0x1fe   :  { %2399 = vmatpush1.bf16.msra.mxu1 %v5881_v39  ;;  %5390 = vmatpush3.bf16.msra.mxu0 %v5884_v36  ;;  %v5961_v39 = vld [vmem:[%s8135_s4 + $0x4e0] ss:$12 sps:$4 sm:$0xff]   ;;  %v5964_v36 = vld [vmem:[%s8135_s4 + $0x4e8] ss:$12 sps:$4 sm:$0xff]  }
 0x1ff   :  { %2400 = vmatprep.subr.bf16.mxu1 %v5887_v52  ;;  %5391 = vmatprep.subr.bf16.mxu0 %v6171_v15  ;;  %v5967_v52 = vld [vmem:[%s8135_s4 + $0x4fc] ss:$12 sps:$4 sm:$0xff]  }
 0x200   :  { %2430 = vmatprep.mubr.bf16.mxu1 %v6172_v2  ;;  %5405 = vmatprep.mubr.msk.bf16.mxu0 %vm6173_vm1, %v6171_v15 }
 0x202   :  { %2401 = vmatpush1.bf16.msra.mxu1 %v5885_v33  ;;  %5392 = vmatpush3.bf16.msra.mxu0 %v5888_v53  ;;  %v5965_v33 = vld [vmem:[%s8135_s4 + $0x4f8] ss:$12 sps:$4 sm:$0xff]   ;;  %v5968_v53 = vld [vmem:[%s8135_s4 + $0x500] ss:$12 sps:$4 sm:$0xff]  }
 0x203   :  { %2402 = vmatprep.subr.bf16.mxu1 %v5891_v29  ;;  %5393 = vmatprep.subr.bf16.mxu0 %v6171_v15  ;;  %v5971_v29 = vld [vmem:[%s8135_s4 + $0x514] ss:$12 sps:$4 sm:$0xff]  }
 0x206   :  { %2403 = vmatpush1.bf16.msra.mxu1 %v5889_v12  ;;  %5394 = vmatpush3.bf16.msra.mxu0 %v5892_v7  ;;  %v5969_v12 = vld [vmem:[%s8135_s4 + $0x510] ss:$12 sps:$4 sm:$0xff]   ;;  %v5972_v7 = vld [vmem:[%s8135_s4 + $0x518] ss:$12 sps:$4 sm:$0xff]  }
 0x207   :  { %2404 = vmatprep.subr.bf16.mxu1 %v5895_v54  ;;  %5395 = vmatprep.subr.bf16.mxu0 %v6171_v15  ;;  %v5975_v54 = vld [vmem:[%s8135_s4 + $0x52c] ss:$12 sps:$4 sm:$0xff]  }
 0x20a   :  { %2405 = vmatpush1.bf16.msra.mxu1 %v5893_v30  ;;  %5396 = vmatpush3.bf16.msra.mxu0 %v5896_v0  ;;  %v5973_v30 = vld [vmem:[%s8135_s4 + $0x528] ss:$12 sps:$4 sm:$0xff]   ;;  %v5976_v0 = vld [vmem:[%s8135_s4 + $0x530] ss:$12 sps:$4 sm:$0xff]  }
 0x20b   :  { %2406 = vmatprep.subr.bf16.mxu1 %v5899_v14  ;;  %5397 = vmatprep.subr.bf16.mxu0 %v6171_v15  ;;  %v5979_v14 = vld [vmem:[%s8135_s4 + $0x544] ss:$12 sps:$4 sm:$0xff]  }
 0x20e   :  { %2407 = vmatpush1.bf16.msra.mxu1 %v5897_v61  ;;  %5398 = vmatpush3.bf16.msra.mxu0 %v5900_v56  ;;  %v5977_v61 = vld [vmem:[%s8135_s4 + $0x540] ss:$12 sps:$4 sm:$0xff]   ;;  %v5980_v56 = vld [vmem:[%s8135_s4 + $0x548] ss:$12 sps:$4 sm:$0xff]  }
 0x20f   :  { %2408 = vmatprep.subr.bf16.mxu1 %v5903_v50  ;;  %5399 = vmatprep.subr.bf16.mxu0 %v6171_v15  ;;  %v5983_v50 = vld [vmem:[%s8135_s4 + $0x55c] ss:$12 sps:$4 sm:$0xff]  }
 0x212   :  { %2409 = vmatpush1.bf16.msra.mxu1 %v5901_v57  ;;  %5400 = vmatpush3.bf16.msra.mxu0 %v5904_v10  ;;  %v5981_v57 = vld [vmem:[%s8135_s4 + $0x558] ss:$12 sps:$4 sm:$0xff]   ;;  %v5984_v10 = vld [vmem:[%s8135_s4 + $0x560] ss:$12 sps:$4 sm:$0xff]  }
 0x213   :  { %2410 = vmatprep.subr.bf16.mxu1 %v5907_v22  ;;  %5401 = vmatprep.subr.bf16.mxu0 %v6171_v15  ;;  %v5987_v22 = vld [vmem:[%s8135_s4 + $0x574] ss:$12 sps:$4 sm:$0xff]  }
 0x216   :  { %2411 = vmatpush1.bf16.msra.mxu1 %v5905_v47  ;;  %5402 = vmatpush3.bf16.msra.mxu0 %v5908_v1  ;;  %v5988_v47 = vld [vmem:[%s8135_s4 + $0x578] ss:$12 sps:$4 sm:$0xff]  }
 0x217   :  { %2412 = vmatprep.subr.bf16.mxu1 %v5911_v18  ;;  %5403 = vmatprep.subr.bf16.mxu0 %v6171_v15  ;;  %v5991_v1 = vld [vmem:[%s8135_s4 + $0x58c] ss:$12 sps:$4 sm:$0xff]   ;;  %v5989_v18 = vld [vmem:[%s8135_s4 + $0x588] ss:$12 sps:$4 sm:$0xff]  }
 0x21a   :  { %2413 = vmatpush1.bf16.msra.mxu1 %v5909_v34  ;;  %5404 = vmatpush3.bf16.msra.mxu0 %v5912_v37  ;;  %v5992_v34 = vld [vmem:[%s8135_s4 + $0x590] ss:$12 sps:$4 sm:$0xff]  }
 0x21b   :  { %2679 = vmatprep.subr.bf16.mxu1 %v5915_v16  ;;  %5409 = vmatprep.subr.bf16.mxu0 %v6171_v15  ;;  %v5995_v37 = vld [vmem:[%s8135_s4 + $0x5a4] ss:$12 sps:$4 sm:$0xff]   ;;  %v5993_v16 = vld [vmem:[%s8135_s4 + $0x5a0] ss:$12 sps:$4 sm:$0xff]  }
 0x21d   :  { %2431 = vmatmul.mubr.bf16.vlgmr.msra.gmra.mrb[32].mxu1 %v6967_v4  ;;  %5406 = vmatmul.mubr.bf16.vlgmr.msra.gmra.mrb[64].mxu0 %v6967_v4  ;;  %v5921_v4 = vld [vmem:[%s8135_s4 + $0x3f0] ss:$12 sps:$4 sm:$0xff]  }
 0x21e   :  { %2680 = vmatpush1.bf16.msra.mxu1 %v5913_v60  ;;  %5410 = vmatpush3.bf16.msra.mxu0 %v5916_v49  ;;  %v5996_v60 = vld [vmem:[%s8135_s4 + $0x5a8] ss:$12 sps:$4 sm:$0xff]  }
 0x21f   :  { %2681 = vmatprep.subr.bf16.mxu1 %v5919_v3  ;;  %5411 = vmatprep.subr.bf16.mxu0 %v6171_v15  ;;  %v5999_v49 = vld [vmem:[%s8135_s4 + $0x5bc] ss:$12 sps:$4 sm:$0xff]   ;;  %v5997_v3 = vld [vmem:[%s8135_s4 + $0x5b8] ss:$12 sps:$4 sm:$0xff]  }
 0x220   :  { %2711 = vmatprep.mubr.bf16.mxu1 %v6172_v2  ;;  %5425 = vmatprep.mubr.msk.bf16.mxu0 %vm6173_vm1, %v6171_v15 }
 0x222   :  { %2682 = vmatpush1.bf16.msra.mxu1 %v5917_v28  ;;  %5412 = vmatpush3.bf16.msra.mxu0 %v5920_v42  ;;  %v6000_v28 = vld [vmem:[%s8135_s4 + $0x5c0] ss:$12 sps:$4 sm:$0xff]  }
 0x223   :  { %2683 = vmatprep.subr.bf16.mxu1 %v5923_v45  ;;  %5413 = vmatprep.subr.bf16.mxu0 %v6171_v15  ;;  %v6003_v42 = vld [vmem:[%s8135_s4 + $0x5d4] ss:$12 sps:$4 sm:$0xff]  }
 0x226   :  { %2684 = vmatpush1.bf16.msra.mxu1 %v5921_v4  ;;  %5414 = vmatpush3.bf16.msra.mxu0 %v5924_v55 }
 0x227   :  { %2685 = vmatprep.subr.bf16.mxu1 %v5927_v31  ;;  %5415 = vmatprep.subr.bf16.mxu0 %v6171_v15  ;;  %v6001_v31 = vld [vmem:[%s8135_s4 + $0x5d0] ss:$12 sps:$4 sm:$0xff]  }
 0x22a   :  { %2686 = vmatpush1.bf16.msra.mxu1 %v5925_v32  ;;  %5416 = vmatpush3.bf16.msra.mxu0 %v5928_v35  ;;  %v6004_v32 = vld [vmem:[%s8135_s4 + $0x5d8] ss:$12 sps:$4 sm:$0xff]  }
 0x22b   :  { %2687 = vmatprep.subr.bf16.mxu1 %v5931_v48  ;;  %5417 = vmatprep.subr.bf16.mxu0 %v6171_v15  ;;  %v6007_v48 = vld [vmem:[%s8135_s4 + $0x5ec] ss:$12 sps:$4 sm:$0xff]  }
 0x22e   :  { %2688 = vmatpush1.bf16.msra.mxu1 %v5929_v59  ;;  %5418 = vmatpush3.bf16.msra.mxu0 %v5932_v38  ;;  %v6005_v59 = vld [vmem:[%s8135_s4 + $0x5e8] ss:$12 sps:$4 sm:$0xff]   ;;  %v6008_v38 = vld [vmem:[%s8135_s4 + $0x5f0] ss:$12 sps:$4 sm:$0xff]  }
 0x22f   :  { %2689 = vmatprep.subr.bf16.mxu1 %v5935_v5  ;;  %5419 = vmatprep.subr.bf16.mxu0 %v6171_v15  ;;  %v7566_v5 = vld [vmem:[%s8137_s6 + $0x4] ss:$12 sps:$4 sm:$0xff]  }
 0x232   :  { %2690 = vmatpush1.bf16.msra.mxu1 %v5933_v6  ;;  %5420 = vmatpush3.bf16.msra.mxu0 %v5936_v8  ;;  %v7571_v6 = vld [vmem:[%s8137_s6] ss:$12 sps:$4 sm:$0xff]   ;;  %v7576_v8 = vld [vmem:[%s8137_s6 + $0x8] ss:$12 sps:$4 sm:$0xff]  }
 0x233   :  { %2691 = vmatprep.subr.bf16.mxu1 %v5939_v43  ;;  %5421 = vmatprep.subr.bf16.mxu0 %v6171_v15  ;;  %v7582_v43 = vld [vmem:[%s8137_s6 + $0x1c] ss:$12 sps:$4 sm:$0xff]  }
 0x236   :  { %2692 = vmatpush1.bf16.msra.mxu1 %v5937_v17  ;;  %5422 = vmatpush3.bf16.msra.mxu0 %v5940_v9  ;;  %v7591_v17 = vld [vmem:[%s8137_s6 + $0x18] ss:$12 sps:$4 sm:$0xff]   ;;  %v7597_v9 = vld [vmem:[%s8137_s6 + $0x20] ss:$12 sps:$4 sm:$0xff]  }
 0x237   :  { %2693 = vmatprep.subr.bf16.mxu1 %v5943_v11  ;;  %5423 = vmatprep.subr.bf16.mxu0 %v6171_v15  ;;  %v7613_v11 = vld [vmem:[%s8137_s6 + $0x30] ss:$12 sps:$4 sm:$0xff]  }
 0x23a   :  { %2694 = vmatpush1.bf16.msra.mxu1 %v5941_v19  ;;  %5424 = vmatpush3.bf16.msra.mxu0 %v5944_v20  ;;  %v7619_v19 = vld [vmem:[%s8137_s6 + $0x38] ss:$12 sps:$4 sm:$0xff]  }
 0x23b   :  { %2960 = vmatprep.subr.bf16.mxu1 %v5947_v62  ;;  %5429 = vmatprep.subr.bf16.mxu0 %v6171_v15  ;;  %v7625_v20 = vld [vmem:[%s8137_s6 + $0x4c] ss:$12 sps:$4 sm:$0xff]   ;;  %v7632_v62 = vld [vmem:[%s8137_s6 + $0x48] ss:$12 sps:$4 sm:$0xff]  }
 0x23d   :  { %2712 = vmatmul.mubr.bf16.vlgmr.msra.gmra.mrb[32].mxu1 %v7025_v44  ;;  %5426 = vmatmul.mubr.bf16.vlgmr.msra.gmra.mrb[68].mxu0 %v7025_v44  ;;  %v5953_v44 = vld [vmem:[%s8135_s4 + $0x4b0] ss:$12 sps:$4 sm:$0xff]  }
 0x23e   :  { %2961 = vmatpush1.bf16.msra.mxu1 %v5945_v21  ;;  %5430 = vmatpush3.bf16.msra.mxu0 %v5948_v23  ;;  %v7638_v21 = vld [vmem:[%s8137_s6 + $0x50] ss:$12 sps:$4 sm:$0xff]  }
 0x23f   :  { %2962 = vmatprep.subr.bf16.mxu1 %v5951_v46  ;;  %5431 = vmatprep.subr.bf16.mxu0 %v6171_v15  ;;  %v7644_v23 = vld [vmem:[%s8137_s6 + $0x64] ss:$12 sps:$4 sm:$0xff]   ;;  %v7651_v46 = vld [vmem:[%s8137_s6 + $0x60] ss:$12 sps:$4 sm:$0xff]  }
 0x240   :  { %2992 = vmatprep.mubr.bf16.mxu1 %v6172_v2  ;;  %5445 = vmatprep.mubr.msk.bf16.mxu0 %vm6173_vm1, %v6171_v15 }
 0x242   :  { %2963 = vmatpush1.bf16.msra.mxu1 %v5949_v24  ;;  %5432 = vmatpush3.bf16.msra.mxu0 %v5952_v13  ;;  %v7657_v24 = vld [vmem:[%s8137_s6 + $0x68] ss:$12 sps:$4 sm:$0xff]  }
 0x243   :  { %2964 = vmatprep.subr.bf16.mxu1 %v5955_v58  ;;  %5433 = vmatprep.subr.bf16.mxu0 %v6171_v15  ;;  %v7663_v13 = vld [vmem:[%s8137_s6 + $0x7c] ss:$12 sps:$4 sm:$0xff]   ;;  %v7670_v58 = vld [vmem:[%s8137_s6 + $0x78] ss:$12 sps:$4 sm:$0xff]  }
 0x246   :  { %2965 = vmatpush1.bf16.msra.mxu1 %v5953_v44  ;;  %5434 = vmatpush3.bf16.msra.mxu0 %v5956_v51  ;;  %v7676_v44 = vld [vmem:[%s8137_s6 + $0x80] ss:$12 sps:$4 sm:$0xff]  }
 0x247   :  { %2966 = vmatprep.subr.bf16.mxu1 %v5959_v63  ;;  %5435 = vmatprep.subr.bf16.mxu0 %v6171_v15  ;;  %v7682_v51 = vld [vmem:[%s8137_s6 + $0x94] ss:$12 sps:$4 sm:$0xff]  }
 0x24a   :  { %2967 = vmatpush1.bf16.msra.mxu1 %v5957_v25  ;;  %5436 = vmatpush3.bf16.msra.mxu0 %v5960_v26 }
 0x24b   :  { %2968 = vmatprep.subr.bf16.mxu1 %v5963_v27  ;;  %5437 = vmatprep.subr.bf16.mxu0 %v6171_v15 }
 0x24e   :  { %2969 = vmatpush1.bf16.msra.mxu1 %v5961_v39  ;;  %5438 = vmatpush3.bf16.msra.mxu0 %v5964_v36  ;;  %v7690_v39 = vld [vmem:[%s8137_s6 + $0x90] ss:$12 sps:$4 sm:$0xff]   ;;  %v7696_v36 = vld [vmem:[%s8137_s6 + $0x98] ss:$12 sps:$4 sm:$0xff]  }
 0x24f   :  { %2970 = vmatprep.subr.bf16.mxu1 %v5967_v52  ;;  %5439 = vmatprep.subr.bf16.mxu0 %v6171_v15 }
 0x252   :  { %2971 = vmatpush1.bf16.msra.mxu1 %v5965_v33  ;;  %5440 = vmatpush3.bf16.msra.mxu0 %v5968_v53  ;;  %v7703_v53 = vld [vmem:[%s8137_s6 + $0xac] ss:$12 sps:$4 sm:$0xff]  }
 0x253   :  { %2972 = vmatprep.subr.bf16.mxu1 %v5971_v29  ;;  %5441 = vmatprep.subr.bf16.mxu0 %v6171_v15  ;;  %v7710_v29 = vld [vmem:[%s8137_s6 + $0xa8] ss:$12 sps:$4 sm:$0xff]  }
 0x256   :  { %2973 = vmatpush1.bf16.msra.mxu1 %v5969_v12  ;;  %5442 = vmatpush3.bf16.msra.mxu0 %v5972_v7  ;;  %v7716_v12 = vld [vmem:[%s8137_s6 + $0xb0] ss:$12 sps:$4 sm:$0xff]  }
 0x257   :  { %2974 = vmatprep.subr.bf16.mxu1 %v5975_v54  ;;  %5443 = vmatprep.subr.bf16.mxu0 %v6171_v15 }
 0x25a   :  { %2975 = vmatpush1.bf16.msra.mxu1 %v5973_v30  ;;  %5444 = vmatpush3.bf16.msra.mxu0 %v5976_v0 }
 0x25b   :  { %3241 = vmatprep.subr.bf16.mxu1 %v5979_v14  ;;  %5449 = vmatprep.subr.bf16.mxu0 %v6171_v15 }
 0x25d   :  { %2993 = vmatmul.mubr.bf16.vlgmr.msra.gmra.mrb[32].mxu1 %v7072_v41  ;;  %5446 = vmatmul.mubr.bf16.vlgmr.msra.gmra.mrb[72].mxu0 %v7072_v41  ;;  %v5985_v41 = vld [vmem:[%s8135_s4 + $0x570] ss:$12 sps:$4 sm:$0xff]  }
 0x25e   :  { %3242 = vmatpush1.bf16.msra.mxu1 %v5977_v61  ;;  %5450 = vmatpush3.bf16.msra.mxu0 %v5980_v56 }
 0x25f   :  { %3243 = vmatprep.subr.bf16.mxu1 %v5983_v50  ;;  %5451 = vmatprep.subr.bf16.mxu0 %v6171_v15 }
 0x260   :  { %3273 = vmatprep.mubr.bf16.mxu1 %v6172_v2  ;;  %5465 = vmatprep.mubr.msk.bf16.mxu0 %vm6173_vm1, %v6171_v15 }
 0x262   :  { %3244 = vmatpush1.bf16.msra.mxu1 %v5981_v57  ;;  %5452 = vmatpush3.bf16.msra.mxu0 %v5984_v10 }
 0x263   :  { %3245 = vmatprep.subr.bf16.mxu1 %v5987_v22  ;;  %5453 = vmatprep.subr.bf16.mxu0 %v6171_v15 }
 0x266   :  { %3246 = vmatpush1.bf16.msra.mxu1 %v5985_v41  ;;  %5454 = vmatpush3.bf16.msra.mxu0 %v5988_v47 }
 0x267   :  { %3247 = vmatprep.subr.bf16.mxu1 %v5991_v1  ;;  %5455 = vmatprep.subr.bf16.mxu0 %v6171_v15 }
 0x26a   :  { %3248 = vmatpush1.bf16.msra.mxu1 %v5989_v18  ;;  %5456 = vmatpush3.bf16.msra.mxu0 %v5992_v34 }
 0x26b   :  { %3249 = vmatprep.subr.bf16.mxu1 %v5995_v37  ;;  %5457 = vmatprep.subr.bf16.mxu0 %v6171_v15 }
 0x26e   :  { %3250 = vmatpush1.bf16.msra.mxu1 %v5993_v16  ;;  %5458 = vmatpush3.bf16.msra.mxu0 %v5996_v60 }
 0x26f   :  { %3251 = vmatprep.subr.bf16.mxu1 %v5999_v49  ;;  %5459 = vmatprep.subr.bf16.mxu0 %v6171_v15 }
 0x270   :  { %v7542_v45 = vpop.f32.mrb[48].mxu0 }
 0x271   :  { %v5327_v4 = vpop.f32.mrb[49].mxu0 }
 0x272   :  { %3252 = vmatpush1.bf16.msra.mxu1 %v5997_v3  ;;  %5460 = vmatpush3.bf16.msra.mxu0 %v6000_v28  ;;  %v7544_v55 = vpop.f32.mrb[50].mxu0 }
 0x273   :  { %v5328_v35 = vpop.f32.mrb[51].mxu0  ;;  %3253 = vmatprep.subr.bf16.mxu1 %v6003_v42  ;;  %5461 = vmatprep.subr.bf16.mxu0 %v6171_v15 }
 0x276   :  { %3254 = vmatpush1.bf16.msra.mxu1 %v6001_v31  ;;  %5462 = vmatpush3.bf16.msra.mxu0 %v6004_v32 }
 0x277   :  { %3255 = vmatprep.subr.bf16.mxu1 %v6007_v48  ;;  %5463 = vmatprep.subr.bf16.mxu0 %v6171_v15 }
 0x27a   :  { %3256 = vmatpush1.bf16.msra.mxu1 %v6005_v59  ;;  %5464 = vmatpush3.bf16.msra.mxu0 %v6008_v38  ;;  %v3333_v59 = vlaneseq }
 0x27b   :  { %3531 = vmatprep.subr.bf16.mxu1 %v7566_v5  ;;  %5469 = vmatprep.subr.bf16.mxu0 %v6171_v15 }
 0x27c   :  { %v3334_v38 = vshrl.u32 %v3333_v59, 7 }
 0x27d   :  { %3274 = vmatmul.mubr.bf16.vlgmr.msra.gmra.mrb[32].mxu1 %v7115_v40  ;;  %5466 = vmatmul.mubr.bf16.vlgmr.msra.gmra.mrb[76].mxu0 %v7115_v40  ;;  %v7603_v40 = vld [vmem:[%s8137_s6 + $0x34] ss:$12 sps:$4 sm:$0xff]  }
 0x27e   :  { %3532 = vmatpush1.bf16.msra.mxu1 %v7571_v6  ;;  %5470 = vmatpush3.bf16.msra.mxu0 %v7576_v8 }
 0x27f   :  { %3533 = vmatprep.subr.bf16.mxu1 %v7582_v43  ;;  %5471 = vmatprep.subr.bf16.mxu0 %v6171_v15 }
 0x280   :  { %3563 = vmatprep.mubr.bf16.mxu1 %v6172_v2  ;;  %5485 = vmatprep.mubr.msk.bf16.mxu0 %vm6173_vm1, %v6171_v15 }
 0x282   :  { %3534 = vmatpush1.bf16.msra.mxu1 %v7591_v17  ;;  %5472 = vmatpush3.bf16.msra.mxu0 %v7597_v9 }
 0x283   :  { %3535 = vmatprep.subr.bf16.mxu1 %v7603_v40  ;;  %5473 = vmatprep.subr.bf16.mxu0 %v6171_v15 }
 0x286   :  { %3536 = vmatpush1.bf16.msra.mxu1 %v7613_v11  ;;  %5474 = vmatpush3.bf16.msra.mxu0 %v7619_v19 }
 0x287   :  { %3537 = vmatprep.subr.bf16.mxu1 %v7625_v20  ;;  %5475 = vmatprep.subr.bf16.mxu0 %v6171_v15 }
 0x28a   :  { %3538 = vmatpush1.bf16.msra.mxu1 %v7632_v62  ;;  %5476 = vmatpush3.bf16.msra.mxu0 %v7638_v21 }
 0x28b   :  { %3539 = vmatprep.subr.bf16.mxu1 %v7644_v23  ;;  %5477 = vmatprep.subr.bf16.mxu0 %v6171_v15 }
 0x28e   :  { %3540 = vmatpush1.bf16.msra.mxu1 %v7651_v46  ;;  %5478 = vmatpush3.bf16.msra.mxu0 %v7657_v24 }
 0x28f   :  { %3541 = vmatprep.subr.bf16.mxu1 %v7663_v13  ;;  %5479 = vmatprep.subr.bf16.mxu0 %v6171_v15 }
 0x290   :  { %v1638_v63 = vpop.f32.mrb[52].mxu0 }
 0x291   :  { %v1639_v25 = vadd.f32 %v1638_v63, %v7542_v45  ;;  %v5347_v26 = vpop.f32.mrb[53].mxu0  ;;  %v3335_v63 = vsub.s32 0, %v3334_v38 }
 0x292   :  { %v1641_v27 = vpop.f32.mrb[54].mxu0  ;;  %3542 = vmatpush1.bf16.msra.mxu1 %v7670_v58  ;;  %5480 = vmatpush3.bf16.msra.mxu0 %v7676_v44  ;;  %v3339_v26 = vsub.s32 1, %v3334_v38 }
 0x293   :  { %v1642_v52 = vadd.f32 %v1641_v27, %v7544_v55  ;;  %v5348_v33 = vpop.f32.mrb[55].mxu0  ;;  %3543 = vmatprep.subr.bf16.mxu1 %v7682_v51  ;;  %5481 = vmatprep.subr.bf16.mxu0 %v6171_v15  ;;  %v3343_v27 = vsub.s32 2, %v3334_v38 }
 0x296   :  { %3544 = vmatpush1.bf16.msra.mxu1 %v7690_v39  ;;  %5482 = vmatpush3.bf16.msra.mxu0 %v7696_v36 }
 0x297   :  { %3545 = vmatprep.subr.bf16.mxu1 %v7703_v53  ;;  %5483 = vmatprep.subr.bf16.mxu0 %v6171_v15 }
 0x29a   :  { %3546 = vmatpush1.bf16.msra.mxu1 %v7710_v29  ;;  %5484 = vmatpush3.bf16.msra.mxu0 %v7716_v12 }
 0x29b   :  { %3634 = vmatprep.subr.bf16.mxu1 %v7566_v5  ;;  %5489 = vmatprep.subr.bf16.mxu0 %v6171_v15 }
 0x29d   :  { %3564 = vmatmul.mubr.bf16.vlgmr.msra.gmra.mrb[36].mxu1 %v6172_v2  ;;  %5486 = vmatmul.mubr.bf16.vlgmr.msra.gmra.mrb[80].mxu0 %v6172_v2 }
 0x29e   :  { %3635 = vmatpush1.bf16.msra.mxu1 %v7571_v6  ;;  %5490 = vmatpush3.bf16.msra.mxu0 %v7576_v8 }
 0x29f   :  { %3636 = vmatprep.subr.bf16.mxu1 %v7582_v43  ;;  %5491 = vmatprep.subr.bf16.mxu0 %v6171_v15 }
 0x2a0   :  { %3666 = vmatprep.mubr.bf16.mxu1 %v6172_v2  ;;  %5505 = vmatprep.mubr.msk.bf16.mxu0 %vm6173_vm1, %v6171_v15 }
 0x2a2   :  { %3637 = vmatpush1.bf16.msra.mxu1 %v7591_v17  ;;  %5492 = vmatpush3.bf16.msra.mxu0 %v7597_v9 }
 0x2a3   :  { %3638 = vmatprep.subr.bf16.mxu1 %v7603_v40  ;;  %5493 = vmatprep.subr.bf16.mxu0 %v6171_v15 }
 0x2a6   :  { %3639 = vmatpush1.bf16.msra.mxu1 %v7613_v11  ;;  %5494 = vmatpush3.bf16.msra.mxu0 %v7619_v19 }
 0x2a7   :  { %3640 = vmatprep.subr.bf16.mxu1 %v7625_v20  ;;  %5495 = vmatprep.subr.bf16.mxu0 %v6171_v15 }
 0x2aa   :  { %3641 = vmatpush1.bf16.msra.mxu1 %v7632_v62  ;;  %5496 = vmatpush3.bf16.msra.mxu0 %v7638_v21 }
 0x2ab   :  { %3642 = vmatprep.subr.bf16.mxu1 %v7644_v23  ;;  %5497 = vmatprep.subr.bf16.mxu0 %v6171_v15 }
 0x2ae   :  { %3643 = vmatpush1.bf16.msra.mxu1 %v7651_v46  ;;  %5498 = vmatpush3.bf16.msra.mxu0 %v7657_v24 }
 0x2af   :  { %3644 = vmatprep.subr.bf16.mxu1 %v7663_v13  ;;  %5499 = vmatprep.subr.bf16.mxu0 %v6171_v15 }
 0x2b0   :  { %v1913_v7 = vpop.f32.mrb[56].mxu0 }
 0x2b1   :  { %v1922_v54 = vadd.f32 %v1913_v7, %v1639_v25  ;;  %v5367_v30 = vpop.f32.mrb[57].mxu0  ;;  %v3331_v25 = vld [vmem:[%s8136_s5] sm:$0x7] }
 0x2b2   :  { %v1916_v0 = vpop.f32.mrb[58].mxu0  ;;  %3645 = vmatpush1.bf16.msra.mxu1 %v7670_v58  ;;  %5500 = vmatpush3.bf16.msra.mxu0 %v7676_v44  ;;  %v3336_v7 = vrot.slane %v3331_v25, %v3335_v63 }
 0x2b3   :  { %v1925_v14 = vadd.f32 %v1916_v0, %v1642_v52  ;;  %v5368_v61 = vpop.f32.mrb[59].mxu0  ;;  %3646 = vmatprep.subr.bf16.mxu1 %v7682_v51  ;;  %5501 = vmatprep.subr.bf16.mxu0 %v6171_v15 }
 0x2b6   :  { %3647 = vmatpush1.bf16.msra.mxu1 %v7690_v39  ;;  %5502 = vmatpush3.bf16.msra.mxu0 %v7696_v36 }
 0x2b7   :  { %3648 = vmatprep.subr.bf16.mxu1 %v7703_v53  ;;  %5503 = vmatprep.subr.bf16.mxu0 %v6171_v15 }
 0x2ba   :  { %3649 = vmatpush1.bf16.msra.mxu1 %v7710_v29  ;;  %5504 = vmatpush3.bf16.msra.mxu0 %v7716_v12 }
 0x2bb   :  { %3752 = vmatprep.subr.bf16.mxu1 %v7566_v5  ;;  %5509 = vmatprep.subr.bf16.mxu0 %v6171_v15 }
 0x2d0   :  { %v2194_v56 = vpop.f32.mrb[60].mxu0 }
 0x2d1   :  { %v2203_v50 = vadd.f32 %v2194_v56, %v1922_v54  ;;  %v5387_v57 = vpop.f32.mrb[61].mxu0 }
 0x2d2   :  { %v2197_v10 = vpop.f32.mrb[62].mxu0 }
 0x2d3   :  { %v2206_v22 = vadd.f32 %v2197_v10, %v1925_v14  ;;  %v5388_v41 = vpop.f32.mrb[63].mxu0  ;;  %v3340_v14 = vrot.slane %v3331_v25, %v3339_v26 }
 0x2f0   :  { %v2475_v47 = vpop.f32.mrb[64].mxu0 }
 0x2f1   :  { %v2484_v1 = vadd.f32 %v2475_v47, %v2203_v50  ;;  %v5407_v18 = vpop.f32.mrb[65].mxu0  ;;  %v3344_v50 = vrot.slane %v3331_v25, %v3343_v27 }
 0x2f2   :  { %v2478_v34 = vpop.f32.mrb[66].mxu0  ;;  %v3386_v18 = vld [vmem:[%s8138_s7] sm:$0x7] }
 0x2f3   :  { %v2487_v37 = vadd.f32 %v2478_v34, %v2206_v22  ;;  %v5408_v16 = vpop.f32.mrb[67].mxu0  ;;  %v7773_v34 = vrot.slane %v3386_v18, %v3335_v63 }
 0x310   :  { %v2756_v60 = vpop.f32.mrb[68].mxu0 }
 0x311   :  { %v2765_v49 = vadd.f32 %v2756_v60, %v2484_v1  ;;  %v5427_v3 = vpop.f32.mrb[69].mxu0 }
 0x312   :  { %v2759_v28 = vpop.f32.mrb[70].mxu0 }
 0x313   :  { %v2768_v42 = vadd.f32 %v2759_v28, %v2487_v37  ;;  %v5428_v45 = vpop.f32.mrb[71].mxu0  ;;  %v7775_v37 = vrot.slane %v3386_v18, %v3339_v26 }
 0x330   :  { %v3037_v4 = vpop.f32.mrb[72].mxu0 }
 0x331   :  { %v3046_v55 = vadd.f32 %v3037_v4, %v2765_v49  ;;  %v5447_v31 = vpop.f32.mrb[73].mxu0 }
 0x332   :  { %v3040_v32 = vpop.f32.mrb[74].mxu0 }
 0x333   :  { %v3049_v35 = vadd.f32 %v3040_v32, %v2768_v42  ;;  %v5448_v48 = vpop.f32.mrb[75].mxu0 }
 0x350   :  { %v3275_v52 = vpop.f32.mrb[32].mxu1  ;;  %v3318_v33 = vpop.f32.mrb[76].mxu0 }
 0x351   :  { %v3327_v54 = vadd.f32 %v3318_v33, %v3046_v55  ;;  %v3277_v30 = vpop.f32.mrb[33].mxu1  ;;  %v5467_v0 = vpop.f32.mrb[77].mxu0  ;;  %v7777_v49 = vadd.f32 %v3336_v7, %v3275_v52  ;;  %v7785_v52 = vrot.slane %v3386_v18, %v3343_v27 }
 0x352   :  { %v3279_v61 = vpop.f32.mrb[34].mxu1  ;;  %v3321_v56 = vpop.f32.mrb[78].mxu0  ;;  %v7782_v48 = vadd.f32 %v3340_v14, %v3277_v30 }
 0x353   :  { %v7764_v57 = vadd.f32 %v3336_v7, %v3279_v61  ;;  %v3330_v10 = vadd.f32 %v3321_v56, %v3049_v35  ;;  %v3281_v22 = vpop.f32.mrb[35].mxu1  ;;  %v5468_v41 = vpop.f32.mrb[79].mxu0  ;;  %v7788_v56 = vadd.f32 %v3344_v50, %v3327_v54 }
 0x354   :  { %v7766_v47 = vadd.f32 %v3340_v14, %v3281_v22 }
 0x355   :  { %v7768_v1 = vadd.f32 %v3344_v50, %v3330_v10 }
 0x370   :  { %v3565_v16 = vpop.f32.mrb[36].mxu1  ;;  %v3606_v60 = vpop.f32.mrb[80].mxu0 }
 0x371   :  { %v3566_v3 = vadd.f32 %v3565_v16, %v7773_v34  ;;  %v3567_v28 = vpop.f32.mrb[37].mxu1  ;;  %v5487_v42 = vpop.f32.mrb[81].mxu0  ;;  %v3607_v0 = vadd.f32 %v3606_v60, %v7785_v52 }
 0x372   :  { %v3568_v45 = vadd.f32 %v3567_v28, %v7775_v37  ;;  %v3569_v4 = vpop.f32.mrb[38].mxu1  ;;  %v3609_v55 = vpop.f32.mrb[82].mxu0 }
 0x373   :  { %v3612_v31 = vadd.f32 %v3566_v3, %v7777_v49  ;;  %v3570_v32 = vpop.f32.mrb[39].mxu1  ;;  %v5488_v35 = vpop.f32.mrb[83].mxu0 }
 0x374   :  { %v3619_v38 = vadd.f32 %v3568_v45, %v7782_v48 }
 0x375   :  { %v4985_v59 = vmul.f32 -1.442695, %v3612_v31 }
 0x376   :  { %v4986_v63 = vmul.f32 -1.442695, %v3619_v38 }
 0x377   :  { %6043 = vpow2.f32 %v4985_v59 }
 0x378   :  { %6045 = vpow2.f32 %v4986_v63 }
 0x381   :  { %v6044_v25 = vpop.eup %6043 }
 0x382   :  { %v3616_v26 = vadd.f32 1.0, %v6044_v25  ;;  %v6046_v33 = vpop.eup %6045 }
 0x383   :  { %v3623_v7 = vadd.f32 1.0, %v6046_v33 }
 0x384   :  { %6047 = vrcp.f32 %v3616_v26 }
 0x385   :  { %6049 = vrcp.f32 %v3623_v7 }
 0x38e   :  { %v6048_v61 = vpop.eup %6047 }
 0x38f   :  { %v3626_v30 = vmul.f32 %v6048_v61, %v3607_v0  ;;  %v6050_v10 = vpop.eup %6049 }
 0x390   :  { %v3629_v22 = vsub.f32 1.0, %v6050_v10  ;;  %v3631_v3 = vmul.f32 0.0, %v6050_v10 }
 0x391   :  { %v3627_v14 = vadd.f32 %v3626_v30, %v7788_v56 }
 0x393   :  { %6051 = vtanh.f32 %v3627_v14 }
 0x39d   :  { %v6052_v41 = vpop.eup %6051 }
 0x39e   :  { %v3630_v16 = vmul.f32 %v6052_v41, %v3629_v22 }
 0x3a0   :  { %v7791_v28 = vadd.f32 %v3631_v3, %v3630_v16 }
 0x3a2   :  { %v3633_v27 = vpack.c.bf16 %v7791_v28, %v7791_v28  ;;  %v3744_v22 = vrot.slane %v7791_v28, 6 }
 0x3a4   :  { %3667 = vmatmul.mubr.bf16.vlgmr.msra.gmra.mrb[40].mxu1 %v3633_v27  ;;  %5506 = vmatmul.mubr.bf16.vlgmr.msra.gmra.mrb[84].mxu0 %v3633_v27 }
 0x3a5   :  { %3753 = vmatpush1.bf16.msra.mxu1 %v7571_v6  ;;  %5510 = vmatpush3.bf16.msra.mxu0 %v7576_v8 }
 0x3a6   :  { %3754 = vmatprep.subr.bf16.mxu1 %v7582_v43  ;;  %5511 = vmatprep.subr.bf16.mxu0 %v6171_v15 }
 0x3a7   :  { %3784 = vmatprep.mubr.bf16.mxu1 %v6172_v2  ;;  %5525 = vmatprep.mubr.msk.bf16.mxu0 %vm6173_vm1, %v6171_v15 }
 0x3a9   :  { %3755 = vmatpush1.bf16.msra.mxu1 %v7591_v17  ;;  %5512 = vmatpush3.bf16.msra.mxu0 %v7597_v9 }
 0x3aa   :  { %3756 = vmatprep.subr.bf16.mxu1 %v7603_v40  ;;  %5513 = vmatprep.subr.bf16.mxu0 %v6171_v15 }
 0x3ad   :  { %3757 = vmatpush1.bf16.msra.mxu1 %v7613_v11  ;;  %5514 = vmatpush3.bf16.msra.mxu0 %v7619_v19 }
 0x3ae   :  { %3758 = vmatprep.subr.bf16.mxu1 %v7625_v20  ;;  %5515 = vmatprep.subr.bf16.mxu0 %v6171_v15 }
 0x3b1   :  { %3759 = vmatpush1.bf16.msra.mxu1 %v7632_v62  ;;  %5516 = vmatpush3.bf16.msra.mxu0 %v7638_v21 }
 0x3b2   :  { %3760 = vmatprep.subr.bf16.mxu1 %v7644_v23  ;;  %5517 = vmatprep.subr.bf16.mxu0 %v6171_v15 }
 0x3b5   :  { %3761 = vmatpush1.bf16.msra.mxu1 %v7651_v46  ;;  %5518 = vmatpush3.bf16.msra.mxu0 %v7657_v24 }
 0x3b6   :  { %3762 = vmatprep.subr.bf16.mxu1 %v7663_v13  ;;  %5519 = vmatprep.subr.bf16.mxu0 %v6171_v15 }
 0x3b9   :  { %3763 = vmatpush1.bf16.msra.mxu1 %v7670_v58  ;;  %5520 = vmatpush3.bf16.msra.mxu0 %v7676_v44 }
 0x3ba   :  { %3764 = vmatprep.subr.bf16.mxu1 %v7682_v51  ;;  %5521 = vmatprep.subr.bf16.mxu0 %v6171_v15 }
 0x3bd   :  { %3765 = vmatpush1.bf16.msra.mxu1 %v7690_v39  ;;  %5522 = vmatpush3.bf16.msra.mxu0 %v7696_v36 }
 0x3be   :  { %3766 = vmatprep.subr.bf16.mxu1 %v7703_v53  ;;  %5523 = vmatprep.subr.bf16.mxu0 %v6171_v15 }
 0x3c1   :  { %3767 = vmatpush1.bf16.msra.mxu1 %v7710_v29  ;;  %5524 = vmatpush3.bf16.msra.mxu0 %v7716_v12 }
 0x3c2   :  { %3870 = vmatprep.subr.bf16.mxu1 %v7566_v5  ;;  %5529 = vmatprep.subr.bf16.mxu0 %v6171_v15 }
 0x477   :  { %v3668_v54 = vpop.f32.mrb[40].mxu1  ;;  %v3709_v50 = vpop.f32.mrb[84].mxu0 }
 0x478   :  { %v3669_v18 = vadd.f32 %v3668_v54, %v7773_v34  ;;  %v3670_v60 = vpop.f32.mrb[41].mxu1  ;;  %v5507_v42 = vpop.f32.mrb[85].mxu0  ;;  %v3710_v30 = vadd.f32 %v3709_v50, %v7785_v52 }
 0x479   :  { %v3671_v45 = vadd.f32 %v3670_v60, %v7775_v37  ;;  %v3672_v4 = vpop.f32.mrb[42].mxu1  ;;  %v3712_v55 = vpop.f32.mrb[86].mxu0 }
 0x47a   :  { %v3716_v31 = vrot.slane %v3669_v18, 6  ;;  %v3673_v32 = vpop.f32.mrb[43].mxu1  ;;  %v5508_v35 = vpop.f32.mrb[87].mxu0  ;;  %v3736_v14 = vrot.slane %v3710_v30, 6 }
 0x47b   :  { %v3726_v59 = vrot.slane %v3671_v45, 6 }
 0x47c   :  { %v3718_v38 = vadd.f32 %v3716_v31, %v7777_v49 }
 0x47d   :  { %v3728_v63 = vadd.f32 %v3726_v59, %v7782_v48 }
 0x47e   :  { %v4987_v25 = vmul.f32 -1.442695, %v3718_v38 }
 0x47f   :  { %v4988_v26 = vmul.f32 -1.442695, %v3728_v63 }
 0x480   :  { %6053 = vpow2.f32 %v4987_v25 }
 0x481   :  { %6055 = vpow2.f32 %v4988_v26 }
 0x48a   :  { %v6054_v33 = vpop.eup %6053 }
 0x48b   :  { %v6056_v7 = vpop.eup %6055  ;;  %v3722_v0 = vadd.f32 1.0, %v6054_v33 }
 0x48c   :  { %v3732_v61 = vadd.f32 1.0, %v6056_v7 }
 0x48d   :  { %6057 = vrcp.f32 %v3722_v0 }
 0x48e   :  { %6059 = vrcp.f32 %v3732_v61 }
 0x497   :  { %v6058_v10 = vpop.eup %6057 }
 0x498   :  { %v6060_v41 = vpop.eup %6059  ;;  %v3738_v16 = vmul.f32 %v6058_v10, %v3736_v14 }
 0x499   :  { %v3746_v3 = vmul.f32 %v6060_v41, %v3744_v22  ;;  %v3741_v54 = vsub.f32 1.0, %v6060_v41 }
 0x49a   :  { %v3739_v27 = vadd.f32 %v3738_v16, %v7788_v56 }
 0x49c   :  { %6061 = vtanh.f32 %v3739_v27 }
 0x4a6   :  { %v6062_v18 = vpop.eup %6061 }
 0x4a7   :  { %v3742_v60 = vmul.f32 %v6062_v18, %v3741_v54 }
 0x4a9   :  { %v7837_v42 = vadd.f32 %v3746_v3, %v3742_v60 }
 0x4ab   :  { %v3748_v45 = vpack.c.bf16 %v7837_v42, %v7837_v42  ;;  %v3862_v54 = vrot.slane %v7837_v42, 6 }
 0x4ad   :  { %v3750_v4 = vrot.slane %v3748_v45, 1 }
 0x4af   :  { %3785 = vmatmul.mubr.bf16.vlgmr.msra.gmra.mrb[44].mxu1 %v3750_v4  ;;  %5526 = vmatmul.mubr.bf16.vlgmr.msra.gmra.mrb[88].mxu0 %v3750_v4 }
 0x4b0   :  { %3871 = vmatpush1.bf16.msra.mxu1 %v7571_v6  ;;  %5530 = vmatpush3.bf16.msra.mxu0 %v7576_v8 }
 0x4b1   :  { %3872 = vmatprep.subr.bf16.mxu1 %v7582_v43  ;;  %5531 = vmatprep.subr.bf16.mxu0 %v6171_v15 }
 0x4b2   :  { %3902 = vmatprep.mubr.bf16.mxu1 %v6172_v2  ;;  %5545 = vmatprep.mubr.msk.bf16.mxu0 %vm6173_vm1, %v6171_v15 }
 0x4b4   :  { %3873 = vmatpush1.bf16.msra.mxu1 %v7591_v17  ;;  %5532 = vmatpush3.bf16.msra.mxu0 %v7597_v9 }
 0x4b5   :  { %3874 = vmatprep.subr.bf16.mxu1 %v7603_v40  ;;  %5533 = vmatprep.subr.bf16.mxu0 %v6171_v15 }
 0x4b8   :  { %3875 = vmatpush1.bf16.msra.mxu1 %v7613_v11  ;;  %5534 = vmatpush3.bf16.msra.mxu0 %v7619_v19 }
 0x4b9   :  { %3876 = vmatprep.subr.bf16.mxu1 %v7625_v20  ;;  %5535 = vmatprep.subr.bf16.mxu0 %v6171_v15 }
 0x4bc   :  { %3877 = vmatpush1.bf16.msra.mxu1 %v7632_v62  ;;  %5536 = vmatpush3.bf16.msra.mxu0 %v7638_v21 }
 0x4bd   :  { %3878 = vmatprep.subr.bf16.mxu1 %v7644_v23  ;;  %5537 = vmatprep.subr.bf16.mxu0 %v6171_v15 }
 0x4c0   :  { %3879 = vmatpush1.bf16.msra.mxu1 %v7651_v46  ;;  %5538 = vmatpush3.bf16.msra.mxu0 %v7657_v24 }
 0x4c1   :  { %3880 = vmatprep.subr.bf16.mxu1 %v7663_v13  ;;  %5539 = vmatprep.subr.bf16.mxu0 %v6171_v15 }
 0x4c4   :  { %3881 = vmatpush1.bf16.msra.mxu1 %v7670_v58  ;;  %5540 = vmatpush3.bf16.msra.mxu0 %v7676_v44 }
 0x4c5   :  { %3882 = vmatprep.subr.bf16.mxu1 %v7682_v51  ;;  %5541 = vmatprep.subr.bf16.mxu0 %v6171_v15 }
 0x4c8   :  { %3883 = vmatpush1.bf16.msra.mxu1 %v7690_v39  ;;  %5542 = vmatpush3.bf16.msra.mxu0 %v7696_v36 }
 0x4c9   :  { %3884 = vmatprep.subr.bf16.mxu1 %v7703_v53  ;;  %5543 = vmatprep.subr.bf16.mxu0 %v6171_v15 }
 0x4cc   :  { %3885 = vmatpush1.bf16.msra.mxu1 %v7710_v29  ;;  %5544 = vmatpush3.bf16.msra.mxu0 %v7716_v12 }
 0x4cd   :  { %3988 = vmatprep.subr.bf16.mxu1 %v7566_v5  ;;  %5549 = vmatprep.subr.bf16.mxu0 %v6171_v15 }
 0x582   :  { %v3786_v28 = vpop.f32.mrb[44].mxu1  ;;  %v3827_v50 = vpop.f32.mrb[88].mxu0 }
 0x583   :  { %v3787_v55 = vadd.f32 %v3786_v28, %v7773_v34  ;;  %v3788_v31 = vpop.f32.mrb[45].mxu1  ;;  %v5527_v32 = vpop.f32.mrb[89].mxu0  ;;  %v3828_v16 = vadd.f32 %v3827_v50, %v7785_v52 }
 0x584   :  { %v3789_v35 = vadd.f32 %v3788_v31, %v7775_v37  ;;  %v3790_v59 = vpop.f32.mrb[46].mxu1  ;;  %v3830_v38 = vpop.f32.mrb[90].mxu0 }
 0x585   :  { %v3834_v63 = vrot.slane %v3787_v55, 4  ;;  %v3791_v25 = vpop.f32.mrb[47].mxu1  ;;  %v5528_v26 = vpop.f32.mrb[91].mxu0  ;;  %v3854_v3 = vrot.slane %v3828_v16, 4 }
 0x586   :  { %v3844_v33 = vrot.slane %v3789_v35, 4 }
 0x587   :  { %v3836_v7 = vadd.f32 %v3834_v63, %v7777_v49 }
 0x588   :  { %v3846_v0 = vadd.f32 %v3844_v33, %v7782_v48 }
 0x589   :  { %v4989_v61 = vmul.f32 -1.442695, %v3836_v7 }
 0x58a   :  { %v4990_v30 = vmul.f32 -1.442695, %v3846_v0 }
 0x58b   :  { %6063 = vpow2.f32 %v4989_v61 }
 0x58c   :  { %6065 = vpow2.f32 %v4990_v30 }
 0x595   :  { %v6064_v14 = vpop.eup %6063 }
 0x596   :  { %v6066_v10 = vpop.eup %6065  ;;  %v3840_v22 = vadd.f32 1.0, %v6064_v14 }
 0x597   :  { %v3850_v41 = vadd.f32 1.0, %v6066_v10 }
 0x598   :  { %6067 = vrcp.f32 %v3840_v22 }
 0x599   :  { %6069 = vrcp.f32 %v3850_v41 }
 0x5a2   :  { %v6068_v27 = vpop.eup %6067 }
 0x5a3   :  { %v6070_v18 = vpop.eup %6069  ;;  %v3856_v60 = vmul.f32 %v6068_v27, %v3854_v3 }
 0x5a4   :  { %v3864_v45 = vmul.f32 %v6070_v18, %v3862_v54  ;;  %v3859_v28 = vsub.f32 1.0, %v6070_v18 }
 0x5a5   :  { %v3857_v4 = vadd.f32 %v3856_v60, %v7788_v56 }
 0x5a7   :  { %6071 = vtanh.f32 %v3857_v4 }
 0x5b1   :  { %v6072_v55 = vpop.eup %6071 }
 0x5b2   :  { %v3860_v31 = vmul.f32 %v6072_v55, %v3859_v28 }
 0x5b4   :  { %v7883_v32 = vadd.f32 %v3864_v45, %v3860_v31 }
 0x5b6   :  { %v3866_v35 = vpack.c.bf16 %v7883_v32, %v7883_v32  ;;  %v3980_v28 = vrot.slane %v7883_v32, 6 }
 0x5b8   :  { %v3868_v59 = vrot.slane %v3866_v35, 2 }
 0x5ba   :  { %3903 = vmatmul.mubr.bf16.vlgmr.msra.gmra.mrb[48].mxu1 %v3868_v59  ;;  %5546 = vmatmul.mubr.bf16.vlgmr.msra.gmra.mrb[92].mxu0 %v3868_v59 }
 0x5bb   :  { %3989 = vmatpush1.bf16.msra.mxu1 %v7571_v6  ;;  %5550 = vmatpush3.bf16.msra.mxu0 %v7576_v8 }
 0x5bc   :  { %3990 = vmatprep.subr.bf16.mxu1 %v7582_v43  ;;  %5551 = vmatprep.subr.bf16.mxu0 %v6171_v15 }
 0x5bd   :  { %4020 = vmatprep.mubr.bf16.mxu1 %v6172_v2  ;;  %5565 = vmatprep.mubr.msk.bf16.mxu0 %vm6173_vm1, %v6171_v15 }
 0x5bf   :  { %3991 = vmatpush1.bf16.msra.mxu1 %v7591_v17  ;;  %5552 = vmatpush3.bf16.msra.mxu0 %v7597_v9 }
 0x5c0   :  { %3992 = vmatprep.subr.bf16.mxu1 %v7603_v40  ;;  %5553 = vmatprep.subr.bf16.mxu0 %v6171_v15 }
 0x5c3   :  { %3993 = vmatpush1.bf16.msra.mxu1 %v7613_v11  ;;  %5554 = vmatpush3.bf16.msra.mxu0 %v7619_v19 }
 0x5c4   :  { %3994 = vmatprep.subr.bf16.mxu1 %v7625_v20  ;;  %5555 = vmatprep.subr.bf16.mxu0 %v6171_v15 }
 0x5c7   :  { %3995 = vmatpush1.bf16.msra.mxu1 %v7632_v62  ;;  %5556 = vmatpush3.bf16.msra.mxu0 %v7638_v21 }
 0x5c8   :  { %3996 = vmatprep.subr.bf16.mxu1 %v7644_v23  ;;  %5557 = vmatprep.subr.bf16.mxu0 %v6171_v15 }
 0x5cb   :  { %3997 = vmatpush1.bf16.msra.mxu1 %v7651_v46  ;;  %5558 = vmatpush3.bf16.msra.mxu0 %v7657_v24 }
 0x5cc   :  { %3998 = vmatprep.subr.bf16.mxu1 %v7663_v13  ;;  %5559 = vmatprep.subr.bf16.mxu0 %v6171_v15 }
 0x5cf   :  { %3999 = vmatpush1.bf16.msra.mxu1 %v7670_v58  ;;  %5560 = vmatpush3.bf16.msra.mxu0 %v7676_v44 }
 0x5d0   :  { %4000 = vmatprep.subr.bf16.mxu1 %v7682_v51  ;;  %5561 = vmatprep.subr.bf16.mxu0 %v6171_v15 }
 0x5d3   :  { %4001 = vmatpush1.bf16.msra.mxu1 %v7690_v39  ;;  %5562 = vmatpush3.bf16.msra.mxu0 %v7696_v36 }
 0x5d4   :  { %4002 = vmatprep.subr.bf16.mxu1 %v7703_v53  ;;  %5563 = vmatprep.subr.bf16.mxu0 %v6171_v15 }
 0x5d7   :  { %4003 = vmatpush1.bf16.msra.mxu1 %v7710_v29  ;;  %5564 = vmatpush3.bf16.msra.mxu0 %v7716_v12 }
 0x5d8   :  { %4094 = vmatprep.subr.bf16.mxu1 %v7566_v5  ;;  %5569 = vmatprep.subr.bf16.mxu0 %v6171_v15 }
 0x68d   :  { %v3904_v42 = vpop.f32.mrb[48].mxu1  ;;  %v3945_v50 = vpop.f32.mrb[92].mxu0 }
 0x68e   :  { %v3905_v38 = vadd.f32 %v3904_v42, %v7773_v34  ;;  %v3906_v63 = vpop.f32.mrb[49].mxu1  ;;  %v5547_v25 = vpop.f32.mrb[93].mxu0  ;;  %v3946_v60 = vadd.f32 %v3945_v50, %v7785_v52 }
 0x68f   :  { %v3907_v26 = vadd.f32 %v3906_v63, %v7775_v37  ;;  %v3908_v33 = vpop.f32.mrb[50].mxu1  ;;  %v3948_v7 = vpop.f32.mrb[94].mxu0 }
 0x690   :  { %v3952_v0 = vrot.slane %v3905_v38, 2  ;;  %v3909_v61 = vpop.f32.mrb[51].mxu1  ;;  %v5548_v30 = vpop.f32.mrb[95].mxu0  ;;  %v3972_v45 = vrot.slane %v3946_v60, 2 }
 0x691   :  { %v3962_v14 = vrot.slane %v3907_v26, 2 }
 0x692   :  { %v3954_v10 = vadd.f32 %v3952_v0, %v7777_v49 }
 0x693   :  { %v3964_v22 = vadd.f32 %v3962_v14, %v7782_v48 }
 0x694   :  { %v4991_v41 = vmul.f32 -1.442695, %v3954_v10 }
 0x695   :  { %v4992_v16 = vmul.f32 -1.442695, %v3964_v22 }
 0x696   :  { %6073 = vpow2.f32 %v4991_v41 }
 0x697   :  { %6075 = vpow2.f32 %v4992_v16 }
 0x6a0   :  { %v6074_v3 = vpop.eup %6073 }
 0x6a1   :  { %v6076_v27 = vpop.eup %6075  ;;  %v3958_v54 = vadd.f32 1.0, %v6074_v3 }
 0x6a2   :  { %v3968_v18 = vadd.f32 1.0, %v6076_v27 }
 0x6a3   :  { %6077 = vrcp.f32 %v3958_v54 }
 0x6a4   :  { %6079 = vrcp.f32 %v3968_v18 }
 0x6ad   :  { %v6078_v4 = vpop.eup %6077 }
 0x6ae   :  { %v6080_v55 = vpop.eup %6079  ;;  %v3974_v49 = vmul.f32 %v6078_v4, %v3972_v45 }
 0x6af   :  { %v3982_v31 = vmul.f32 %v6080_v55, %v3980_v28  ;;  %v3977_v35 = vsub.f32 1.0, %v6080_v55 }
 0x6b0   :  { %v3975_v48 = vadd.f32 %v3974_v49, %v7788_v56 }
 0x6b2   :  { %6081 = vtanh.f32 %v3975_v48 }
 0x6bc   :  { %v6082_v59 = vpop.eup %6081 }
 0x6bd   :  { %v3978_v42 = vmul.f32 %v6082_v59, %v3977_v35 }
 0x6bf   :  { %v7929_v38 = vadd.f32 %v3982_v31, %v3978_v42 }
 0x6c1   :  { %v3984_v63 = vpack.c.bf16 %v7929_v38, %v7929_v38  ;;  %v4089_v45 = vrot.slane %v7929_v38, 6 }
 0x6c3   :  { %v3986_v25 = vrot.slane %v3984_v63, 3 }
 0x6c5   :  { %4021 = vmatmul.mubr.bf16.vlgmr.msra.gmra.mrb[52].mxu1 %v3986_v25  ;;  %5566 = vmatmul.mubr.bf16.vlgmr.msra.gmra.mrb[96].mxu0 %v3986_v25 }
 0x6c6   :  { %4095 = vmatpush1.bf16.msra.mxu1 %v7571_v6  ;;  %5570 = vmatpush3.bf16.msra.mxu0 %v7576_v8 }
 0x6c7   :  { %4096 = vmatprep.subr.bf16.mxu1 %v7582_v43  ;;  %5571 = vmatprep.subr.bf16.mxu0 %v6171_v15 }
 0x6c8   :  { %4126 = vmatprep.mubr.bf16.mxu1 %v6172_v2  ;;  %5585 = vmatprep.mubr.msk.bf16.mxu0 %vm6173_vm1, %v6171_v15 }
 0x6ca   :  { %4097 = vmatpush1.bf16.msra.mxu1 %v7591_v17  ;;  %5572 = vmatpush3.bf16.msra.mxu0 %v7597_v9 }
 0x6cb   :  { %4098 = vmatprep.subr.bf16.mxu1 %v7603_v40  ;;  %5573 = vmatprep.subr.bf16.mxu0 %v6171_v15 }
 0x6ce   :  { %4099 = vmatpush1.bf16.msra.mxu1 %v7613_v11  ;;  %5574 = vmatpush3.bf16.msra.mxu0 %v7619_v19 }
 0x6cf   :  { %4100 = vmatprep.subr.bf16.mxu1 %v7625_v20  ;;  %5575 = vmatprep.subr.bf16.mxu0 %v6171_v15 }
 0x6d2   :  { %4101 = vmatpush1.bf16.msra.mxu1 %v7632_v62  ;;  %5576 = vmatpush3.bf16.msra.mxu0 %v7638_v21 }
 0x6d3   :  { %4102 = vmatprep.subr.bf16.mxu1 %v7644_v23  ;;  %5577 = vmatprep.subr.bf16.mxu0 %v6171_v15 }
 0x6d6   :  { %4103 = vmatpush1.bf16.msra.mxu1 %v7651_v46  ;;  %5578 = vmatpush3.bf16.msra.mxu0 %v7657_v24 }
 0x6d7   :  { %4104 = vmatprep.subr.bf16.mxu1 %v7663_v13  ;;  %5579 = vmatprep.subr.bf16.mxu0 %v6171_v15 }
 0x6da   :  { %4105 = vmatpush1.bf16.msra.mxu1 %v7670_v58  ;;  %5580 = vmatpush3.bf16.msra.mxu0 %v7676_v44 }
 0x6db   :  { %4106 = vmatprep.subr.bf16.mxu1 %v7682_v51  ;;  %5581 = vmatprep.subr.bf16.mxu0 %v6171_v15 }
 0x6de   :  { %4107 = vmatpush1.bf16.msra.mxu1 %v7690_v39  ;;  %5582 = vmatpush3.bf16.msra.mxu0 %v7696_v36 }
 0x6df   :  { %4108 = vmatprep.subr.bf16.mxu1 %v7703_v53  ;;  %5583 = vmatprep.subr.bf16.mxu0 %v6171_v15 }
 0x6e2   :  { %4109 = vmatpush1.bf16.msra.mxu1 %v7710_v29  ;;  %5584 = vmatpush3.bf16.msra.mxu0 %v7716_v12 }
 0x6e3   :  { %4212 = vmatprep.subr.bf16.mxu1 %v7566_v5  ;;  %5589 = vmatprep.subr.bf16.mxu0 %v6171_v15 }
 0x798   :  { %v4022_v56 = vpop.f32.mrb[52].mxu1  ;;  %v4063_v32 = vpop.f32.mrb[96].mxu0 }
 0x799   :  { %v4023_v50 = vadd.f32 %v4022_v56, %v7773_v34  ;;  %v4024_v26 = vpop.f32.mrb[53].mxu1  ;;  %v5567_v33 = vpop.f32.mrb[97].mxu0  ;;  %v4064_v18 = vadd.f32 %v4063_v32, %v7785_v52 }
 0x79a   :  { %v4025_v7 = vadd.f32 %v4024_v26, %v7775_v37  ;;  %v4026_v0 = vpop.f32.mrb[54].mxu1  ;;  %v4066_v61 = vpop.f32.mrb[98].mxu0 }
 0x79b   :  { %v4069_v30 = vadd.f32 %v4023_v50, %v7764_v57  ;;  %v4027_v14 = vpop.f32.mrb[55].mxu1  ;;  %v5568_v10 = vpop.f32.mrb[99].mxu0 }
 0x79c   :  { %v4076_v22 = vadd.f32 %v4025_v7, %v7766_v47  ;;  %v6124_v14 = vld [vmem:[%s8137_s6] ss:$12 sps:$4 sm:$0xff]   ;;  %v6125_v10 = vld [vmem:[%s8137_s6 + $0x8] ss:$12 sps:$4 sm:$0xff]  }
 0x79d   :  { %v4993_v41 = vmul.f32 -1.442695, %v4069_v30 }
 0x79e   :  { %v4994_v5 = vmul.f32 -1.442695, %v4076_v22  ;;  %v6126_v22 = vld [vmem:[%s8137_s6 + $0x1c] ss:$12 sps:$4 sm:$0xff]  }
 0x79f   :  { %6083 = vpow2.f32 %v4993_v41  ;;  %v6127_v41 = vld [vmem:[%s8137_s6 + $0x18] ss:$12 sps:$4 sm:$0xff]  }
 0x7a0   :  { %6085 = vpow2.f32 %v4994_v5  ;;  %v6128_v5 = vld [vmem:[%s8137_s6 + $0x20] ss:$12 sps:$4 sm:$0xff]  }
 0x7a9   :  { %v6084_v16 = vpop.eup %6083 }
 0x7aa   :  { %v6086_v3 = vpop.eup %6085  ;;  %v4073_v27 = vadd.f32 1.0, %v6084_v16  ;;  %v6129_v16 = vld [vmem:[%s8137_s6 + $0x34] ss:$12 sps:$4 sm:$0xff]  }
 0x7ab   :  { %v4080_v54 = vadd.f32 1.0, %v6086_v3  ;;  %v6131_v3 = vld [vmem:[%s8137_s6 + $0x38] ss:$12 sps:$4 sm:$0xff]  }
 0x7ac   :  { %6087 = vrcp.f32 %v4073_v27  ;;  %v6132_v27 = vld [vmem:[%s8137_s6 + $0x4c] ss:$12 sps:$4 sm:$0xff]  }
 0x7ad   :  { %6089 = vrcp.f32 %v4080_v54  ;;  %v6133_v54 = vld [vmem:[%s8137_s6 + $0x48] ss:$12 sps:$4 sm:$0xff]  }
 0x7b6   :  { %v6088_v60 = vpop.eup %6087 }
 0x7b7   :  { %v6090_v4 = vpop.eup %6089  ;;  %v4083_v28 = vmul.f32 %v6088_v60, %v4064_v18  ;;  %v6134_v18 = vld [vmem:[%s8137_s6 + $0x50] ss:$12 sps:$4 sm:$0xff]  }
 0x7b8   :  { %v4091_v55 = vmul.f32 %v6090_v4, %v4089_v45  ;;  %v4086_v31 = vsub.f32 1.0, %v6090_v4  ;;  %v6135_v60 = vld [vmem:[%s8137_s6 + $0x64] ss:$12 sps:$4 sm:$0xff]   ;;  %v6136_v45 = vld [vmem:[%s8137_s6 + $0x60] ss:$12 sps:$4 sm:$0xff]  }
 0x7b9   :  { %v4084_v49 = vadd.f32 %v4083_v28, %v7768_v1  ;;  %v6137_v4 = vld [vmem:[%s8137_s6 + $0x68] ss:$12 sps:$4 sm:$0xff]  }
 0x7ba   :  { %v6138_v28 = vld [vmem:[%s8137_s6 + $0x7c] ss:$12 sps:$4 sm:$0xff]  }
 0x7bb   :  { %6091 = vtanh.f32 %v4084_v49  ;;  %v6140_v49 = vld [vmem:[%s8137_s6 + $0x80] ss:$12 sps:$4 sm:$0xff]  }
 0x7c5   :  { %v6092_v48 = vpop.eup %6091 }
 0x7c6   :  { %v4087_v35 = vmul.f32 %v6092_v48, %v4086_v31  ;;  %v6141_v31 = vld [vmem:[%s8137_s6 + $0x94] ss:$12 sps:$4 sm:$0xff]   ;;  %v6142_v48 = vld [vmem:[%s8137_s6 + $0x90] ss:$12 sps:$4 sm:$0xff]  }
 0x7c8   :  { %v7975_v59 = vadd.f32 %v4091_v55, %v4087_v35  ;;  %v6139_v55 = vld [vmem:[%s8137_s6 + $0x78] ss:$12 sps:$4 sm:$0xff]  }
 0x7c9   :  { %v6143_v35 = vld [vmem:[%s8137_s6 + $0x98] ss:$12 sps:$4 sm:$0xff]  }
 0x7ca   :  { %v4093_v42 = vpack.c.bf16 %v7975_v59, %v7975_v59  ;;  %v4204_v63 = vrot.slane %v7975_v59, 6  ;;  %v6144_v59 = vld [vmem:[%s8137_s6 + $0xac] ss:$12 sps:$4 sm:$0xff]  }
 0x7cc   :  { %4127 = vmatmul.mubr.bf16.vlgmr.msra.gmra.mrb[56].mxu1 %v4093_v42  ;;  %5586 = vmatmul.mubr.bf16.vlgmr.msra.gmra.mrb[100].mxu0 %v4093_v42  ;;  %v6145_v42 = vld [vmem:[%s8137_s6 + $0xa8] ss:$12 sps:$4 sm:$0xff]  }
 0x7cd   :  { %4213 = vmatpush1.bf16.msra.mxu1 %v7571_v6  ;;  %5590 = vmatpush3.bf16.msra.mxu0 %v7576_v8  ;;  %v6123_v6 = vld [vmem:[%s8137_s6 + $0x4] ss:$12 sps:$4 sm:$0xff]  }
 0x7ce   :  { %4214 = vmatprep.subr.bf16.mxu1 %v7582_v43  ;;  %5591 = vmatprep.subr.bf16.mxu0 %v6171_v15 }
 0x7cf   :  { %4244 = vmatprep.mubr.bf16.mxu1 %v6172_v2  ;;  %5605 = vmatprep.mubr.msk.bf16.mxu0 %vm6173_vm1, %v6171_v15 }
 0x7d1   :  { %4215 = vmatpush1.bf16.msra.mxu1 %v7591_v17  ;;  %5592 = vmatpush3.bf16.msra.mxu0 %v7597_v9 }
 0x7d2   :  { %4216 = vmatprep.subr.bf16.mxu1 %v7603_v40  ;;  %5593 = vmatprep.subr.bf16.mxu0 %v6171_v15 }
 0x7d5   :  { %4217 = vmatpush1.bf16.msra.mxu1 %v7613_v11  ;;  %5594 = vmatpush3.bf16.msra.mxu0 %v7619_v19 }
 0x7d6   :  { %4218 = vmatprep.subr.bf16.mxu1 %v7625_v20  ;;  %5595 = vmatprep.subr.bf16.mxu0 %v6171_v15 }
 0x7d9   :  { %4219 = vmatpush1.bf16.msra.mxu1 %v7632_v62  ;;  %5596 = vmatpush3.bf16.msra.mxu0 %v7638_v21 }
 0x7da   :  { %4220 = vmatprep.subr.bf16.mxu1 %v7644_v23  ;;  %5597 = vmatprep.subr.bf16.mxu0 %v6171_v15 }
 0x7dd   :  { %4221 = vmatpush1.bf16.msra.mxu1 %v7651_v46  ;;  %5598 = vmatpush3.bf16.msra.mxu0 %v7657_v24 }
 0x7de   :  { %4222 = vmatprep.subr.bf16.mxu1 %v7663_v13  ;;  %5599 = vmatprep.subr.bf16.mxu0 %v6171_v15 }
 0x7e1   :  { %4223 = vmatpush1.bf16.msra.mxu1 %v7670_v58  ;;  %5600 = vmatpush3.bf16.msra.mxu0 %v7676_v44 }
 0x7e2   :  { %4224 = vmatprep.subr.bf16.mxu1 %v7682_v51  ;;  %5601 = vmatprep.subr.bf16.mxu0 %v6171_v15 }
 0x7e5   :  { %4225 = vmatpush1.bf16.msra.mxu1 %v7690_v39  ;;  %5602 = vmatpush3.bf16.msra.mxu0 %v7696_v36 }
 0x7e6   :  { %4226 = vmatprep.subr.bf16.mxu1 %v7703_v53  ;;  %5603 = vmatprep.subr.bf16.mxu0 %v6171_v15 }
 0x7e9   :  { %4227 = vmatpush1.bf16.msra.mxu1 %v7710_v29  ;;  %5604 = vmatpush3.bf16.msra.mxu0 %v7716_v12 }
 0x7ea   :  { %4330 = vmatprep.subr.bf16.mxu1 %v6123_v6  ;;  %5609 = vmatprep.subr.bf16.mxu0 %v6171_v15  ;;  %v6146_v6 = vld [vmem:[%s8137_s6 + $0xb0] ss:$12 sps:$4 sm:$0xff]  }
 0x89f   :  { %v4128_v8 = vpop.f32.mrb[56].mxu1  ;;  %v4169_v43 = vpop.f32.mrb[100].mxu0 }
 0x8a0   :  { %v4129_v17 = vadd.f32 %v4128_v8, %v7773_v34  ;;  %v4130_v9 = vpop.f32.mrb[57].mxu1  ;;  %v5587_v40 = vpop.f32.mrb[101].mxu0  ;;  %v4170_v29 = vadd.f32 %v4169_v43, %v7785_v52 }
 0x8a1   :  { %v4131_v11 = vadd.f32 %v4130_v9, %v7775_v37  ;;  %v4132_v19 = vpop.f32.mrb[58].mxu1  ;;  %v4172_v20 = vpop.f32.mrb[102].mxu0 }
 0x8a2   :  { %v4176_v62 = vrot.slane %v4129_v17, 6  ;;  %v4133_v21 = vpop.f32.mrb[59].mxu1  ;;  %v5588_v23 = vpop.f32.mrb[103].mxu0  ;;  %v4196_v12 = vrot.slane %v4170_v29, 6 }
 0x8a3   :  { %v4186_v46 = vrot.slane %v4131_v11, 6 }
 0x8a4   :  { %v4178_v24 = vadd.f32 %v4176_v62, %v7764_v57 }
 0x8a5   :  { %v4188_v13 = vadd.f32 %v4186_v46, %v7766_v47 }
 0x8a6   :  { %v4995_v58 = vmul.f32 -1.442695, %v4178_v24 }
 0x8a7   :  { %v4996_v44 = vmul.f32 -1.442695, %v4188_v13 }
 0x8a8   :  { %6093 = vpow2.f32 %v4995_v58 }
 0x8a9   :  { %6095 = vpow2.f32 %v4996_v44 }
 0x8b2   :  { %v6094_v51 = vpop.eup %6093 }
 0x8b3   :  { %v6096_v39 = vpop.eup %6095  ;;  %v4182_v36 = vadd.f32 1.0, %v6094_v51 }
 0x8b4   :  { %v4192_v53 = vadd.f32 1.0, %v6096_v39 }
 0x8b5   :  { %6097 = vrcp.f32 %v4182_v36 }
 0x8b6   :  { %6099 = vrcp.f32 %v4192_v53 }
 0x8bf   :  { %v6098_v38 = vpop.eup %6097 }
 0x8c0   :  { %v6100_v25 = vpop.eup %6099  ;;  %v4198_v56 = vmul.f32 %v6098_v38, %v4196_v12 }
 0x8c1   :  { %v4206_v32 = vmul.f32 %v6100_v25, %v4204_v63  ;;  %v4201_v26 = vsub.f32 1.0, %v6100_v25 }
 0x8c2   :  { %v4199_v50 = vadd.f32 %v4198_v56, %v7768_v1 }
 0x8c4   :  { %6101 = vtanh.f32 %v4199_v50 }
 0x8ce   :  { %v6102_v33 = vpop.eup %6101 }
 0x8cf   :  { %v4202_v7 = vmul.f32 %v6102_v33, %v4201_v26 }
 0x8d1   :  { %v8023_v0 = vadd.f32 %v4206_v32, %v4202_v7 }
 0x8d3   :  { %v4208_v61 = vpack.c.bf16 %v8023_v0, %v8023_v0  ;;  %v4322_v38 = vrot.slane %v8023_v0, 6 }
 0x8d5   :  { %v4210_v30 = vrot.slane %v4208_v61, 1 }
 0x8d7   :  { %4245 = vmatmul.mubr.bf16.vlgmr.msra.gmra.mrb[60].mxu1 %v4210_v30  ;;  %5606 = vmatmul.mubr.bf16.vlgmr.msra.gmra.mrb[104].mxu0 %v4210_v30 }
 0x8d8   :  { %4331 = vmatpush1.bf16.msra.mxu1 %v6124_v14  ;;  %5610 = vmatpush3.bf16.msra.mxu0 %v6125_v10 }
 0x8d9   :  { %4332 = vmatprep.subr.bf16.mxu1 %v6126_v22  ;;  %5611 = vmatprep.subr.bf16.mxu0 %v6171_v15 }
 0x8da   :  { %4362 = vmatprep.mubr.bf16.mxu1 %v6172_v2  ;;  %5625 = vmatprep.mubr.msk.bf16.mxu0 %vm6173_vm1, %v6171_v15  ;;  %v6130_v2 = vld [vmem:[%s8137_s6 + $0x30] ss:$12 sps:$4 sm:$0xff]   ;;  %s6174_s6 = smov [#allocation2]  }
 0x8db   :  { %s4451_s13 = sshll.u32 %s6174_s6, 4  ;;  %s4452_s13 = int_to_ptr.vmem [resolvable:$true] %s4451_s13 }
 0x8dc   :  { %4333 = vmatpush1.bf16.msra.mxu1 %v6127_v41  ;;  %5612 = vmatpush3.bf16.msra.mxu0 %v6128_v5  ;;  %s6147_s14 = scalar_lea.vmem %s4452_s13, 32  ;;  %p6152_p1 = scmp.lt.s32.totalorder %s4452_s13, %s4452_s13 }
 0x8dd   :  { %4334 = vmatprep.subr.bf16.mxu1 %v6129_v16  ;;  %5613 = vmatprep.subr.bf16.mxu0 %v6171_v15  ;;  %p6148_p0 = scmp.ne.s32.totalorder %s4452_s13, %s6147_s14  ;;  %p6153_p2 = scmp.lt.s32.totalorder %s6147_s14, %s6147_s14 }
 0x8df   :  { %p6154_p3 = por %p6153_p2, %p6152_p1 }
 0x8e0   :  { %4335 = vmatpush1.bf16.msra.mxu1 %v6130_v2  ;;  %5614 = vmatpush3.bf16.msra.mxu0 %v6131_v3 }
 0x8e1   :  { %4336 = vmatprep.subr.bf16.mxu1 %v6132_v27  ;;  %5615 = vmatprep.subr.bf16.mxu0 %v6171_v15  ;;  %p6155_p4 = pnand %p6154_p3, %p6148_p0 }
 0x8e4   :  { %4337 = vmatpush1.bf16.msra.mxu1 %v6133_v54  ;;  %5616 = vmatpush3.bf16.msra.mxu0 %v6134_v18 }
 0x8e5   :  { %4338 = vmatprep.subr.bf16.mxu1 %v6135_v60  ;;  %5617 = vmatprep.subr.bf16.mxu0 %v6171_v15 }
 0x8e8   :  { %4339 = vmatpush1.bf16.msra.mxu1 %v6136_v45  ;;  %5618 = vmatpush3.bf16.msra.mxu0 %v6137_v4 }
 0x8e9   :  { %4340 = vmatprep.subr.bf16.mxu1 %v6138_v28  ;;  %5619 = vmatprep.subr.bf16.mxu0 %v6171_v15 }
 0x8ec   :  { %4341 = vmatpush1.bf16.msra.mxu1 %v6139_v55  ;;  %5620 = vmatpush3.bf16.msra.mxu0 %v6140_v49 }
 0x8ed   :  { %4342 = vmatprep.subr.bf16.mxu1 %v6141_v31  ;;  %5621 = vmatprep.subr.bf16.mxu0 %v6171_v15 }
 0x8f0   :  { %4343 = vmatpush1.bf16.msra.mxu1 %v6142_v48  ;;  %5622 = vmatpush3.bf16.msra.mxu0 %v6143_v35 }
 0x8f1   :  { %4344 = vmatprep.subr.bf16.mxu1 %v6144_v59  ;;  %5623 = vmatprep.subr.bf16.mxu0 %v6171_v15 }
 0x8f4   :  { %4345 = vmatpush1.bf16.msra.mxu1 %v6145_v42  ;;  %5624 = vmatpush3.bf16.msra.mxu0 %v6146_v6 }
 0x9aa   :  { %v4246_v8 = vpop.f32.mrb[60].mxu1  ;;  %v4287_v43 = vpop.f32.mrb[104].mxu0 }
 0x9ab   :  { %v4247_v17 = vadd.f32 %v4246_v8, %v7773_v34  ;;  %v4248_v9 = vpop.f32.mrb[61].mxu1  ;;  %v5607_v40 = vpop.f32.mrb[105].mxu0  ;;  %v4288_v53 = vadd.f32 %v4287_v43, %v7785_v52 }
 0x9ac   :  { %v4249_v11 = vadd.f32 %v4248_v9, %v7775_v37  ;;  %v4250_v19 = vpop.f32.mrb[62].mxu1  ;;  %v4290_v15 = vpop.f32.mrb[106].mxu0 }
 0x9ad   :  { %v4294_v20 = vrot.slane %v4247_v17, 4  ;;  %v4251_v62 = vpop.f32.mrb[63].mxu1  ;;  %v5608_v21 = vpop.f32.mrb[107].mxu0  ;;  %v4314_v29 = vrot.slane %v4288_v53, 4 }
 0x9ae   :  { %v4304_v23 = vrot.slane %v4249_v11, 4 }
 0x9af   :  { %v4296_v46 = vadd.f32 %v4294_v20, %v7764_v57 }
 0x9b0   :  { %v4306_v24 = vadd.f32 %v4304_v23, %v7766_v47 }
 0x9b1   :  { %v4997_v13 = vmul.f32 -1.442695, %v4296_v46 }
 0x9b2   :  { %v4998_v58 = vmul.f32 -1.442695, %v4306_v24 }
 0x9b3   :  { %6103 = vpow2.f32 %v4997_v13 }
 0x9b4   :  { %6105 = vpow2.f32 %v4998_v58 }
 0x9bd   :  { %v6104_v44 = vpop.eup %6103 }
 0x9be   :  { %v6106_v51 = vpop.eup %6105  ;;  %v4300_v39 = vadd.f32 1.0, %v6104_v44 }
 0x9bf   :  { %v4310_v36 = vadd.f32 1.0, %v6106_v51 }
 0x9c0   :  { %6107 = vrcp.f32 %v4300_v39 }
 0x9c1   :  { %6109 = vrcp.f32 %v4310_v36 }
 0x9ca   :  { %v6108_v12 = vpop.eup %6107 }
 0x9cb   :  { %v6110_v63 = vpop.eup %6109  ;;  %v4316_v25 = vmul.f32 %v6108_v12, %v4314_v29 }
 0x9cc   :  { %v4324_v56 = vmul.f32 %v6110_v63, %v4322_v38  ;;  %v4319_v50 = vsub.f32 1.0, %v6110_v63 }
 0x9cd   :  { %v4317_v32 = vadd.f32 %v4316_v25, %v7768_v1 }
 0x9cf   :  { %6111 = vtanh.f32 %v4317_v32 }
 0x9d9   :  { %v6112_v26 = vpop.eup %6111 }
 0x9da   :  { %v4320_v33 = vmul.f32 %v6112_v26, %v4319_v50 }
 0x9dc   :  { %v4325_v7 = vadd.f32 %v4324_v56, %v4320_v33 }
 0x9de   :  { %v4326_v61 = vpack.c.bf16 %v4325_v7, %v4325_v7  ;;  %v4440_v59 = vrot.slane %v4325_v7, 6 }
 0x9e0   :  { %v4328_v30 = vrot.slane %v4326_v61, 2 }
 0x9e2   :  { %4363 = vmatmul.mubr.bf16.vlgmr.msra.gmra.mrb[64].mxu1 %v4328_v30  ;;  %5626 = vmatmul.mubr.bf16.vlgmr.msra.gmra.mrb[108].mxu0 %v4328_v30 }
 0xab5   :  { %v4364_v14 = vpop.f32.mrb[64].mxu1  ;;  %v4405_v10 = vpop.f32.mrb[108].mxu0 }
 0xab6   :  { %v4365_v22 = vadd.f32 %v4364_v14, %v7773_v34  ;;  %v4366_v41 = vpop.f32.mrb[65].mxu1  ;;  %v5627_v0 = vpop.f32.mrb[109].mxu0 }
 0xab7   :  { %v4367_v5 = vadd.f32 %v4366_v41, %v7775_v37  ;;  %v4368_v16 = vpop.f32.mrb[66].mxu1  ;;  %v4408_v2 = vpop.f32.mrb[110].mxu0  ;;  %v4406_v37 = vadd.f32 %v4405_v10, %v7785_v52 }
 0xab8   :  { %v4412_v3 = vrot.slane %v4365_v22, 2  ;;  %v4369_v27 = vpop.f32.mrb[67].mxu1  ;;  %v5628_v54 = vpop.f32.mrb[111].mxu0 }
 0xab9   :  { %v4422_v18 = vrot.slane %v4367_v5, 2  ;;  %v4432_v48 = vrot.slane %v4406_v37, 2 }
 0xaba   :  { %v4414_v60 = vadd.f32 %v4412_v3, %v7764_v57 }
 0xabb   :  { %v4424_v45 = vadd.f32 %v4422_v18, %v7766_v47 }
 0xabc   :  { %v4999_v4 = vmul.f32 -1.442695, %v4414_v60 }
 0xabd   :  { %v5000_v28 = vmul.f32 -1.442695, %v4424_v45 }
 0xabe   :  { %6113 = vpow2.f32 %v4999_v4 }
 0xabf   :  { %6115 = vpow2.f32 %v5000_v28 }
 0xac8   :  { %v6114_v55 = vpop.eup %6113 }
 0xac9   :  { %v6116_v34 = vpop.eup %6115  ;;  %v4418_v49 = vadd.f32 1.0, %v6114_v55 }
 0xaca   :  { %v4428_v31 = vadd.f32 1.0, %v6116_v34 }
 0xacb   :  { %6117 = vrcp.f32 %v4418_v49 }
 0xacc   :  { %6119 = vrcp.f32 %v4428_v31 }
 0xad5   :  { %v6118_v35 = vpop.eup %6117 }
 0xad6   :  { %v6120_v42 = vpop.eup %6119  ;;  %v4434_v6 = vmul.f32 %v6118_v35, %v4432_v48 }
 0xad7   :  { %v4442_v57 = vmul.f32 %v6120_v42, %v4440_v59  ;;  %v4437_v8 = vsub.f32 1.0, %v6120_v42 }
 0xad8   :  { %v4435_v47 = vadd.f32 %v4434_v6, %v7768_v1 }
 0xada   :  { %6121 = vtanh.f32 %v4435_v47 }
 0xae4   :  { %v6122_v43 = vpop.eup %6121 }
 0xae5   :  { %v4438_v17 = vmul.f32 %v6122_v43, %v4437_v8 }
 0xae7   :  { %v4443_v9 = vadd.f32 %v4442_v57, %v4438_v17 }
 0xae9   :  { %4444 = vst [vmem:[#allocation2 - $0x6] sm:$0xc0] %v4443_v9 }
 0xaea   :  { %6158 = shalt.err (!%p6155_p4)
}
 0xaeb   :  { %s6159_s17 = scalar_lea.hbm %s8139_s8, 32 }
 0xaec   :  { %p6160_p5 = scmp.ne.s32.totalorder %s8139_s8, %s6159_s17  ;;  %p6163_p6 = scmp.lt.u32.totalorder %s6159_s17, %s8139_s8 }
 0xaee   :  { %p6165_p7 = pnand %p6163_p6, %p6160_p5 }
 0xaf0   :  { %6168 = shalt.err (!%p6165_p7)
}
 0xaf1   :  { %4454 = dma.vmem_to_hbm [thread:$0]  %s4452_s13, 32, %s8139_s8, [#allocation3]  }
 0xaf2   :  { %6169 = dma.done.wait [#allocation3], 32  }
 0xaf3   :  { %6170 = vsyncadd [#allocation3], 4294967264 }
 0xaf4   :  { %4458 = vsyncpa [#allocation3], 1 }

</bundles_post_ra>
